<compile_context>
chip_gen: v5e
topology: v5e:2x2
jax: 0.10.0
libtpu: 0.0.40
codegen_flags: <defaults>
</compile_context>

<pallas_src>
import jax
import jax.numpy as jnp
from jax import lax
from jax.experimental import pallas as pl
from jax.experimental.pallas import tpu as pltpu


# ------------------------------ helpers -------------------------------------

def _round_up(x, m):
    return ((x + m - 1) // m) * m


def _prep_gate_cols(w, H, GW):
    """w: (R, 4H) with gate-blocked columns [i|f|g|o].

    Pre-scales i/f/o columns by 0.5 (single-tanh sigmoid trick) and zero-pads
    columns to GW, keeping the gate blocks tightly packed at 0, H, 2H, 3H.
    """
    scale = jnp.concatenate([
        jnp.full((2 * H,), 0.5, jnp.float32),
        jnp.ones((H,), jnp.float32),
        jnp.full((H,), 0.5, jnp.float32)])
    w = w.astype(jnp.float32) * scale
    return jnp.pad(w, ((0, 0), (0, GW - 4 * H)))


def _expand_concat_rows(w, H, Hcp):
    """(2H, N) rows = [fwd | bwd] -> (2*Hcp, N) rows = [fwd | 0 | bwd | 0]."""
    out = jnp.zeros((2 * Hcp, w.shape[1]), w.dtype)
    out = out.at[0:H].set(w[0:H])
    out = out.at[Hcp:Hcp + H].set(w[H:2 * H])
    return out


# ------------------------------ fused kernel --------------------------------

def _make_fused_kernel(num_layers, S, H, GW, Hcp):
    n_w = 4 * num_layers  # per layer: wih_fused, whh_f, whh_b, bias_fused

    def kernel(*refs):
        x_ref = refs[0]                               # (S, Bp, Dp) time-major
        w_refs = refs[1:1 + n_w]
        w_enc_ref, w_lstm_ref, b_fc_ref = refs[1 + n_w:4 + n_w]
        out_ref = refs[4 + n_w]                       # (Bp, Cp)
        act0, act1, xp = refs[5 + n_w:8 + n_w]        # VMEM scratch

        Bp = x_ref.shape[1]

        # Pad lanes of the concat activation buffers ([H:Hcp] / [Hcp+H:2Hcp])
        # are never written by the recurrence; zero them once so downstream
        # reads (next-layer projection K, pooling) see exact zeros, not stale
        # VMEM.
        act0[...] = jnp.zeros_like(act0)
        act1[...] = jnp.zeros_like(act1)

        def cell(gates, c_prev):
            # i/f/o columns were pre-scaled by 0.5 at parameter-prep time, so
            #   sigmoid(z) == 0.5 * tanh(gates) + 0.5   (i, f, o blocks)
            #   tanh(z)    ==       tanh(gates)         (g block)
            # -> ONE EUP push covers all four gate nonlinearities.
            t = jnp.tanh(gates)
            i_g = 0.5 * t[:, 0 * H:1 * H] + 0.5
            f_g = 0.5 * t[:, 1 * H:2 * H] + 0.5
            g_g = t[:, 2 * H:3 * H]
            o_g = 0.5 * t[:, 3 * H:4 * H] + 0.5
            c_new = f_g * c_prev + i_g * g_g
            h_new = o_g * jnp.tanh(c_new)
            return h_new, c_new

        def run_layer(in_ref, out_buf, wih_ref, whh_f_ref, whh_b_ref, b_ref):
            x_full = in_ref[...]                      # (S, Bp, d_in)
            s, b, d_in = x_full.shape
            x2d = x_full.reshape(s * b, d_in)

            # Fused fwd|bwd hoisted input projection (+bias): ONE matmul/layer.
            xp[...] = (jnp.dot(x2d, wih_ref[...],
                               preferred_element_type=jnp.float32)
                       + b_ref[...]).reshape(s, b, 2 * GW)

            # Read W_hh once per layer; loop-invariant value lets the compiler
            # keep the recurrent weights staged on the MXU across timesteps.
            whh_f = whh_f_ref[...]
            whh_b = whh_b_ref[...]

            def step(i, carry):
                h_f, c_f, h_b, c_b = carry
                tb = S - 1 - i
                # Interleaved fwd/bwd recurrences: only h @ W_hh is serial.
                gates_f = xp[i][:, 0:GW] + jnp.dot(
                    h_f, whh_f, preferred_element_type=jnp.float32)
                gates_b = xp[tb][:, GW:2 * GW] + jnp.dot(
                    h_b, whh_b, preferred_element_type=jnp.float32)
                h_f, c_f = cell(gates_f, c_f)
                h_b, c_b = cell(gates_b, c_b)
                # Vreg-aligned slots: fwd half at lane 0, bwd half at lane Hcp.
                out_buf[i, :, 0:H] = h_f
                out_buf[tb, :, Hcp:Hcp + H] = h_b
                return (h_f, c_f, h_b, c_b)

            z = jnp.zeros((Bp, H), jnp.float32)
            lax.fori_loop(0, S, step, (z, z, z, z), unroll=min(S, 8))

        bufs = (act0, act1)
        cur = x_ref
        for layer in range(num_layers):
            out_buf = bufs[layer % 2]
            run_layer(cur, out_buf, *w_refs[4 * layer:4 * layer + 4])
            cur = out_buf
            # nn.LSTM inter-layer dropout: inference no-op.

        # cat + relu + MaxPool1d(S) + fc.  relu is monotone so
        # relu(max_t(x)) == max_t(relu(x)); splitting the fc weight into an
        # encoder slice and an lstm slice is identical to concat-then-matmul.
        pooled_enc = jnp.maximum(jnp.max(x_ref[...], axis=0), 0.0)   # (Bp, Dp)
        pooled_lstm = jnp.maximum(jnp.max(cur[...], axis=0), 0.0)    # (Bp, 2Hcp)
        out_ref[...] = (jnp.dot(pooled_enc, w_enc_ref[...],
                                preferred_element_type=jnp.float32)
                        + jnp.dot(pooled_lstm, w_lstm_ref[...],
                                  preferred_element_type=jnp.float32)
                        + b_fc_ref[...])

    return kernel


def _fused_pallas_forward(x_sbd, lstm_flat, w_enc, w_lstm, b_fc, *,
                          num_layers, H, GW, Hcp):
    S, Bp, _Dp = x_sbd.shape
    Cp = w_enc.shape[1]
    args = (x_sbd, *lstm_flat, w_enc, w_lstm, b_fc)
    vmem = pltpu.MemorySpace.VMEM
    return pl.pallas_call(
        _make_fused_kernel(num_layers, S, H, GW, Hcp),
        # grid=(): single invocation; operands fully resident in VMEM with NO
        # double-buffering (no pipelining overlap exists to exploit anyway).
        in_specs=[pl.BlockSpec(memory_space=vmem) for _ in args],
        out_specs=pl.BlockSpec(memory_space=vmem),
        out_shape=jax.ShapeDtypeStruct((Bp, Cp), jnp.float32),
        scratch_shapes=[
            pltpu.VMEM((S, Bp, 2 * Hcp), jnp.float32),   # layer act (ping)
            pltpu.VMEM((S, Bp, 2 * Hcp), jnp.float32),   # layer act (pong)
            pltpu.VMEM((S, Bp, 2 * GW), jnp.float32),    # fused fwd|bwd proj
        ],
        compiler_params=pltpu.CompilerParams(
            vmem_limit_bytes=32 * 1024 * 1024),
    )(*args)


# --------------------------- parameters / model ------------------------------

def init_params(key, *, vocab_size, hidden_size, rnn_hidden, num_layers,
                num_classes):
    H = rnn_hidden
    GW = _round_up(4 * H, 128)          # fused gate-block lane width (tight)
    Hcp = _round_up(H, 128)             # per-direction slot in the concat act
    Dp = _round_up(hidden_size, 128)    # lane-dense encoder width
    Cp = _round_up(num_classes, 128)    # lane-dense class dim
    keys = iter(jax.random.split(key, 3 + 8 * num_layers))

    params = {"H": H, "GW": GW, "Hcp": Hcp, "D_pad": Dp, "C_pad": Cp,
              "hidden_size": hidden_size, "num_classes": num_classes,
              "num_layers": num_layers}
    params["embedding"] = 0.02 * jax.random.normal(
        next(keys), (vocab_size, hidden_size), jnp.float32)

    k = 1.0 / (H ** 0.5)
    lstm_flat, lstm_raw = [], []
    for layer in range(num_layers):
        d_in = hidden_size if layer == 0 else 2 * H
        wih_dirs, whh_dirs, b_dirs, dirs_raw = [], [], [], []
        for _direction in range(2):
            wih = jax.random.uniform(next(keys), (4 * H, d_in), jnp.float32, -k, k)
            whh = jax.random.uniform(next(keys), (4 * H, H), jnp.float32, -k, k)
            bih = jax.random.uniform(next(keys), (4 * H,), jnp.float32, -k, k)
            bhh = jax.random.uniform(next(keys), (4 * H,), jnp.float32, -k, k)
            dirs_raw.append((wih, whh, bih, bhh))

            # Kernel layouts: transposed, i/f/o pre-scaled, tight gate blocks.
            wih_t = _prep_gate_cols(wih.T, H, GW)                    # (d_in, GW)
            if layer == 0:
                wih_t = jnp.pad(wih_t, ((0, Dp - d_in), (0, 0)))     # (Dp, GW)
            else:
                wih_t = _expand_concat_rows(wih_t, H, Hcp)           # (2Hcp, GW)
            whh_t = _prep_gate_cols(whh.T, H, GW)                    # (H, GW)
            bias = _prep_gate_cols((bih + bhh).reshape(1, 4 * H), H, GW)
            wih_dirs.append(wih_t)
            whh_dirs.append(whh_t)
            b_dirs.append(bias)

        # Fused fwd|bwd input-projection weights: ONE matmul per layer.
        lstm_flat += [jnp.concatenate(wih_dirs, axis=1),    # (d_in_p, 2*GW)
                      whh_dirs[0], whh_dirs[1],             # (H, GW) each
                      jnp.concatenate(b_dirs, axis=1)]      # (1, 2*GW)
        lstm_raw.append(tuple(dirs_raw))
    params["lstm_flat"] = lstm_flat
    params["lstm_raw"] = lstm_raw

    fc_in = hidden_size + 2 * H
    kf = 1.0 / (fc_in ** 0.5)
    w_fc = jax.random.uniform(next(keys), (num_classes, fc_in), jnp.float32, -kf, kf)
    b_fc = jax.random.uniform(next(keys), (num_classes,), jnp.float32, -kf, kf)
    params["w_fc_raw"], params["b_fc_raw"] = w_fc, b_fc

    params["w_enc"] = jnp.zeros((Dp, Cp), jnp.float32).at[
        :hidden_size, :num_classes].set(w_fc[:, :hidden_size].T)     # (Dp, Cp)
    w_lstm = jnp.zeros((2 * H, Cp), jnp.float32).at[
        :, :num_classes].set(w_fc[:, hidden_size:].T)                # (2H, Cp)
    params["w_lstm"] = _expand_concat_rows(w_lstm, H, Hcp)           # (2Hcp, Cp)
    params["b_fc"] = jnp.zeros((1, Cp), jnp.float32).at[
        0, :num_classes].set(b_fc)
    return params


def bert_rcnn_forward(params, x):
    context, _seq_len, mask = x
    # BERT stand-in (see TODO): deterministic embedding lookup, masked.
    enc = params["embedding"][context] * mask[..., None].astype(jnp.float32)
    B, S, D = enc.shape
    Bp = max(8, _round_up(B, 8))                      # sublane-dense batch
    Dp = params["D_pad"]

    x_sbd = jnp.transpose(enc, (1, 0, 2))             # time-major (S, B, D)
    x_sbd = jnp.pad(x_sbd, ((0, 0), (0, Bp - B), (0, Dp - D)))

    logits_p = _fused_pallas_forward(
        x_sbd, params["lstm_flat"], params["w_enc"], params["w_lstm"],
        params["b_fc"], num_layers=params["num_layers"],
        H=params["H"], GW=params["GW"], Hcp=params["Hcp"])
    return logits_p[:B, :params["num_classes"]]


# ------------------------- pure-JAX reference --------------------------------

def bert_rcnn_reference(params, x):
    """Unpadded, non-Pallas reference of the same forward pass."""
    hi = jax.lax.Precision.HIGHEST
    context, _seq_len, mask = x
    enc = params["embedding"][context] * mask[..., None].astype(jnp.float32)
    B, S, _D = enc.shape
    layer_in = enc
    for fwd, bwd in params["lstm_raw"]:
        dir_outs = []
        for (wih, whh, bih, bhh), reverse in ((fwd, False), (bwd, True)):
            H = whh.shape[1]
            h = jnp.zeros((B, H), jnp.float32)
            c = jnp.zeros((B, H), jnp.float32)
            outs = [None] * S
            order = range(S - 1, -1, -1) if reverse else range(S)
            for t in order:
                gates = (jnp.dot(layer_in[:, t], wih.T, precision=hi)
                         + jnp.dot(h, whh.T, precision=hi) + bih + bhh)
                i_g = jax.nn.sigmoid(gates[:, 0:H])
                f_g = jax.nn.sigmoid(gates[:, H:2 * H])
                g_g = jnp.tanh(gates[:, 2 * H:3 * H])
                o_g = jax.nn.sigmoid(gates[:, 3 * H:4 * H])
                c = f_g * c + i_g * g_g
                h = o_g * jnp.tanh(c)
                outs[t] = h
            dir_outs.append(jnp.stack(outs, axis=1))
        layer_in = jnp.concatenate(dir_outs, axis=-1)
    cat = jnp.concatenate([enc, layer_in], axis=-1)
    pooled = jnp.max(jax.nn.relu(cat), axis=1)
    return jnp.dot(pooled, params["w_fc_raw"].T, precision=hi) + params["b_fc_raw"]


# --------------------------------- main --------------------------------------

if __name__ == "__main__":
    B = 2              # batch
    S = 8              # pad_size (sequence length)
    hidden_size = 32   # BERT hidden size
    rnn_hidden = 16
    num_layers = 2
    num_classes = 10
    vocab_size = 100

    key = jax.random.PRNGKey(0)
    pkey, ckey = jax.random.split(key)
    params = init_params(pkey, vocab_size=vocab_size, hidden_size=hidden_size,
                         rnn_hidden=rnn_hidden, num_layers=num_layers,
                         num_classes=num_classes)

    context = jax.random.randint(ckey, (B, S), 0, vocab_size)
    seq_len = jnp.full((B,), S, jnp.int32)       # x[1] in the dataset tuple (unused)
    mask = jnp.ones((B, S), jnp.float32)         # x[2] attention mask

    logits = bert_rcnn_forward(params, (context, seq_len, mask))
    logits = jax.block_until_ready(logits)

    assert logits.shape == (B, num_classes)
    assert bool(jnp.all(jnp.isfinite(logits)))

    ref = bert_rcnn_reference(params, (context, seq_len, mask))
    assert bool(jnp.allclose(logits, ref, rtol=1e-3, atol=1e-3)), \
        float(jnp.max(jnp.abs(logits - ref)))

    print("KERNEL_OK")
</pallas_src>

<mosaic_0001>
module attributes {stable_mosaic.version = 11 : i64} {
  func.func @kernel(%arg0: memref<8x8x128xf32, #tpu.memory_space<vmem>>, %arg1: memref<128x256xf32, #tpu.memory_space<vmem>>, %arg2: memref<16x128xf32, #tpu.memory_space<vmem>>, %arg3: memref<16x128xf32, #tpu.memory_space<vmem>>, %arg4: memref<1x256xf32, #tpu.memory_space<vmem>>, %arg5: memref<256x256xf32, #tpu.memory_space<vmem>>, %arg6: memref<16x128xf32, #tpu.memory_space<vmem>>, %arg7: memref<16x128xf32, #tpu.memory_space<vmem>>, %arg8: memref<1x256xf32, #tpu.memory_space<vmem>>, %arg9: memref<128x128xf32, #tpu.memory_space<vmem>>, %arg10: memref<256x128xf32, #tpu.memory_space<vmem>>, %arg11: memref<1x128xf32, #tpu.memory_space<vmem>>, %arg12: memref<8x128xf32, #tpu.memory_space<vmem>>, %arg13: memref<8x8x256xf32, #tpu.memory_space<vmem>>, %arg14: memref<8x8x256xf32, #tpu.memory_space<vmem>>, %arg15: memref<8x8x256xf32, #tpu.memory_space<vmem>>) attributes {dimension_semantics = [], scalar_prefetch = 0 : i64, scratch_operands = 3 : i64, tpu.core_type = #tpu.core_type<tc>} {
    %cst = arith.constant 0.000000e+00 : f32
    %0 = vector.broadcast %cst : f32 to vector<8x8x256xf32>
    %c0 = arith.constant 0 : index
    %c0_0 = arith.constant 0 : index
    %c0_1 = arith.constant 0 : index
    %1 = vector.load %arg13[%c0, %c0_0, %c0_1] : memref<8x8x256xf32, #tpu.memory_space<vmem>>, vector<8x8x256xf32>
    tpu.vector_store %arg13[%c0, %c0_0, %c0_1], %0 {strides = array<i32>} : memref<8x8x256xf32, #tpu.memory_space<vmem>>, vector<8x8x256xf32>,
    %cst_2 = arith.constant 0.000000e+00 : f32
    %2 = vector.broadcast %cst_2 : f32 to vector<8x8x256xf32>
    %c0_3 = arith.constant 0 : index
    %c0_4 = arith.constant 0 : index
    %c0_5 = arith.constant 0 : index
    %3 = vector.load %arg14[%c0_3, %c0_4, %c0_5] : memref<8x8x256xf32, #tpu.memory_space<vmem>>, vector<8x8x256xf32>
    tpu.vector_store %arg14[%c0_3, %c0_4, %c0_5], %2 {strides = array<i32>} : memref<8x8x256xf32, #tpu.memory_space<vmem>>, vector<8x8x256xf32>,
    %c0_6 = arith.constant 0 : index
    %c0_7 = arith.constant 0 : index
    %c0_8 = arith.constant 0 : index
    %4 = vector.load %arg0[%c0_6, %c0_7, %c0_8] : memref<8x8x128xf32, #tpu.memory_space<vmem>>, vector<8x8x128xf32>
    %5 = vector.shape_cast %4 : vector<8x8x128xf32> to vector<64x128xf32>
    %c0_9 = arith.constant 0 : index
    %c0_10 = arith.constant 0 : index
    %6 = vector.load %arg1[%c0_9, %c0_10] : memref<128x256xf32, #tpu.memory_space<vmem>>, vector<128x256xf32>
    %cst_11 = arith.constant dense<0.000000e+00> : vector<64x256xf32>
    %7 = tpu.matmul %5, %6, %cst_11 {dimension_numbers = #tpu.dot_dimension_numbers<[1], [0], [0], [1], [0, 0, 1, 1], [], []>} : vector<64x128xf32>, vector<128x256xf32>, vector<64x256xf32> -> vector<64x256xf32>
    %c0_12 = arith.constant 0 : index
    %c0_13 = arith.constant 0 : index
    %8 = vector.load %arg4[%c0_12, %c0_13] : memref<1x256xf32, #tpu.memory_space<vmem>>, vector<1x256xf32>
    %9 = vector.broadcast %8 : vector<1x256xf32> to vector<64x256xf32>
    %10 = arith.addf %7, %9 : vector<64x256xf32>
    %11 = vector.shape_cast %10 : vector<64x256xf32> to vector<8x8x256xf32>
    %c0_14 = arith.constant 0 : index
    %c0_15 = arith.constant 0 : index
    %c0_16 = arith.constant 0 : index
    %12 = vector.load %arg15[%c0_14, %c0_15, %c0_16] : memref<8x8x256xf32, #tpu.memory_space<vmem>>, vector<8x8x256xf32>
    tpu.vector_store %arg15[%c0_14, %c0_15, %c0_16], %11 {strides = array<i32>} : memref<8x8x256xf32, #tpu.memory_space<vmem>>, vector<8x8x256xf32>,
    %c0_17 = arith.constant 0 : index
    %c0_18 = arith.constant 0 : index
    %13 = vector.load %arg2[%c0_17, %c0_18] : memref<16x128xf32, #tpu.memory_space<vmem>>, vector<16x128xf32>
    %c0_19 = arith.constant 0 : index
    %c0_20 = arith.constant 0 : index
    %14 = vector.load %arg3[%c0_19, %c0_20] : memref<16x128xf32, #tpu.memory_space<vmem>>, vector<16x128xf32>
    %cst_21 = arith.constant 0.000000e+00 : f32
    %15 = vector.broadcast %cst_21 : f32 to vector<8x16xf32>
    %c0_i32 = arith.constant 0 : i32
    %c7_i32 = arith.constant 7 : i32
    %16 = arith.subi %c7_i32, %c0_i32 : i32
    %17 = arith.index_cast %c0_i32 : i32 to index
    %c0_22 = arith.constant 0 : index
    %c0_23 = arith.constant 0 : index
    %18 = vector.load %arg15[%17, %c0_22, %c0_23] : memref<8x8x256xf32, #tpu.memory_space<vmem>>, vector<1x8x256xf32>
    %19 = vector.shape_cast %18 : vector<1x8x256xf32> to vector<8x256xf32>
    %20 = vector.extract_strided_slice %19 {offsets = [0, 0], sizes = [8, 128], strides = [1, 1]} : vector<8x256xf32> to vector<8x128xf32>
    %cst_24 = arith.constant dense<0.000000e+00> : vector<8x128xf32>
    %21 = tpu.matmul %15, %13, %cst_24 {dimension_numbers = #tpu.dot_dimension_numbers<[1], [0], [0], [1], [0, 0, 1, 1], [], []>} : vector<8x16xf32>, vector<16x128xf32>, vector<8x128xf32> -> vector<8x128xf32>
    %22 = arith.addf %20, %21 : vector<8x128xf32>
    %23 = arith.index_cast %16 : i32 to index
    %c0_25 = arith.constant 0 : index
    %c0_26 = arith.constant 0 : index
    %24 = vector.load %arg15[%23, %c0_25, %c0_26] : memref<8x8x256xf32, #tpu.memory_space<vmem>>, vector<1x8x256xf32>
    %25 = vector.shape_cast %24 : vector<1x8x256xf32> to vector<8x256xf32>
    %26 = vector.extract_strided_slice %25 {offsets = [0, 128], sizes = [8, 128], strides = [1, 1]} : vector<8x256xf32> to vector<8x128xf32>
    %cst_27 = arith.constant dense<0.000000e+00> : vector<8x128xf32>
    %27 = tpu.matmul %15, %14, %cst_27 {dimension_numbers = #tpu.dot_dimension_numbers<[1], [0], [0], [1], [0, 0, 1, 1], [], []>} : vector<8x16xf32>, vector<16x128xf32>, vector<8x128xf32> -> vector<8x128xf32>
    %28 = arith.addf %26, %27 : vector<8x128xf32>
    %29 = math.tanh %22 : vector<8x128xf32>
    %30 = vector.extract_strided_slice %29 {offsets = [0, 0], sizes = [8, 16], strides = [1, 1]} : vector<8x128xf32> to vector<8x16xf32>
    %cst_28 = arith.constant 5.000000e-01 : f32
    %31 = vector.broadcast %cst_28 : f32 to vector<8x16xf32>
    %32 = arith.mulf %31, %30 : vector<8x16xf32>
    %cst_29 = arith.constant 5.000000e-01 : f32
    %33 = vector.broadcast %cst_29 : f32 to vector<8x16xf32>
    %34 = arith.addf %32, %33 : vector<8x16xf32>
    %35 = vector.extract_strided_slice %29 {offsets = [0, 16], sizes = [8, 16], strides = [1, 1]} : vector<8x128xf32> to vector<8x16xf32>
    %cst_30 = arith.constant 5.000000e-01 : f32
    %36 = vector.broadcast %cst_30 : f32 to vector<8x16xf32>
    %37 = arith.mulf %36, %35 : vector<8x16xf32>
    %cst_31 = arith.constant 5.000000e-01 : f32
    %38 = vector.broadcast %cst_31 : f32 to vector<8x16xf32>
    %39 = arith.addf %37, %38 : vector<8x16xf32>
    %40 = vector.extract_strided_slice %29 {offsets = [0, 32], sizes = [8, 16], strides = [1, 1]} : vector<8x128xf32> to vector<8x16xf32>
    %41 = vector.extract_strided_slice %29 {offsets = [0, 48], sizes = [8, 16], strides = [1, 1]} : vector<8x128xf32> to vector<8x16xf32>
    %cst_32 = arith.constant 5.000000e-01 : f32
    %42 = vector.broadcast %cst_32 : f32 to vector<8x16xf32>
    %43 = arith.mulf %42, %41 : vector<8x16xf32>
    %cst_33 = arith.constant 5.000000e-01 : f32
    %44 = vector.broadcast %cst_33 : f32 to vector<8x16xf32>
    %45 = arith.addf %43, %44 : vector<8x16xf32>
    %46 = arith.mulf %39, %15 : vector<8x16xf32>
    %47 = arith.mulf %34, %40 : vector<8x16xf32>
    %48 = arith.addf %46, %47 : vector<8x16xf32>
    %49 = math.tanh %48 : vector<8x16xf32>
    %50 = arith.mulf %45, %49 : vector<8x16xf32>
    %51 = math.tanh %28 : vector<8x128xf32>
    %52 = vector.extract_strided_slice %51 {offsets = [0, 0], sizes = [8, 16], strides = [1, 1]} : vector<8x128xf32> to vector<8x16xf32>
    %cst_34 = arith.constant 5.000000e-01 : f32
    %53 = vector.broadcast %cst_34 : f32 to vector<8x16xf32>
    %54 = arith.mulf %53, %52 : vector<8x16xf32>
    %cst_35 = arith.constant 5.000000e-01 : f32
    %55 = vector.broadcast %cst_35 : f32 to vector<8x16xf32>
    %56 = arith.addf %54, %55 : vector<8x16xf32>
    %57 = vector.extract_strided_slice %51 {offsets = [0, 16], sizes = [8, 16], strides = [1, 1]} : vector<8x128xf32> to vector<8x16xf32>
    %cst_36 = arith.constant 5.000000e-01 : f32
    %58 = vector.broadcast %cst_36 : f32 to vector<8x16xf32>
    %59 = arith.mulf %58, %57 : vector<8x16xf32>
    %cst_37 = arith.constant 5.000000e-01 : f32
    %60 = vector.broadcast %cst_37 : f32 to vector<8x16xf32>
    %61 = arith.addf %59, %60 : vector<8x16xf32>
    %62 = vector.extract_strided_slice %51 {offsets = [0, 32], sizes = [8, 16], strides = [1, 1]} : vector<8x128xf32> to vector<8x16xf32>
    %63 = vector.extract_strided_slice %51 {offsets = [0, 48], sizes = [8, 16], strides = [1, 1]} : vector<8x128xf32> to vector<8x16xf32>
    %cst_38 = arith.constant 5.000000e-01 : f32
    %64 = vector.broadcast %cst_38 : f32 to vector<8x16xf32>
    %65 = arith.mulf %64, %63 : vector<8x16xf32>
    %cst_39 = arith.constant 5.000000e-01 : f32
    %66 = vector.broadcast %cst_39 : f32 to vector<8x16xf32>
    %67 = arith.addf %65, %66 : vector<8x16xf32>
    %68 = arith.mulf %61, %15 : vector<8x16xf32>
    %69 = arith.mulf %56, %62 : vector<8x16xf32>
    %70 = arith.addf %68, %69 : vector<8x16xf32>
    %71 = math.tanh %70 : vector<8x16xf32>
    %72 = arith.mulf %67, %71 : vector<8x16xf32>
    %73 = arith.index_cast %c0_i32 : i32 to index
    %c0_40 = arith.constant 0 : index
    %c0_41 = arith.constant 0 : index
    %74 = vector.load %arg13[%73, %c0_40, %c0_41] : memref<8x8x256xf32, #tpu.memory_space<vmem>>, vector<1x8x16xf32>
    %75 = vector.shape_cast %74 : vector<1x8x16xf32> to vector<8x16xf32>
    %76 = vector.shape_cast %50 : vector<8x16xf32> to vector<1x8x16xf32>
    tpu.vector_store %arg13[%73, %c0_40, %c0_41], %76 {strides = array<i32>} : memref<8x8x256xf32, #tpu.memory_space<vmem>>, vector<1x8x16xf32>,
    %77 = arith.index_cast %16 : i32 to index
    %c0_42 = arith.constant 0 : index
    %c128 = arith.constant 128 : index
    %78 = vector.load %arg13[%77, %c0_42, %c128] : memref<8x8x256xf32, #tpu.memory_space<vmem>>, vector<1x8x16xf32>
    %79 = vector.shape_cast %78 : vector<1x8x16xf32> to vector<8x16xf32>
    %80 = vector.shape_cast %72 : vector<8x16xf32> to vector<1x8x16xf32>
    tpu.vector_store %arg13[%77, %c0_42, %c128], %80 {strides = array<i32>} : memref<8x8x256xf32, #tpu.memory_space<vmem>>, vector<1x8x16xf32>,
    %c1_i32 = arith.constant 1 : i32
    %c7_i32_43 = arith.constant 7 : i32
    %81 = arith.subi %c7_i32_43, %c1_i32 : i32
    %82 = arith.index_cast %c1_i32 : i32 to index
    %c0_44 = arith.constant 0 : index
    %c0_45 = arith.constant 0 : index
    %83 = vector.load %arg15[%82, %c0_44, %c0_45] : memref<8x8x256xf32, #tpu.memory_space<vmem>>, vector<1x8x256xf32>
    %84 = vector.shape_cast %83 : vector<1x8x256xf32> to vector<8x256xf32>
    %85 = vector.extract_strided_slice %84 {offsets = [0, 0], sizes = [8, 128], strides = [1, 1]} : vector<8x256xf32> to vector<8x128xf32>
    %cst_46 = arith.constant dense<0.000000e+00> : vector<8x128xf32>
    %86 = tpu.matmul %50, %13, %cst_46 {dimension_numbers = #tpu.dot_dimension_numbers<[1], [0], [0], [1], [0, 0, 1, 1], [], []>} : vector<8x16xf32>, vector<16x128xf32>, vector<8x128xf32> -> vector<8x128xf32>
    %87 = arith.addf %85, %86 : vector<8x128xf32>
    %88 = arith.index_cast %81 : i32 to index
    %c0_47 = arith.constant 0 : index
    %c0_48 = arith.constant 0 : index
    %89 = vector.load %arg15[%88, %c0_47, %c0_48] : memref<8x8x256xf32, #tpu.memory_space<vmem>>, vector<1x8x256xf32>
    %90 = vector.shape_cast %89 : vector<1x8x256xf32> to vector<8x256xf32>
    %91 = vector.extract_strided_slice %90 {offsets = [0, 128], sizes = [8, 128], strides = [1, 1]} : vector<8x256xf32> to vector<8x128xf32>
    %cst_49 = arith.constant dense<0.000000e+00> : vector<8x128xf32>
    %92 = tpu.matmul %72, %14, %cst_49 {dimension_numbers = #tpu.dot_dimension_numbers<[1], [0], [0], [1], [0, 0, 1, 1], [], []>} : vector<8x16xf32>, vector<16x128xf32>, vector<8x128xf32> -> vector<8x128xf32>
    %93 = arith.addf %91, %92 : vector<8x128xf32>
    %94 = math.tanh %87 : vector<8x128xf32>
    %95 = vector.extract_strided_slice %94 {offsets = [0, 0], sizes = [8, 16], strides = [1, 1]} : vector<8x128xf32> to vector<8x16xf32>
    %cst_50 = arith.constant 5.000000e-01 : f32
    %96 = vector.broadcast %cst_50 : f32 to vector<8x16xf32>
    %97 = arith.mulf %96, %95 : vector<8x16xf32>
    %cst_51 = arith.constant 5.000000e-01 : f32
    %98 = vector.broadcast %cst_51 : f32 to vector<8x16xf32>
    %99 = arith.addf %97, %98 : vector<8x16xf32>
    %100 = vector.extract_strided_slice %94 {offsets = [0, 16], sizes = [8, 16], strides = [1, 1]} : vector<8x128xf32> to vector<8x16xf32>
    %cst_52 = arith.constant 5.000000e-01 : f32
    %101 = vector.broadcast %cst_52 : f32 to vector<8x16xf32>
    %102 = arith.mulf %101, %100 : vector<8x16xf32>
    %cst_53 = arith.constant 5.000000e-01 : f32
    %103 = vector.broadcast %cst_53 : f32 to vector<8x16xf32>
    %104 = arith.addf %102, %103 : vector<8x16xf32>
    %105 = vector.extract_strided_slice %94 {offsets = [0, 32], sizes = [8, 16], strides = [1, 1]} : vector<8x128xf32> to vector<8x16xf32>
    %106 = vector.extract_strided_slice %94 {offsets = [0, 48], sizes = [8, 16], strides = [1, 1]} : vector<8x128xf32> to vector<8x16xf32>
    %cst_54 = arith.constant 5.000000e-01 : f32
    %107 = vector.broadcast %cst_54 : f32 to vector<8x16xf32>
    %108 = arith.mulf %107, %106 : vector<8x16xf32>
    %cst_55 = arith.constant 5.000000e-01 : f32
    %109 = vector.broadcast %cst_55 : f32 to vector<8x16xf32>
    %110 = arith.addf %108, %109 : vector<8x16xf32>
    %111 = arith.mulf %104, %48 : vector<8x16xf32>
    %112 = arith.mulf %99, %105 : vector<8x16xf32>
    %113 = arith.addf %111, %112 : vector<8x16xf32>
    %114 = math.tanh %113 : vector<8x16xf32>
    %115 = arith.mulf %110, %114 : vector<8x16xf32>
    %116 = math.tanh %93 : vector<8x128xf32>
    %117 = vector.extract_strided_slice %116 {offsets = [0, 0], sizes = [8, 16], strides = [1, 1]} : vector<8x128xf32> to vector<8x16xf32>
    %cst_56 = arith.constant 5.000000e-01 : f32
    %118 = vector.broadcast %cst_56 : f32 to vector<8x16xf32>
    %119 = arith.mulf %118, %117 : vector<8x16xf32>
    %cst_57 = arith.constant 5.000000e-01 : f32
    %120 = vector.broadcast %cst_57 : f32 to vector<8x16xf32>
    %121 = arith.addf %119, %120 : vector<8x16xf32>
    %122 = vector.extract_strided_slice %116 {offsets = [0, 16], sizes = [8, 16], strides = [1, 1]} : vector<8x128xf32> to vector<8x16xf32>
    %cst_58 = arith.constant 5.000000e-01 : f32
    %123 = vector.broadcast %cst_58 : f32 to vector<8x16xf32>
    %124 = arith.mulf %123, %122 : vector<8x16xf32>
    %cst_59 = arith.constant 5.000000e-01 : f32
    %125 = vector.broadcast %cst_59 : f32 to vector<8x16xf32>
    %126 = arith.addf %124, %125 : vector<8x16xf32>
    %127 = vector.extract_strided_slice %116 {offsets = [0, 32], sizes = [8, 16], strides = [1, 1]} : vector<8x128xf32> to vector<8x16xf32>
    %128 = vector.extract_strided_slice %116 {offsets = [0, 48], sizes = [8, 16], strides = [1, 1]} : vector<8x128xf32> to vector<8x16xf32>
    %cst_60 = arith.constant 5.000000e-01 : f32
    %129 = vector.broadcast %cst_60 : f32 to vector<8x16xf32>
    %130 = arith.mulf %129, %128 : vector<8x16xf32>
    %cst_61 = arith.constant 5.000000e-01 : f32
    %131 = vector.broadcast %cst_61 : f32 to vector<8x16xf32>
    %132 = arith.addf %130, %131 : vector<8x16xf32>
    %133 = arith.mulf %126, %70 : vector<8x16xf32>
    %134 = arith.mulf %121, %127 : vector<8x16xf32>
    %135 = arith.addf %133, %134 : vector<8x16xf32>
    %136 = math.tanh %135 : vector<8x16xf32>
    %137 = arith.mulf %132, %136 : vector<8x16xf32>
    %138 = arith.index_cast %c1_i32 : i32 to index
    %c0_62 = arith.constant 0 : index
    %c0_63 = arith.constant 0 : index
    %139 = vector.load %arg13[%138, %c0_62, %c0_63] : memref<8x8x256xf32, #tpu.memory_space<vmem>>, vector<1x8x16xf32>
    %140 = vector.shape_cast %139 : vector<1x8x16xf32> to vector<8x16xf32>
    %141 = vector.shape_cast %115 : vector<8x16xf32> to vector<1x8x16xf32>
    tpu.vector_store %arg13[%138, %c0_62, %c0_63], %141 {strides = array<i32>} : memref<8x8x256xf32, #tpu.memory_space<vmem>>, vector<1x8x16xf32>,
    %142 = arith.index_cast %81 : i32 to index
    %c0_64 = arith.constant 0 : index
    %c128_65 = arith.constant 128 : index
    %143 = vector.load %arg13[%142, %c0_64, %c128_65] : memref<8x8x256xf32, #tpu.memory_space<vmem>>, vector<1x8x16xf32>
    %144 = vector.shape_cast %143 : vector<1x8x16xf32> to vector<8x16xf32>
    %145 = vector.shape_cast %137 : vector<8x16xf32> to vector<1x8x16xf32>
    tpu.vector_store %arg13[%142, %c0_64, %c128_65], %145 {strides = array<i32>} : memref<8x8x256xf32, #tpu.memory_space<vmem>>, vector<1x8x16xf32>,
    %c2_i32 = arith.constant 2 : i32
    %c7_i32_66 = arith.constant 7 : i32
    %146 = arith.subi %c7_i32_66, %c2_i32 : i32
    %147 = arith.index_cast %c2_i32 : i32 to index
    %c0_67 = arith.constant 0 : index
    %c0_68 = arith.constant 0 : index
    %148 = vector.load %arg15[%147, %c0_67, %c0_68] : memref<8x8x256xf32, #tpu.memory_space<vmem>>, vector<1x8x256xf32>
    %149 = vector.shape_cast %148 : vector<1x8x256xf32> to vector<8x256xf32>
    %150 = vector.extract_strided_slice %149 {offsets = [0, 0], sizes = [8, 128], strides = [1, 1]} : vector<8x256xf32> to vector<8x128xf32>
    %cst_69 = arith.constant dense<0.000000e+00> : vector<8x128xf32>
    %151 = tpu.matmul %115, %13, %cst_69 {dimension_numbers = #tpu.dot_dimension_numbers<[1], [0], [0], [1], [0, 0, 1, 1], [], []>} : vector<8x16xf32>, vector<16x128xf32>, vector<8x128xf32> -> vector<8x128xf32>
    %152 = arith.addf %150, %151 : vector<8x128xf32>
    %153 = arith.index_cast %146 : i32 to index
    %c0_70 = arith.constant 0 : index
    %c0_71 = arith.constant 0 : index
    %154 = vector.load %arg15[%153, %c0_70, %c0_71] : memref<8x8x256xf32, #tpu.memory_space<vmem>>, vector<1x8x256xf32>
    %155 = vector.shape_cast %154 : vector<1x8x256xf32> to vector<8x256xf32>
    %156 = vector.extract_strided_slice %155 {offsets = [0, 128], sizes = [8, 128], strides = [1, 1]} : vector<8x256xf32> to vector<8x128xf32>
    %cst_72 = arith.constant dense<0.000000e+00> : vector<8x128xf32>
    %157 = tpu.matmul %137, %14, %cst_72 {dimension_numbers = #tpu.dot_dimension_numbers<[1], [0], [0], [1], [0, 0, 1, 1], [], []>} : vector<8x16xf32>, vector<16x128xf32>, vector<8x128xf32> -> vector<8x128xf32>
    %158 = arith.addf %156, %157 : vector<8x128xf32>
    %159 = math.tanh %152 : vector<8x128xf32>
    %160 = vector.extract_strided_slice %159 {offsets = [0, 0], sizes = [8, 16], strides = [1, 1]} : vector<8x128xf32> to vector<8x16xf32>
    %cst_73 = arith.constant 5.000000e-01 : f32
    %161 = vector.broadcast %cst_73 : f32 to vector<8x16xf32>
    %162 = arith.mulf %161, %160 : vector<8x16xf32>
    %cst_74 = arith.constant 5.000000e-01 : f32
    %163 = vector.broadcast %cst_74 : f32 to vector<8x16xf32>
    %164 = arith.addf %162, %163 : vector<8x16xf32>
    %165 = vector.extract_strided_slice %159 {offsets = [0, 16], sizes = [8, 16], strides = [1, 1]} : vector<8x128xf32> to vector<8x16xf32>
    %cst_75 = arith.constant 5.000000e-01 : f32
    %166 = vector.broadcast %cst_75 : f32 to vector<8x16xf32>
    %167 = arith.mulf %166, %165 : vector<8x16xf32>
    %cst_76 = arith.constant 5.000000e-01 : f32
    %168 = vector.broadcast %cst_76 : f32 to vector<8x16xf32>
    %169 = arith.addf %167, %168 : vector<8x16xf32>
    %170 = vector.extract_strided_slice %159 {offsets = [0, 32], sizes = [8, 16], strides = [1, 1]} : vector<8x128xf32> to vector<8x16xf32>
    %171 = vector.extract_strided_slice %159 {offsets = [0, 48], sizes = [8, 16], strides = [1, 1]} : vector<8x128xf32> to vector<8x16xf32>
    %cst_77 = arith.constant 5.000000e-01 : f32
    %172 = vector.broadcast %cst_77 : f32 to vector<8x16xf32>
    %173 = arith.mulf %172, %171 : vector<8x16xf32>
    %cst_78 = arith.constant 5.000000e-01 : f32
    %174 = vector.broadcast %cst_78 : f32 to vector<8x16xf32>
    %175 = arith.addf %173, %174 : vector<8x16xf32>
    %176 = arith.mulf %169, %113 : vector<8x16xf32>
    %177 = arith.mulf %164, %170 : vector<8x16xf32>
    %178 = arith.addf %176, %177 : vector<8x16xf32>
    %179 = math.tanh %178 : vector<8x16xf32>
    %180 = arith.mulf %175, %179 : vector<8x16xf32>
    %181 = math.tanh %158 : vector<8x128xf32>
    %182 = vector.extract_strided_slice %181 {offsets = [0, 0], sizes = [8, 16], strides = [1, 1]} : vector<8x128xf32> to vector<8x16xf32>
    %cst_79 = arith.constant 5.000000e-01 : f32
    %183 = vector.broadcast %cst_79 : f32 to vector<8x16xf32>
    %184 = arith.mulf %183, %182 : vector<8x16xf32>
    %cst_80 = arith.constant 5.000000e-01 : f32
    %185 = vector.broadcast %cst_80 : f32 to vector<8x16xf32>
    %186 = arith.addf %184, %185 : vector<8x16xf32>
    %187 = vector.extract_strided_slice %181 {offsets = [0, 16], sizes = [8, 16], strides = [1, 1]} : vector<8x128xf32> to vector<8x16xf32>
    %cst_81 = arith.constant 5.000000e-01 : f32
    %188 = vector.broadcast %cst_81 : f32 to vector<8x16xf32>
    %189 = arith.mulf %188, %187 : vector<8x16xf32>
    %cst_82 = arith.constant 5.000000e-01 : f32
    %190 = vector.broadcast %cst_82 : f32 to vector<8x16xf32>
    %191 = arith.addf %189, %190 : vector<8x16xf32>
    %192 = vector.extract_strided_slice %181 {offsets = [0, 32], sizes = [8, 16], strides = [1, 1]} : vector<8x128xf32> to vector<8x16xf32>
    %193 = vector.extract_strided_slice %181 {offsets = [0, 48], sizes = [8, 16], strides = [1, 1]} : vector<8x128xf32> to vector<8x16xf32>
    %cst_83 = arith.constant 5.000000e-01 : f32
    %194 = vector.broadcast %cst_83 : f32 to vector<8x16xf32>
    %195 = arith.mulf %194, %193 : vector<8x16xf32>
    %cst_84 = arith.constant 5.000000e-01 : f32
    %196 = vector.broadcast %cst_84 : f32 to vector<8x16xf32>
    %197 = arith.addf %195, %196 : vector<8x16xf32>
    %198 = arith.mulf %191, %135 : vector<8x16xf32>
    %199 = arith.mulf %186, %192 : vector<8x16xf32>
    %200 = arith.addf %198, %199 : vector<8x16xf32>
    %201 = math.tanh %200 : vector<8x16xf32>
    %202 = arith.mulf %197, %201 : vector<8x16xf32>
    %203 = arith.index_cast %c2_i32 : i32 to index
    %c0_85 = arith.constant 0 : index
    %c0_86 = arith.constant 0 : index
    %204 = vector.load %arg13[%203, %c0_85, %c0_86] : memref<8x8x256xf32, #tpu.memory_space<vmem>>, vector<1x8x16xf32>
    %205 = vector.shape_cast %204 : vector<1x8x16xf32> to vector<8x16xf32>
    %206 = vector.shape_cast %180 : vector<8x16xf32> to vector<1x8x16xf32>
    tpu.vector_store %arg13[%203, %c0_85, %c0_86], %206 {strides = array<i32>} : memref<8x8x256xf32, #tpu.memory_space<vmem>>, vector<1x8x16xf32>,
    %207 = arith.index_cast %146 : i32 to index
    %c0_87 = arith.constant 0 : index
    %c128_88 = arith.constant 128 : index
    %208 = vector.load %arg13[%207, %c0_87, %c128_88] : memref<8x8x256xf32, #tpu.memory_space<vmem>>, vector<1x8x16xf32>
    %209 = vector.shape_cast %208 : vector<1x8x16xf32> to vector<8x16xf32>
    %210 = vector.shape_cast %202 : vector<8x16xf32> to vector<1x8x16xf32>
    tpu.vector_store %arg13[%207, %c0_87, %c128_88], %210 {strides = array<i32>} : memref<8x8x256xf32, #tpu.memory_space<vmem>>, vector<1x8x16xf32>,
    %c3_i32 = arith.constant 3 : i32
    %c7_i32_89 = arith.constant 7 : i32
    %211 = arith.subi %c7_i32_89, %c3_i32 : i32
    %212 = arith.index_cast %c3_i32 : i32 to index
    %c0_90 = arith.constant 0 : index
    %c0_91 = arith.constant 0 : index
    %213 = vector.load %arg15[%212, %c0_90, %c0_91] : memref<8x8x256xf32, #tpu.memory_space<vmem>>, vector<1x8x256xf32>
    %214 = vector.shape_cast %213 : vector<1x8x256xf32> to vector<8x256xf32>
    %215 = vector.extract_strided_slice %214 {offsets = [0, 0], sizes = [8, 128], strides = [1, 1]} : vector<8x256xf32> to vector<8x128xf32>
    %cst_92 = arith.constant dense<0.000000e+00> : vector<8x128xf32>
    %216 = tpu.matmul %180, %13, %cst_92 {dimension_numbers = #tpu.dot_dimension_numbers<[1], [0], [0], [1], [0, 0, 1, 1], [], []>} : vector<8x16xf32>, vector<16x128xf32>, vector<8x128xf32> -> vector<8x128xf32>
    %217 = arith.addf %215, %216 : vector<8x128xf32>
    %218 = arith.index_cast %211 : i32 to index
    %c0_93 = arith.constant 0 : index
    %c0_94 = arith.constant 0 : index
    %219 = vector.load %arg15[%218, %c0_93, %c0_94] : memref<8x8x256xf32, #tpu.memory_space<vmem>>, vector<1x8x256xf32>
    %220 = vector.shape_cast %219 : vector<1x8x256xf32> to vector<8x256xf32>
    %221 = vector.extract_strided_slice %220 {offsets = [0, 128], sizes = [8, 128], strides = [1, 1]} : vector<8x256xf32> to vector<8x128xf32>
    %cst_95 = arith.constant dense<0.000000e+00> : vector<8x128xf32>
    %222 = tpu.matmul %202, %14, %cst_95 {dimension_numbers = #tpu.dot_dimension_numbers<[1], [0], [0], [1], [0, 0, 1, 1], [], []>} : vector<8x16xf32>, vector<16x128xf32>, vector<8x128xf32> -> vector<8x128xf32>
    %223 = arith.addf %221, %222 : vector<8x128xf32>
    %224 = math.tanh %217 : vector<8x128xf32>
    %225 = vector.extract_strided_slice %224 {offsets = [0, 0], sizes = [8, 16], strides = [1, 1]} : vector<8x128xf32> to vector<8x16xf32>
    %cst_96 = arith.constant 5.000000e-01 : f32
    %226 = vector.broadcast %cst_96 : f32 to vector<8x16xf32>
    %227 = arith.mulf %226, %225 : vector<8x16xf32>
    %cst_97 = arith.constant 5.000000e-01 : f32
    %228 = vector.broadcast %cst_97 : f32 to vector<8x16xf32>
    %229 = arith.addf %227, %228 : vector<8x16xf32>
    %230 = vector.extract_strided_slice %224 {offsets = [0, 16], sizes = [8, 16], strides = [1, 1]} : vector<8x128xf32> to vector<8x16xf32>
    %cst_98 = arith.constant 5.000000e-01 : f32
    %231 = vector.broadcast %cst_98 : f32 to vector<8x16xf32>
    %232 = arith.mulf %231, %230 : vector<8x16xf32>
    %cst_99 = arith.constant 5.000000e-01 : f32
    %233 = vector.broadcast %cst_99 : f32 to vector<8x16xf32>
    %234 = arith.addf %232, %233 : vector<8x16xf32>
    %235 = vector.extract_strided_slice %224 {offsets = [0, 32], sizes = [8, 16], strides = [1, 1]} : vector<8x128xf32> to vector<8x16xf32>
    %236 = vector.extract_strided_slice %224 {offsets = [0, 48], sizes = [8, 16], strides = [1, 1]} : vector<8x128xf32> to vector<8x16xf32>
    %cst_100 = arith.constant 5.000000e-01 : f32
    %237 = vector.broadcast %cst_100 : f32 to vector<8x16xf32>
    %238 = arith.mulf %237, %236 : vector<8x16xf32>
    %cst_101 = arith.constant 5.000000e-01 : f32
    %239 = vector.broadcast %cst_101 : f32 to vector<8x16xf32>
    %240 = arith.addf %238, %239 : vector<8x16xf32>
    %241 = arith.mulf %234, %178 : vector<8x16xf32>
    %242 = arith.mulf %229, %235 : vector<8x16xf32>
    %243 = arith.addf %241, %242 : vector<8x16xf32>
    %244 = math.tanh %243 : vector<8x16xf32>
    %245 = arith.mulf %240, %244 : vector<8x16xf32>
    %246 = math.tanh %223 : vector<8x128xf32>
    %247 = vector.extract_strided_slice %246 {offsets = [0, 0], sizes = [8, 16], strides = [1, 1]} : vector<8x128xf32> to vector<8x16xf32>
    %cst_102 = arith.constant 5.000000e-01 : f32
    %248 = vector.broadcast %cst_102 : f32 to vector<8x16xf32>
    %249 = arith.mulf %248, %247 : vector<8x16xf32>
    %cst_103 = arith.constant 5.000000e-01 : f32
    %250 = vector.broadcast %cst_103 : f32 to vector<8x16xf32>
    %251 = arith.addf %249, %250 : vector<8x16xf32>
    %252 = vector.extract_strided_slice %246 {offsets = [0, 16], sizes = [8, 16], strides = [1, 1]} : vector<8x128xf32> to vector<8x16xf32>
    %cst_104 = arith.constant 5.000000e-01 : f32
    %253 = vector.broadcast %cst_104 : f32 to vector<8x16xf32>
    %254 = arith.mulf %253, %252 : vector<8x16xf32>
    %cst_105 = arith.constant 5.000000e-01 : f32
    %255 = vector.broadcast %cst_105 : f32 to vector<8x16xf32>
    %256 = arith.addf %254, %255 : vector<8x16xf32>
    %257 = vector.extract_strided_slice %246 {offsets = [0, 32], sizes = [8, 16], strides = [1, 1]} : vector<8x128xf32> to vector<8x16xf32>
    %258 = vector.extract_strided_slice %246 {offsets = [0, 48], sizes = [8, 16], strides = [1, 1]} : vector<8x128xf32> to vector<8x16xf32>
    %cst_106 = arith.constant 5.000000e-01 : f32
    %259 = vector.broadcast %cst_106 : f32 to vector<8x16xf32>
    %260 = arith.mulf %259, %258 : vector<8x16xf32>
    %cst_107 = arith.constant 5.000000e-01 : f32
    %261 = vector.broadcast %cst_107 : f32 to vector<8x16xf32>
    %262 = arith.addf %260, %261 : vector<8x16xf32>
    %263 = arith.mulf %256, %200 : vector<8x16xf32>
    %264 = arith.mulf %251, %257 : vector<8x16xf32>
    %265 = arith.addf %263, %264 : vector<8x16xf32>
    %266 = math.tanh %265 : vector<8x16xf32>
    %267 = arith.mulf %262, %266 : vector<8x16xf32>
    %268 = arith.index_cast %c3_i32 : i32 to index
    %c0_108 = arith.constant 0 : index
    %c0_109 = arith.constant 0 : index
    %269 = vector.load %arg13[%268, %c0_108, %c0_109] : memref<8x8x256xf32, #tpu.memory_space<vmem>>, vector<1x8x16xf32>
    %270 = vector.shape_cast %269 : vector<1x8x16xf32> to vector<8x16xf32>
    %271 = vector.shape_cast %245 : vector<8x16xf32> to vector<1x8x16xf32>
    tpu.vector_store %arg13[%268, %c0_108, %c0_109], %271 {strides = array<i32>} : memref<8x8x256xf32, #tpu.memory_space<vmem>>, vector<1x8x16xf32>,
    %272 = arith.index_cast %211 : i32 to index
    %c0_110 = arith.constant 0 : index
    %c128_111 = arith.constant 128 : index
    %273 = vector.load %arg13[%272, %c0_110, %c128_111] : memref<8x8x256xf32, #tpu.memory_space<vmem>>, vector<1x8x16xf32>
    %274 = vector.shape_cast %273 : vector<1x8x16xf32> to vector<8x16xf32>
    %275 = vector.shape_cast %267 : vector<8x16xf32> to vector<1x8x16xf32>
    tpu.vector_store %arg13[%272, %c0_110, %c128_111], %275 {strides = array<i32>} : memref<8x8x256xf32, #tpu.memory_space<vmem>>, vector<1x8x16xf32>,
    %c4_i32 = arith.constant 4 : i32
    %c7_i32_112 = arith.constant 7 : i32
    %276 = arith.subi %c7_i32_112, %c4_i32 : i32
    %277 = arith.index_cast %c4_i32 : i32 to index
    %c0_113 = arith.constant 0 : index
    %c0_114 = arith.constant 0 : index
    %278 = vector.load %arg15[%277, %c0_113, %c0_114] : memref<8x8x256xf32, #tpu.memory_space<vmem>>, vector<1x8x256xf32>
    %279 = vector.shape_cast %278 : vector<1x8x256xf32> to vector<8x256xf32>
    %280 = vector.extract_strided_slice %279 {offsets = [0, 0], sizes = [8, 128], strides = [1, 1]} : vector<8x256xf32> to vector<8x128xf32>
    %cst_115 = arith.constant dense<0.000000e+00> : vector<8x128xf32>
    %281 = tpu.matmul %245, %13, %cst_115 {dimension_numbers = #tpu.dot_dimension_numbers<[1], [0], [0], [1], [0, 0, 1, 1], [], []>} : vector<8x16xf32>, vector<16x128xf32>, vector<8x128xf32> -> vector<8x128xf32>
    %282 = arith.addf %280, %281 : vector<8x128xf32>
    %283 = arith.index_cast %276 : i32 to index
    %c0_116 = arith.constant 0 : index
    %c0_117 = arith.constant 0 : index
    %284 = vector.load %arg15[%283, %c0_116, %c0_117] : memref<8x8x256xf32, #tpu.memory_space<vmem>>, vector<1x8x256xf32>
    %285 = vector.shape_cast %284 : vector<1x8x256xf32> to vector<8x256xf32>
    %286 = vector.extract_strided_slice %285 {offsets = [0, 128], sizes = [8, 128], strides = [1, 1]} : vector<8x256xf32> to vector<8x128xf32>
    %cst_118 = arith.constant dense<0.000000e+00> : vector<8x128xf32>
    %287 = tpu.matmul %267, %14, %cst_118 {dimension_numbers = #tpu.dot_dimension_numbers<[1], [0], [0], [1], [0, 0, 1, 1], [], []>} : vector<8x16xf32>, vector<16x128xf32>, vector<8x128xf32> -> vector<8x128xf32>
    %288 = arith.addf %286, %287 : vector<8x128xf32>
    %289 = math.tanh %282 : vector<8x128xf32>
    %290 = vector.extract_strided_slice %289 {offsets = [0, 0], sizes = [8, 16], strides = [1, 1]} : vector<8x128xf32> to vector<8x16xf32>
    %cst_119 = arith.constant 5.000000e-01 : f32
    %291 = vector.broadcast %cst_119 : f32 to vector<8x16xf32>
    %292 = arith.mulf %291, %290 : vector<8x16xf32>
    %cst_120 = arith.constant 5.000000e-01 : f32
    %293 = vector.broadcast %cst_120 : f32 to vector<8x16xf32>
    %294 = arith.addf %292, %293 : vector<8x16xf32>
    %295 = vector.extract_strided_slice %289 {offsets = [0, 16], sizes = [8, 16], strides = [1, 1]} : vector<8x128xf32> to vector<8x16xf32>
    %cst_121 = arith.constant 5.000000e-01 : f32
    %296 = vector.broadcast %cst_121 : f32 to vector<8x16xf32>
    %297 = arith.mulf %296, %295 : vector<8x16xf32>
    %cst_122 = arith.constant 5.000000e-01 : f32
    %298 = vector.broadcast %cst_122 : f32 to vector<8x16xf32>
    %299 = arith.addf %297, %298 : vector<8x16xf32>
    %300 = vector.extract_strided_slice %289 {offsets = [0, 32], sizes = [8, 16], strides = [1, 1]} : vector<8x128xf32> to vector<8x16xf32>
    %301 = vector.extract_strided_slice %289 {offsets = [0, 48], sizes = [8, 16], strides = [1, 1]} : vector<8x128xf32> to vector<8x16xf32>
    %cst_123 = arith.constant 5.000000e-01 : f32
    %302 = vector.broadcast %cst_123 : f32 to vector<8x16xf32>
    %303 = arith.mulf %302, %301 : vector<8x16xf32>
    %cst_124 = arith.constant 5.000000e-01 : f32
    %304 = vector.broadcast %cst_124 : f32 to vector<8x16xf32>
    %305 = arith.addf %303, %304 : vector<8x16xf32>
    %306 = arith.mulf %299, %243 : vector<8x16xf32>
    %307 = arith.mulf %294, %300 : vector<8x16xf32>
    %308 = arith.addf %306, %307 : vector<8x16xf32>
    %309 = math.tanh %308 : vector<8x16xf32>
    %310 = arith.mulf %305, %309 : vector<8x16xf32>
    %311 = math.tanh %288 : vector<8x128xf32>
    %312 = vector.extract_strided_slice %311 {offsets = [0, 0], sizes = [8, 16], strides = [1, 1]} : vector<8x128xf32> to vector<8x16xf32>
    %cst_125 = arith.constant 5.000000e-01 : f32
    %313 = vector.broadcast %cst_125 : f32 to vector<8x16xf32>
    %314 = arith.mulf %313, %312 : vector<8x16xf32>
    %cst_126 = arith.constant 5.000000e-01 : f32
    %315 = vector.broadcast %cst_126 : f32 to vector<8x16xf32>
    %316 = arith.addf %314, %315 : vector<8x16xf32>
    %317 = vector.extract_strided_slice %311 {offsets = [0, 16], sizes = [8, 16], strides = [1, 1]} : vector<8x128xf32> to vector<8x16xf32>
    %cst_127 = arith.constant 5.000000e-01 : f32
    %318 = vector.broadcast %cst_127 : f32 to vector<8x16xf32>
    %319 = arith.mulf %318, %317 : vector<8x16xf32>
    %cst_128 = arith.constant 5.000000e-01 : f32
    %320 = vector.broadcast %cst_128 : f32 to vector<8x16xf32>
    %321 = arith.addf %319, %320 : vector<8x16xf32>
    %322 = vector.extract_strided_slice %311 {offsets = [0, 32], sizes = [8, 16], strides = [1, 1]} : vector<8x128xf32> to vector<8x16xf32>
    %323 = vector.extract_strided_slice %311 {offsets = [0, 48], sizes = [8, 16], strides = [1, 1]} : vector<8x128xf32> to vector<8x16xf32>
    %cst_129 = arith.constant 5.000000e-01 : f32
    %324 = vector.broadcast %cst_129 : f32 to vector<8x16xf32>
    %325 = arith.mulf %324, %323 : vector<8x16xf32>
    %cst_130 = arith.constant 5.000000e-01 : f32
    %326 = vector.broadcast %cst_130 : f32 to vector<8x16xf32>
    %327 = arith.addf %325, %326 : vector<8x16xf32>
    %328 = arith.mulf %321, %265 : vector<8x16xf32>
    %329 = arith.mulf %316, %322 : vector<8x16xf32>
    %330 = arith.addf %328, %329 : vector<8x16xf32>
    %331 = math.tanh %330 : vector<8x16xf32>
    %332 = arith.mulf %327, %331 : vector<8x16xf32>
    %333 = arith.index_cast %c4_i32 : i32 to index
    %c0_131 = arith.constant 0 : index
    %c0_132 = arith.constant 0 : index
    %334 = vector.load %arg13[%333, %c0_131, %c0_132] : memref<8x8x256xf32, #tpu.memory_space<vmem>>, vector<1x8x16xf32>
    %335 = vector.shape_cast %334 : vector<1x8x16xf32> to vector<8x16xf32>
    %336 = vector.shape_cast %310 : vector<8x16xf32> to vector<1x8x16xf32>
    tpu.vector_store %arg13[%333, %c0_131, %c0_132], %336 {strides = array<i32>} : memref<8x8x256xf32, #tpu.memory_space<vmem>>, vector<1x8x16xf32>,
    %337 = arith.index_cast %276 : i32 to index
    %c0_133 = arith.constant 0 : index
    %c128_134 = arith.constant 128 : index
    %338 = vector.load %arg13[%337, %c0_133, %c128_134] : memref<8x8x256xf32, #tpu.memory_space<vmem>>, vector<1x8x16xf32>
    %339 = vector.shape_cast %338 : vector<1x8x16xf32> to vector<8x16xf32>
    %340 = vector.shape_cast %332 : vector<8x16xf32> to vector<1x8x16xf32>
    tpu.vector_store %arg13[%337, %c0_133, %c128_134], %340 {strides = array<i32>} : memref<8x8x256xf32, #tpu.memory_space<vmem>>, vector<1x8x16xf32>,
    %c5_i32 = arith.constant 5 : i32
    %c7_i32_135 = arith.constant 7 : i32
    %341 = arith.subi %c7_i32_135, %c5_i32 : i32
    %342 = arith.index_cast %c5_i32 : i32 to index
    %c0_136 = arith.constant 0 : index
    %c0_137 = arith.constant 0 : index
    %343 = vector.load %arg15[%342, %c0_136, %c0_137] : memref<8x8x256xf32, #tpu.memory_space<vmem>>, vector<1x8x256xf32>
    %344 = vector.shape_cast %343 : vector<1x8x256xf32> to vector<8x256xf32>
    %345 = vector.extract_strided_slice %344 {offsets = [0, 0], sizes = [8, 128], strides = [1, 1]} : vector<8x256xf32> to vector<8x128xf32>
    %cst_138 = arith.constant dense<0.000000e+00> : vector<8x128xf32>
    %346 = tpu.matmul %310, %13, %cst_138 {dimension_numbers = #tpu.dot_dimension_numbers<[1], [0], [0], [1], [0, 0, 1, 1], [], []>} : vector<8x16xf32>, vector<16x128xf32>, vector<8x128xf32> -> vector<8x128xf32>
    %347 = arith.addf %345, %346 : vector<8x128xf32>
    %348 = arith.index_cast %341 : i32 to index
    %c0_139 = arith.constant 0 : index
    %c0_140 = arith.constant 0 : index
    %349 = vector.load %arg15[%348, %c0_139, %c0_140] : memref<8x8x256xf32, #tpu.memory_space<vmem>>, vector<1x8x256xf32>
    %350 = vector.shape_cast %349 : vector<1x8x256xf32> to vector<8x256xf32>
    %351 = vector.extract_strided_slice %350 {offsets = [0, 128], sizes = [8, 128], strides = [1, 1]} : vector<8x256xf32> to vector<8x128xf32>
    %cst_141 = arith.constant dense<0.000000e+00> : vector<8x128xf32>
    %352 = tpu.matmul %332, %14, %cst_141 {dimension_numbers = #tpu.dot_dimension_numbers<[1], [0], [0], [1], [0, 0, 1, 1], [], []>} : vector<8x16xf32>, vector<16x128xf32>, vector<8x128xf32> -> vector<8x128xf32>
    %353 = arith.addf %351, %352 : vector<8x128xf32>
    %354 = math.tanh %347 : vector<8x128xf32>
    %355 = vector.extract_strided_slice %354 {offsets = [0, 0], sizes = [8, 16], strides = [1, 1]} : vector<8x128xf32> to vector<8x16xf32>
    %cst_142 = arith.constant 5.000000e-01 : f32
    %356 = vector.broadcast %cst_142 : f32 to vector<8x16xf32>
    %357 = arith.mulf %356, %355 : vector<8x16xf32>
    %cst_143 = arith.constant 5.000000e-01 : f32
    %358 = vector.broadcast %cst_143 : f32 to vector<8x16xf32>
    %359 = arith.addf %357, %358 : vector<8x16xf32>
    %360 = vector.extract_strided_slice %354 {offsets = [0, 16], sizes = [8, 16], strides = [1, 1]} : vector<8x128xf32> to vector<8x16xf32>
    %cst_144 = arith.constant 5.000000e-01 : f32
    %361 = vector.broadcast %cst_144 : f32 to vector<8x16xf32>
    %362 = arith.mulf %361, %360 : vector<8x16xf32>
    %cst_145 = arith.constant 5.000000e-01 : f32
    %363 = vector.broadcast %cst_145 : f32 to vector<8x16xf32>
    %364 = arith.addf %362, %363 : vector<8x16xf32>
    %365 = vector.extract_strided_slice %354 {offsets = [0, 32], sizes = [8, 16], strides = [1, 1]} : vector<8x128xf32> to vector<8x16xf32>
    %366 = vector.extract_strided_slice %354 {offsets = [0, 48], sizes = [8, 16], strides = [1, 1]} : vector<8x128xf32> to vector<8x16xf32>
    %cst_146 = arith.constant 5.000000e-01 : f32
    %367 = vector.broadcast %cst_146 : f32 to vector<8x16xf32>
    %368 = arith.mulf %367, %366 : vector<8x16xf32>
    %cst_147 = arith.constant 5.000000e-01 : f32
    %369 = vector.broadcast %cst_147 : f32 to vector<8x16xf32>
    %370 = arith.addf %368, %369 : vector<8x16xf32>
    %371 = arith.mulf %364, %308 : vector<8x16xf32>
    %372 = arith.mulf %359, %365 : vector<8x16xf32>
    %373 = arith.addf %371, %372 : vector<8x16xf32>
    %374 = math.tanh %373 : vector<8x16xf32>
    %375 = arith.mulf %370, %374 : vector<8x16xf32>
    %376 = math.tanh %353 : vector<8x128xf32>
    %377 = vector.extract_strided_slice %376 {offsets = [0, 0], sizes = [8, 16], strides = [1, 1]} : vector<8x128xf32> to vector<8x16xf32>
    %cst_148 = arith.constant 5.000000e-01 : f32
    %378 = vector.broadcast %cst_148 : f32 to vector<8x16xf32>
    %379 = arith.mulf %378, %377 : vector<8x16xf32>
    %cst_149 = arith.constant 5.000000e-01 : f32
    %380 = vector.broadcast %cst_149 : f32 to vector<8x16xf32>
    %381 = arith.addf %379, %380 : vector<8x16xf32>
    %382 = vector.extract_strided_slice %376 {offsets = [0, 16], sizes = [8, 16], strides = [1, 1]} : vector<8x128xf32> to vector<8x16xf32>
    %cst_150 = arith.constant 5.000000e-01 : f32
    %383 = vector.broadcast %cst_150 : f32 to vector<8x16xf32>
    %384 = arith.mulf %383, %382 : vector<8x16xf32>
    %cst_151 = arith.constant 5.000000e-01 : f32
    %385 = vector.broadcast %cst_151 : f32 to vector<8x16xf32>
    %386 = arith.addf %384, %385 : vector<8x16xf32>
    %387 = vector.extract_strided_slice %376 {offsets = [0, 32], sizes = [8, 16], strides = [1, 1]} : vector<8x128xf32> to vector<8x16xf32>
    %388 = vector.extract_strided_slice %376 {offsets = [0, 48], sizes = [8, 16], strides = [1, 1]} : vector<8x128xf32> to vector<8x16xf32>
    %cst_152 = arith.constant 5.000000e-01 : f32
    %389 = vector.broadcast %cst_152 : f32 to vector<8x16xf32>
    %390 = arith.mulf %389, %388 : vector<8x16xf32>
    %cst_153 = arith.constant 5.000000e-01 : f32
    %391 = vector.broadcast %cst_153 : f32 to vector<8x16xf32>
    %392 = arith.addf %390, %391 : vector<8x16xf32>
    %393 = arith.mulf %386, %330 : vector<8x16xf32>
    %394 = arith.mulf %381, %387 : vector<8x16xf32>
    %395 = arith.addf %393, %394 : vector<8x16xf32>
    %396 = math.tanh %395 : vector<8x16xf32>
    %397 = arith.mulf %392, %396 : vector<8x16xf32>
    %398 = arith.index_cast %c5_i32 : i32 to index
    %c0_154 = arith.constant 0 : index
    %c0_155 = arith.constant 0 : index
    %399 = vector.load %arg13[%398, %c0_154, %c0_155] : memref<8x8x256xf32, #tpu.memory_space<vmem>>, vector<1x8x16xf32>
    %400 = vector.shape_cast %399 : vector<1x8x16xf32> to vector<8x16xf32>
    %401 = vector.shape_cast %375 : vector<8x16xf32> to vector<1x8x16xf32>
    tpu.vector_store %arg13[%398, %c0_154, %c0_155], %401 {strides = array<i32>} : memref<8x8x256xf32, #tpu.memory_space<vmem>>, vector<1x8x16xf32>,
    %402 = arith.index_cast %341 : i32 to index
    %c0_156 = arith.constant 0 : index
    %c128_157 = arith.constant 128 : index
    %403 = vector.load %arg13[%402, %c0_156, %c128_157] : memref<8x8x256xf32, #tpu.memory_space<vmem>>, vector<1x8x16xf32>
    %404 = vector.shape_cast %403 : vector<1x8x16xf32> to vector<8x16xf32>
    %405 = vector.shape_cast %397 : vector<8x16xf32> to vector<1x8x16xf32>
    tpu.vector_store %arg13[%402, %c0_156, %c128_157], %405 {strides = array<i32>} : memref<8x8x256xf32, #tpu.memory_space<vmem>>, vector<1x8x16xf32>,
    %c6_i32 = arith.constant 6 : i32
    %c7_i32_158 = arith.constant 7 : i32
    %406 = arith.subi %c7_i32_158, %c6_i32 : i32
    %407 = arith.index_cast %c6_i32 : i32 to index
    %c0_159 = arith.constant 0 : index
    %c0_160 = arith.constant 0 : index
    %408 = vector.load %arg15[%407, %c0_159, %c0_160] : memref<8x8x256xf32, #tpu.memory_space<vmem>>, vector<1x8x256xf32>
    %409 = vector.shape_cast %408 : vector<1x8x256xf32> to vector<8x256xf32>
    %410 = vector.extract_strided_slice %409 {offsets = [0, 0], sizes = [8, 128], strides = [1, 1]} : vector<8x256xf32> to vector<8x128xf32>
    %cst_161 = arith.constant dense<0.000000e+00> : vector<8x128xf32>
    %411 = tpu.matmul %375, %13, %cst_161 {dimension_numbers = #tpu.dot_dimension_numbers<[1], [0], [0], [1], [0, 0, 1, 1], [], []>} : vector<8x16xf32>, vector<16x128xf32>, vector<8x128xf32> -> vector<8x128xf32>
    %412 = arith.addf %410, %411 : vector<8x128xf32>
    %413 = arith.index_cast %406 : i32 to index
    %c0_162 = arith.constant 0 : index
    %c0_163 = arith.constant 0 : index
    %414 = vector.load %arg15[%413, %c0_162, %c0_163] : memref<8x8x256xf32, #tpu.memory_space<vmem>>, vector<1x8x256xf32>
    %415 = vector.shape_cast %414 : vector<1x8x256xf32> to vector<8x256xf32>
    %416 = vector.extract_strided_slice %415 {offsets = [0, 128], sizes = [8, 128], strides = [1, 1]} : vector<8x256xf32> to vector<8x128xf32>
    %cst_164 = arith.constant dense<0.000000e+00> : vector<8x128xf32>
    %417 = tpu.matmul %397, %14, %cst_164 {dimension_numbers = #tpu.dot_dimension_numbers<[1], [0], [0], [1], [0, 0, 1, 1], [], []>} : vector<8x16xf32>, vector<16x128xf32>, vector<8x128xf32> -> vector<8x128xf32>
    %418 = arith.addf %416, %417 : vector<8x128xf32>
    %419 = math.tanh %412 : vector<8x128xf32>
    %420 = vector.extract_strided_slice %419 {offsets = [0, 0], sizes = [8, 16], strides = [1, 1]} : vector<8x128xf32> to vector<8x16xf32>
    %cst_165 = arith.constant 5.000000e-01 : f32
    %421 = vector.broadcast %cst_165 : f32 to vector<8x16xf32>
    %422 = arith.mulf %421, %420 : vector<8x16xf32>
    %cst_166 = arith.constant 5.000000e-01 : f32
    %423 = vector.broadcast %cst_166 : f32 to vector<8x16xf32>
    %424 = arith.addf %422, %423 : vector<8x16xf32>
    %425 = vector.extract_strided_slice %419 {offsets = [0, 16], sizes = [8, 16], strides = [1, 1]} : vector<8x128xf32> to vector<8x16xf32>
    %cst_167 = arith.constant 5.000000e-01 : f32
    %426 = vector.broadcast %cst_167 : f32 to vector<8x16xf32>
    %427 = arith.mulf %426, %425 : vector<8x16xf32>
    %cst_168 = arith.constant 5.000000e-01 : f32
    %428 = vector.broadcast %cst_168 : f32 to vector<8x16xf32>
    %429 = arith.addf %427, %428 : vector<8x16xf32>
    %430 = vector.extract_strided_slice %419 {offsets = [0, 32], sizes = [8, 16], strides = [1, 1]} : vector<8x128xf32> to vector<8x16xf32>
    %431 = vector.extract_strided_slice %419 {offsets = [0, 48], sizes = [8, 16], strides = [1, 1]} : vector<8x128xf32> to vector<8x16xf32>
    %cst_169 = arith.constant 5.000000e-01 : f32
    %432 = vector.broadcast %cst_169 : f32 to vector<8x16xf32>
    %433 = arith.mulf %432, %431 : vector<8x16xf32>
    %cst_170 = arith.constant 5.000000e-01 : f32
    %434 = vector.broadcast %cst_170 : f32 to vector<8x16xf32>
    %435 = arith.addf %433, %434 : vector<8x16xf32>
    %436 = arith.mulf %429, %373 : vector<8x16xf32>
    %437 = arith.mulf %424, %430 : vector<8x16xf32>
    %438 = arith.addf %436, %437 : vector<8x16xf32>
    %439 = math.tanh %438 : vector<8x16xf32>
    %440 = arith.mulf %435, %439 : vector<8x16xf32>
    %441 = math.tanh %418 : vector<8x128xf32>
    %442 = vector.extract_strided_slice %441 {offsets = [0, 0], sizes = [8, 16], strides = [1, 1]} : vector<8x128xf32> to vector<8x16xf32>
    %cst_171 = arith.constant 5.000000e-01 : f32
    %443 = vector.broadcast %cst_171 : f32 to vector<8x16xf32>
    %444 = arith.mulf %443, %442 : vector<8x16xf32>
    %cst_172 = arith.constant 5.000000e-01 : f32
    %445 = vector.broadcast %cst_172 : f32 to vector<8x16xf32>
    %446 = arith.addf %444, %445 : vector<8x16xf32>
    %447 = vector.extract_strided_slice %441 {offsets = [0, 16], sizes = [8, 16], strides = [1, 1]} : vector<8x128xf32> to vector<8x16xf32>
    %cst_173 = arith.constant 5.000000e-01 : f32
    %448 = vector.broadcast %cst_173 : f32 to vector<8x16xf32>
    %449 = arith.mulf %448, %447 : vector<8x16xf32>
    %cst_174 = arith.constant 5.000000e-01 : f32
    %450 = vector.broadcast %cst_174 : f32 to vector<8x16xf32>
    %451 = arith.addf %449, %450 : vector<8x16xf32>
    %452 = vector.extract_strided_slice %441 {offsets = [0, 32], sizes = [8, 16], strides = [1, 1]} : vector<8x128xf32> to vector<8x16xf32>
    %453 = vector.extract_strided_slice %441 {offsets = [0, 48], sizes = [8, 16], strides = [1, 1]} : vector<8x128xf32> to vector<8x16xf32>
    %cst_175 = arith.constant 5.000000e-01 : f32
    %454 = vector.broadcast %cst_175 : f32 to vector<8x16xf32>
    %455 = arith.mulf %454, %453 : vector<8x16xf32>
    %cst_176 = arith.constant 5.000000e-01 : f32
    %456 = vector.broadcast %cst_176 : f32 to vector<8x16xf32>
    %457 = arith.addf %455, %456 : vector<8x16xf32>
    %458 = arith.mulf %451, %395 : vector<8x16xf32>
    %459 = arith.mulf %446, %452 : vector<8x16xf32>
    %460 = arith.addf %458, %459 : vector<8x16xf32>
    %461 = math.tanh %460 : vector<8x16xf32>
    %462 = arith.mulf %457, %461 : vector<8x16xf32>
    %463 = arith.index_cast %c6_i32 : i32 to index
    %c0_177 = arith.constant 0 : index
    %c0_178 = arith.constant 0 : index
    %464 = vector.load %arg13[%463, %c0_177, %c0_178] : memref<8x8x256xf32, #tpu.memory_space<vmem>>, vector<1x8x16xf32>
    %465 = vector.shape_cast %464 : vector<1x8x16xf32> to vector<8x16xf32>
    %466 = vector.shape_cast %440 : vector<8x16xf32> to vector<1x8x16xf32>
    tpu.vector_store %arg13[%463, %c0_177, %c0_178], %466 {strides = array<i32>} : memref<8x8x256xf32, #tpu.memory_space<vmem>>, vector<1x8x16xf32>,
    %467 = arith.index_cast %406 : i32 to index
    %c0_179 = arith.constant 0 : index
    %c128_180 = arith.constant 128 : index
    %468 = vector.load %arg13[%467, %c0_179, %c128_180] : memref<8x8x256xf32, #tpu.memory_space<vmem>>, vector<1x8x16xf32>
    %469 = vector.shape_cast %468 : vector<1x8x16xf32> to vector<8x16xf32>
    %470 = vector.shape_cast %462 : vector<8x16xf32> to vector<1x8x16xf32>
    tpu.vector_store %arg13[%467, %c0_179, %c128_180], %470 {strides = array<i32>} : memref<8x8x256xf32, #tpu.memory_space<vmem>>, vector<1x8x16xf32>,
    %c7_i32_181 = arith.constant 7 : i32
    %c7_i32_182 = arith.constant 7 : i32
    %471 = arith.subi %c7_i32_182, %c7_i32_181 : i32
    %472 = arith.index_cast %c7_i32_181 : i32 to index
    %c0_183 = arith.constant 0 : index
    %c0_184 = arith.constant 0 : index
    %473 = vector.load %arg15[%472, %c0_183, %c0_184] : memref<8x8x256xf32, #tpu.memory_space<vmem>>, vector<1x8x256xf32>
    %474 = vector.shape_cast %473 : vector<1x8x256xf32> to vector<8x256xf32>
    %475 = vector.extract_strided_slice %474 {offsets = [0, 0], sizes = [8, 128], strides = [1, 1]} : vector<8x256xf32> to vector<8x128xf32>
    %cst_185 = arith.constant dense<0.000000e+00> : vector<8x128xf32>
    %476 = tpu.matmul %440, %13, %cst_185 {dimension_numbers = #tpu.dot_dimension_numbers<[1], [0], [0], [1], [0, 0, 1, 1], [], []>} : vector<8x16xf32>, vector<16x128xf32>, vector<8x128xf32> -> vector<8x128xf32>
    %477 = arith.addf %475, %476 : vector<8x128xf32>
    %478 = arith.index_cast %471 : i32 to index
    %c0_186 = arith.constant 0 : index
    %c0_187 = arith.constant 0 : index
    %479 = vector.load %arg15[%478, %c0_186, %c0_187] : memref<8x8x256xf32, #tpu.memory_space<vmem>>, vector<1x8x256xf32>
    %480 = vector.shape_cast %479 : vector<1x8x256xf32> to vector<8x256xf32>
    %481 = vector.extract_strided_slice %480 {offsets = [0, 128], sizes = [8, 128], strides = [1, 1]} : vector<8x256xf32> to vector<8x128xf32>
    %cst_188 = arith.constant dense<0.000000e+00> : vector<8x128xf32>
    %482 = tpu.matmul %462, %14, %cst_188 {dimension_numbers = #tpu.dot_dimension_numbers<[1], [0], [0], [1], [0, 0, 1, 1], [], []>} : vector<8x16xf32>, vector<16x128xf32>, vector<8x128xf32> -> vector<8x128xf32>
    %483 = arith.addf %481, %482 : vector<8x128xf32>
    %484 = math.tanh %477 : vector<8x128xf32>
    %485 = vector.extract_strided_slice %484 {offsets = [0, 0], sizes = [8, 16], strides = [1, 1]} : vector<8x128xf32> to vector<8x16xf32>
    %cst_189 = arith.constant 5.000000e-01 : f32
    %486 = vector.broadcast %cst_189 : f32 to vector<8x16xf32>
    %487 = arith.mulf %486, %485 : vector<8x16xf32>
    %cst_190 = arith.constant 5.000000e-01 : f32
    %488 = vector.broadcast %cst_190 : f32 to vector<8x16xf32>
    %489 = arith.addf %487, %488 : vector<8x16xf32>
    %490 = vector.extract_strided_slice %484 {offsets = [0, 16], sizes = [8, 16], strides = [1, 1]} : vector<8x128xf32> to vector<8x16xf32>
    %cst_191 = arith.constant 5.000000e-01 : f32
    %491 = vector.broadcast %cst_191 : f32 to vector<8x16xf32>
    %492 = arith.mulf %491, %490 : vector<8x16xf32>
    %cst_192 = arith.constant 5.000000e-01 : f32
    %493 = vector.broadcast %cst_192 : f32 to vector<8x16xf32>
    %494 = arith.addf %492, %493 : vector<8x16xf32>
    %495 = vector.extract_strided_slice %484 {offsets = [0, 32], sizes = [8, 16], strides = [1, 1]} : vector<8x128xf32> to vector<8x16xf32>
    %496 = vector.extract_strided_slice %484 {offsets = [0, 48], sizes = [8, 16], strides = [1, 1]} : vector<8x128xf32> to vector<8x16xf32>
    %cst_193 = arith.constant 5.000000e-01 : f32
    %497 = vector.broadcast %cst_193 : f32 to vector<8x16xf32>
    %498 = arith.mulf %497, %496 : vector<8x16xf32>
    %cst_194 = arith.constant 5.000000e-01 : f32
    %499 = vector.broadcast %cst_194 : f32 to vector<8x16xf32>
    %500 = arith.addf %498, %499 : vector<8x16xf32>
    %501 = arith.mulf %494, %438 : vector<8x16xf32>
    %502 = arith.mulf %489, %495 : vector<8x16xf32>
    %503 = arith.addf %501, %502 : vector<8x16xf32>
    %504 = math.tanh %503 : vector<8x16xf32>
    %505 = arith.mulf %500, %504 : vector<8x16xf32>
    %506 = math.tanh %483 : vector<8x128xf32>
    %507 = vector.extract_strided_slice %506 {offsets = [0, 0], sizes = [8, 16], strides = [1, 1]} : vector<8x128xf32> to vector<8x16xf32>
    %cst_195 = arith.constant 5.000000e-01 : f32
    %508 = vector.broadcast %cst_195 : f32 to vector<8x16xf32>
    %509 = arith.mulf %508, %507 : vector<8x16xf32>
    %cst_196 = arith.constant 5.000000e-01 : f32
    %510 = vector.broadcast %cst_196 : f32 to vector<8x16xf32>
    %511 = arith.addf %509, %510 : vector<8x16xf32>
    %512 = vector.extract_strided_slice %506 {offsets = [0, 16], sizes = [8, 16], strides = [1, 1]} : vector<8x128xf32> to vector<8x16xf32>
    %cst_197 = arith.constant 5.000000e-01 : f32
    %513 = vector.broadcast %cst_197 : f32 to vector<8x16xf32>
    %514 = arith.mulf %513, %512 : vector<8x16xf32>
    %cst_198 = arith.constant 5.000000e-01 : f32
    %515 = vector.broadcast %cst_198 : f32 to vector<8x16xf32>
    %516 = arith.addf %514, %515 : vector<8x16xf32>
    %517 = vector.extract_strided_slice %506 {offsets = [0, 32], sizes = [8, 16], strides = [1, 1]} : vector<8x128xf32> to vector<8x16xf32>
    %518 = vector.extract_strided_slice %506 {offsets = [0, 48], sizes = [8, 16], strides = [1, 1]} : vector<8x128xf32> to vector<8x16xf32>
    %cst_199 = arith.constant 5.000000e-01 : f32
    %519 = vector.broadcast %cst_199 : f32 to vector<8x16xf32>
    %520 = arith.mulf %519, %518 : vector<8x16xf32>
    %cst_200 = arith.constant 5.000000e-01 : f32
    %521 = vector.broadcast %cst_200 : f32 to vector<8x16xf32>
    %522 = arith.addf %520, %521 : vector<8x16xf32>
    %523 = arith.mulf %516, %460 : vector<8x16xf32>
    %524 = arith.mulf %511, %517 : vector<8x16xf32>
    %525 = arith.addf %523, %524 : vector<8x16xf32>
    %526 = math.tanh %525 : vector<8x16xf32>
    %527 = arith.mulf %522, %526 : vector<8x16xf32>
    %528 = arith.index_cast %c7_i32_181 : i32 to index
    %c0_201 = arith.constant 0 : index
    %c0_202 = arith.constant 0 : index
    %529 = vector.load %arg13[%528, %c0_201, %c0_202] : memref<8x8x256xf32, #tpu.memory_space<vmem>>, vector<1x8x16xf32>
    %530 = vector.shape_cast %529 : vector<1x8x16xf32> to vector<8x16xf32>
    %531 = vector.shape_cast %505 : vector<8x16xf32> to vector<1x8x16xf32>
    tpu.vector_store %arg13[%528, %c0_201, %c0_202], %531 {strides = array<i32>} : memref<8x8x256xf32, #tpu.memory_space<vmem>>, vector<1x8x16xf32>,
    %532 = arith.index_cast %471 : i32 to index
    %c0_203 = arith.constant 0 : index
    %c128_204 = arith.constant 128 : index
    %533 = vector.load %arg13[%532, %c0_203, %c128_204] : memref<8x8x256xf32, #tpu.memory_space<vmem>>, vector<1x8x16xf32>
    %534 = vector.shape_cast %533 : vector<1x8x16xf32> to vector<8x16xf32>
    %535 = vector.shape_cast %527 : vector<8x16xf32> to vector<1x8x16xf32>
    tpu.vector_store %arg13[%532, %c0_203, %c128_204], %535 {strides = array<i32>} : memref<8x8x256xf32, #tpu.memory_space<vmem>>, vector<1x8x16xf32>,
    %c8_i32 = arith.constant 8 : i32
    %c0_205 = arith.constant 0 : index
    %c0_206 = arith.constant 0 : index
    %c0_207 = arith.constant 0 : index
    %536 = vector.load %arg13[%c0_205, %c0_206, %c0_207] : memref<8x8x256xf32, #tpu.memory_space<vmem>>, vector<8x8x256xf32>
    %537 = vector.shape_cast %536 : vector<8x8x256xf32> to vector<64x256xf32>
    %c0_208 = arith.constant 0 : index
    %c0_209 = arith.constant 0 : index
    %538 = vector.load %arg5[%c0_208, %c0_209] : memref<256x256xf32, #tpu.memory_space<vmem>>, vector<256x256xf32>
    %cst_210 = arith.constant dense<0.000000e+00> : vector<64x256xf32>
    %539 = tpu.matmul %537, %538, %cst_210 {dimension_numbers = #tpu.dot_dimension_numbers<[1], [0], [0], [1], [0, 0, 1, 1], [], []>} : vector<64x256xf32>, vector<256x256xf32>, vector<64x256xf32> -> vector<64x256xf32>
    %c0_211 = arith.constant 0 : index
    %c0_212 = arith.constant 0 : index
    %540 = vector.load %arg8[%c0_211, %c0_212] : memref<1x256xf32, #tpu.memory_space<vmem>>, vector<1x256xf32>
    %541 = vector.broadcast %540 : vector<1x256xf32> to vector<64x256xf32>
    %542 = arith.addf %539, %541 : vector<64x256xf32>
    %543 = vector.shape_cast %542 : vector<64x256xf32> to vector<8x8x256xf32>
    %c0_213 = arith.constant 0 : index
    %c0_214 = arith.constant 0 : index
    %c0_215 = arith.constant 0 : index
    %544 = vector.load %arg15[%c0_213, %c0_214, %c0_215] : memref<8x8x256xf32, #tpu.memory_space<vmem>>, vector<8x8x256xf32>
    tpu.vector_store %arg15[%c0_213, %c0_214, %c0_215], %543 {strides = array<i32>} : memref<8x8x256xf32, #tpu.memory_space<vmem>>, vector<8x8x256xf32>,
    %c0_216 = arith.constant 0 : index
    %c0_217 = arith.constant 0 : index
    %545 = vector.load %arg6[%c0_216, %c0_217] : memref<16x128xf32, #tpu.memory_space<vmem>>, vector<16x128xf32>
    %c0_218 = arith.constant 0 : index
    %c0_219 = arith.constant 0 : index
    %546 = vector.load %arg7[%c0_218, %c0_219] : memref<16x128xf32, #tpu.memory_space<vmem>>, vector<16x128xf32>
    %cst_220 = arith.constant 0.000000e+00 : f32
    %547 = vector.broadcast %cst_220 : f32 to vector<8x16xf32>
    %c0_i32_221 = arith.constant 0 : i32
    %c7_i32_222 = arith.constant 7 : i32
    %548 = arith.subi %c7_i32_222, %c0_i32_221 : i32
    %549 = arith.index_cast %c0_i32_221 : i32 to index
    %c0_223 = arith.constant 0 : index
    %c0_224 = arith.constant 0 : index
    %550 = vector.load %arg15[%549, %c0_223, %c0_224] : memref<8x8x256xf32, #tpu.memory_space<vmem>>, vector<1x8x256xf32>
    %551 = vector.shape_cast %550 : vector<1x8x256xf32> to vector<8x256xf32>
    %552 = vector.extract_strided_slice %551 {offsets = [0, 0], sizes = [8, 128], strides = [1, 1]} : vector<8x256xf32> to vector<8x128xf32>
    %cst_225 = arith.constant dense<0.000000e+00> : vector<8x128xf32>
    %553 = tpu.matmul %547, %545, %cst_225 {dimension_numbers = #tpu.dot_dimension_numbers<[1], [0], [0], [1], [0, 0, 1, 1], [], []>} : vector<8x16xf32>, vector<16x128xf32>, vector<8x128xf32> -> vector<8x128xf32>
    %554 = arith.addf %552, %553 : vector<8x128xf32>
    %555 = arith.index_cast %548 : i32 to index
    %c0_226 = arith.constant 0 : index
    %c0_227 = arith.constant 0 : index
    %556 = vector.load %arg15[%555, %c0_226, %c0_227] : memref<8x8x256xf32, #tpu.memory_space<vmem>>, vector<1x8x256xf32>
    %557 = vector.shape_cast %556 : vector<1x8x256xf32> to vector<8x256xf32>
    %558 = vector.extract_strided_slice %557 {offsets = [0, 128], sizes = [8, 128], strides = [1, 1]} : vector<8x256xf32> to vector<8x128xf32>
    %cst_228 = arith.constant dense<0.000000e+00> : vector<8x128xf32>
    %559 = tpu.matmul %547, %546, %cst_228 {dimension_numbers = #tpu.dot_dimension_numbers<[1], [0], [0], [1], [0, 0, 1, 1], [], []>} : vector<8x16xf32>, vector<16x128xf32>, vector<8x128xf32> -> vector<8x128xf32>
    %560 = arith.addf %558, %559 : vector<8x128xf32>
    %561 = math.tanh %554 : vector<8x128xf32>
    %562 = vector.extract_strided_slice %561 {offsets = [0, 0], sizes = [8, 16], strides = [1, 1]} : vector<8x128xf32> to vector<8x16xf32>
    %cst_229 = arith.constant 5.000000e-01 : f32
    %563 = vector.broadcast %cst_229 : f32 to vector<8x16xf32>
    %564 = arith.mulf %563, %562 : vector<8x16xf32>
    %cst_230 = arith.constant 5.000000e-01 : f32
    %565 = vector.broadcast %cst_230 : f32 to vector<8x16xf32>
    %566 = arith.addf %564, %565 : vector<8x16xf32>
    %567 = vector.extract_strided_slice %561 {offsets = [0, 16], sizes = [8, 16], strides = [1, 1]} : vector<8x128xf32> to vector<8x16xf32>
    %cst_231 = arith.constant 5.000000e-01 : f32
    %568 = vector.broadcast %cst_231 : f32 to vector<8x16xf32>
    %569 = arith.mulf %568, %567 : vector<8x16xf32>
    %cst_232 = arith.constant 5.000000e-01 : f32
    %570 = vector.broadcast %cst_232 : f32 to vector<8x16xf32>
    %571 = arith.addf %569, %570 : vector<8x16xf32>
    %572 = vector.extract_strided_slice %561 {offsets = [0, 32], sizes = [8, 16], strides = [1, 1]} : vector<8x128xf32> to vector<8x16xf32>
    %573 = vector.extract_strided_slice %561 {offsets = [0, 48], sizes = [8, 16], strides = [1, 1]} : vector<8x128xf32> to vector<8x16xf32>
    %cst_233 = arith.constant 5.000000e-01 : f32
    %574 = vector.broadcast %cst_233 : f32 to vector<8x16xf32>
    %575 = arith.mulf %574, %573 : vector<8x16xf32>
    %cst_234 = arith.constant 5.000000e-01 : f32
    %576 = vector.broadcast %cst_234 : f32 to vector<8x16xf32>
    %577 = arith.addf %575, %576 : vector<8x16xf32>
    %578 = arith.mulf %571, %547 : vector<8x16xf32>
    %579 = arith.mulf %566, %572 : vector<8x16xf32>
    %580 = arith.addf %578, %579 : vector<8x16xf32>
    %581 = math.tanh %580 : vector<8x16xf32>
    %582 = arith.mulf %577, %581 : vector<8x16xf32>
    %583 = math.tanh %560 : vector<8x128xf32>
    %584 = vector.extract_strided_slice %583 {offsets = [0, 0], sizes = [8, 16], strides = [1, 1]} : vector<8x128xf32> to vector<8x16xf32>
    %cst_235 = arith.constant 5.000000e-01 : f32
    %585 = vector.broadcast %cst_235 : f32 to vector<8x16xf32>
    %586 = arith.mulf %585, %584 : vector<8x16xf32>
    %cst_236 = arith.constant 5.000000e-01 : f32
    %587 = vector.broadcast %cst_236 : f32 to vector<8x16xf32>
    %588 = arith.addf %586, %587 : vector<8x16xf32>
    %589 = vector.extract_strided_slice %583 {offsets = [0, 16], sizes = [8, 16], strides = [1, 1]} : vector<8x128xf32> to vector<8x16xf32>
    %cst_237 = arith.constant 5.000000e-01 : f32
    %590 = vector.broadcast %cst_237 : f32 to vector<8x16xf32>
    %591 = arith.mulf %590, %589 : vector<8x16xf32>
    %cst_238 = arith.constant 5.000000e-01 : f32
    %592 = vector.broadcast %cst_238 : f32 to vector<8x16xf32>
    %593 = arith.addf %591, %592 : vector<8x16xf32>
    %594 = vector.extract_strided_slice %583 {offsets = [0, 32], sizes = [8, 16], strides = [1, 1]} : vector<8x128xf32> to vector<8x16xf32>
    %595 = vector.extract_strided_slice %583 {offsets = [0, 48], sizes = [8, 16], strides = [1, 1]} : vector<8x128xf32> to vector<8x16xf32>
    %cst_239 = arith.constant 5.000000e-01 : f32
    %596 = vector.broadcast %cst_239 : f32 to vector<8x16xf32>
    %597 = arith.mulf %596, %595 : vector<8x16xf32>
    %cst_240 = arith.constant 5.000000e-01 : f32
    %598 = vector.broadcast %cst_240 : f32 to vector<8x16xf32>
    %599 = arith.addf %597, %598 : vector<8x16xf32>
    %600 = arith.mulf %593, %547 : vector<8x16xf32>
    %601 = arith.mulf %588, %594 : vector<8x16xf32>
    %602 = arith.addf %600, %601 : vector<8x16xf32>
    %603 = math.tanh %602 : vector<8x16xf32>
    %604 = arith.mulf %599, %603 : vector<8x16xf32>
    %605 = arith.index_cast %c0_i32_221 : i32 to index
    %c0_241 = arith.constant 0 : index
    %c0_242 = arith.constant 0 : index
    %606 = vector.load %arg14[%605, %c0_241, %c0_242] : memref<8x8x256xf32, #tpu.memory_space<vmem>>, vector<1x8x16xf32>
    %607 = vector.shape_cast %606 : vector<1x8x16xf32> to vector<8x16xf32>
    %608 = vector.shape_cast %582 : vector<8x16xf32> to vector<1x8x16xf32>
    tpu.vector_store %arg14[%605, %c0_241, %c0_242], %608 {strides = array<i32>} : memref<8x8x256xf32, #tpu.memory_space<vmem>>, vector<1x8x16xf32>,
    %609 = arith.index_cast %548 : i32 to index
    %c0_243 = arith.constant 0 : index
    %c128_244 = arith.constant 128 : index
    %610 = vector.load %arg14[%609, %c0_243, %c128_244] : memref<8x8x256xf32, #tpu.memory_space<vmem>>, vector<1x8x16xf32>
    %611 = vector.shape_cast %610 : vector<1x8x16xf32> to vector<8x16xf32>
    %612 = vector.shape_cast %604 : vector<8x16xf32> to vector<1x8x16xf32>
    tpu.vector_store %arg14[%609, %c0_243, %c128_244], %612 {strides = array<i32>} : memref<8x8x256xf32, #tpu.memory_space<vmem>>, vector<1x8x16xf32>,
    %c1_i32_245 = arith.constant 1 : i32
    %c7_i32_246 = arith.constant 7 : i32
    %613 = arith.subi %c7_i32_246, %c1_i32_245 : i32
    %614 = arith.index_cast %c1_i32_245 : i32 to index
    %c0_247 = arith.constant 0 : index
    %c0_248 = arith.constant 0 : index
    %615 = vector.load %arg15[%614, %c0_247, %c0_248] : memref<8x8x256xf32, #tpu.memory_space<vmem>>, vector<1x8x256xf32>
    %616 = vector.shape_cast %615 : vector<1x8x256xf32> to vector<8x256xf32>
    %617 = vector.extract_strided_slice %616 {offsets = [0, 0], sizes = [8, 128], strides = [1, 1]} : vector<8x256xf32> to vector<8x128xf32>
    %cst_249 = arith.constant dense<0.000000e+00> : vector<8x128xf32>
    %618 = tpu.matmul %582, %545, %cst_249 {dimension_numbers = #tpu.dot_dimension_numbers<[1], [0], [0], [1], [0, 0, 1, 1], [], []>} : vector<8x16xf32>, vector<16x128xf32>, vector<8x128xf32> -> vector<8x128xf32>
    %619 = arith.addf %617, %618 : vector<8x128xf32>
    %620 = arith.index_cast %613 : i32 to index
    %c0_250 = arith.constant 0 : index
    %c0_251 = arith.constant 0 : index
    %621 = vector.load %arg15[%620, %c0_250, %c0_251] : memref<8x8x256xf32, #tpu.memory_space<vmem>>, vector<1x8x256xf32>
    %622 = vector.shape_cast %621 : vector<1x8x256xf32> to vector<8x256xf32>
    %623 = vector.extract_strided_slice %622 {offsets = [0, 128], sizes = [8, 128], strides = [1, 1]} : vector<8x256xf32> to vector<8x128xf32>
    %cst_252 = arith.constant dense<0.000000e+00> : vector<8x128xf32>
    %624 = tpu.matmul %604, %546, %cst_252 {dimension_numbers = #tpu.dot_dimension_numbers<[1], [0], [0], [1], [0, 0, 1, 1], [], []>} : vector<8x16xf32>, vector<16x128xf32>, vector<8x128xf32> -> vector<8x128xf32>
    %625 = arith.addf %623, %624 : vector<8x128xf32>
    %626 = math.tanh %619 : vector<8x128xf32>
    %627 = vector.extract_strided_slice %626 {offsets = [0, 0], sizes = [8, 16], strides = [1, 1]} : vector<8x128xf32> to vector<8x16xf32>
    %cst_253 = arith.constant 5.000000e-01 : f32
    %628 = vector.broadcast %cst_253 : f32 to vector<8x16xf32>
    %629 = arith.mulf %628, %627 : vector<8x16xf32>
    %cst_254 = arith.constant 5.000000e-01 : f32
    %630 = vector.broadcast %cst_254 : f32 to vector<8x16xf32>
    %631 = arith.addf %629, %630 : vector<8x16xf32>
    %632 = vector.extract_strided_slice %626 {offsets = [0, 16], sizes = [8, 16], strides = [1, 1]} : vector<8x128xf32> to vector<8x16xf32>
    %cst_255 = arith.constant 5.000000e-01 : f32
    %633 = vector.broadcast %cst_255 : f32 to vector<8x16xf32>
    %634 = arith.mulf %633, %632 : vector<8x16xf32>
    %cst_256 = arith.constant 5.000000e-01 : f32
    %635 = vector.broadcast %cst_256 : f32 to vector<8x16xf32>
    %636 = arith.addf %634, %635 : vector<8x16xf32>
    %637 = vector.extract_strided_slice %626 {offsets = [0, 32], sizes = [8, 16], strides = [1, 1]} : vector<8x128xf32> to vector<8x16xf32>
    %638 = vector.extract_strided_slice %626 {offsets = [0, 48], sizes = [8, 16], strides = [1, 1]} : vector<8x128xf32> to vector<8x16xf32>
    %cst_257 = arith.constant 5.000000e-01 : f32
    %639 = vector.broadcast %cst_257 : f32 to vector<8x16xf32>
    %640 = arith.mulf %639, %638 : vector<8x16xf32>
    %cst_258 = arith.constant 5.000000e-01 : f32
    %641 = vector.broadcast %cst_258 : f32 to vector<8x16xf32>
    %642 = arith.addf %640, %641 : vector<8x16xf32>
    %643 = arith.mulf %636, %580 : vector<8x16xf32>
    %644 = arith.mulf %631, %637 : vector<8x16xf32>
    %645 = arith.addf %643, %644 : vector<8x16xf32>
    %646 = math.tanh %645 : vector<8x16xf32>
    %647 = arith.mulf %642, %646 : vector<8x16xf32>
    %648 = math.tanh %625 : vector<8x128xf32>
    %649 = vector.extract_strided_slice %648 {offsets = [0, 0], sizes = [8, 16], strides = [1, 1]} : vector<8x128xf32> to vector<8x16xf32>
    %cst_259 = arith.constant 5.000000e-01 : f32
    %650 = vector.broadcast %cst_259 : f32 to vector<8x16xf32>
    %651 = arith.mulf %650, %649 : vector<8x16xf32>
    %cst_260 = arith.constant 5.000000e-01 : f32
    %652 = vector.broadcast %cst_260 : f32 to vector<8x16xf32>
    %653 = arith.addf %651, %652 : vector<8x16xf32>
    %654 = vector.extract_strided_slice %648 {offsets = [0, 16], sizes = [8, 16], strides = [1, 1]} : vector<8x128xf32> to vector<8x16xf32>
    %cst_261 = arith.constant 5.000000e-01 : f32
    %655 = vector.broadcast %cst_261 : f32 to vector<8x16xf32>
    %656 = arith.mulf %655, %654 : vector<8x16xf32>
    %cst_262 = arith.constant 5.000000e-01 : f32
    %657 = vector.broadcast %cst_262 : f32 to vector<8x16xf32>
    %658 = arith.addf %656, %657 : vector<8x16xf32>
    %659 = vector.extract_strided_slice %648 {offsets = [0, 32], sizes = [8, 16], strides = [1, 1]} : vector<8x128xf32> to vector<8x16xf32>
    %660 = vector.extract_strided_slice %648 {offsets = [0, 48], sizes = [8, 16], strides = [1, 1]} : vector<8x128xf32> to vector<8x16xf32>
    %cst_263 = arith.constant 5.000000e-01 : f32
    %661 = vector.broadcast %cst_263 : f32 to vector<8x16xf32>
    %662 = arith.mulf %661, %660 : vector<8x16xf32>
    %cst_264 = arith.constant 5.000000e-01 : f32
    %663 = vector.broadcast %cst_264 : f32 to vector<8x16xf32>
    %664 = arith.addf %662, %663 : vector<8x16xf32>
    %665 = arith.mulf %658, %602 : vector<8x16xf32>
    %666 = arith.mulf %653, %659 : vector<8x16xf32>
    %667 = arith.addf %665, %666 : vector<8x16xf32>
    %668 = math.tanh %667 : vector<8x16xf32>
    %669 = arith.mulf %664, %668 : vector<8x16xf32>
    %670 = arith.index_cast %c1_i32_245 : i32 to index
    %c0_265 = arith.constant 0 : index
    %c0_266 = arith.constant 0 : index
    %671 = vector.load %arg14[%670, %c0_265, %c0_266] : memref<8x8x256xf32, #tpu.memory_space<vmem>>, vector<1x8x16xf32>
    %672 = vector.shape_cast %671 : vector<1x8x16xf32> to vector<8x16xf32>
    %673 = vector.shape_cast %647 : vector<8x16xf32> to vector<1x8x16xf32>
    tpu.vector_store %arg14[%670, %c0_265, %c0_266], %673 {strides = array<i32>} : memref<8x8x256xf32, #tpu.memory_space<vmem>>, vector<1x8x16xf32>,
    %674 = arith.index_cast %613 : i32 to index
    %c0_267 = arith.constant 0 : index
    %c128_268 = arith.constant 128 : index
    %675 = vector.load %arg14[%674, %c0_267, %c128_268] : memref<8x8x256xf32, #tpu.memory_space<vmem>>, vector<1x8x16xf32>
    %676 = vector.shape_cast %675 : vector<1x8x16xf32> to vector<8x16xf32>
    %677 = vector.shape_cast %669 : vector<8x16xf32> to vector<1x8x16xf32>
    tpu.vector_store %arg14[%674, %c0_267, %c128_268], %677 {strides = array<i32>} : memref<8x8x256xf32, #tpu.memory_space<vmem>>, vector<1x8x16xf32>,
    %c2_i32_269 = arith.constant 2 : i32
    %c7_i32_270 = arith.constant 7 : i32
    %678 = arith.subi %c7_i32_270, %c2_i32_269 : i32
    %679 = arith.index_cast %c2_i32_269 : i32 to index
    %c0_271 = arith.constant 0 : index
    %c0_272 = arith.constant 0 : index
    %680 = vector.load %arg15[%679, %c0_271, %c0_272] : memref<8x8x256xf32, #tpu.memory_space<vmem>>, vector<1x8x256xf32>
    %681 = vector.shape_cast %680 : vector<1x8x256xf32> to vector<8x256xf32>
    %682 = vector.extract_strided_slice %681 {offsets = [0, 0], sizes = [8, 128], strides = [1, 1]} : vector<8x256xf32> to vector<8x128xf32>
    %cst_273 = arith.constant dense<0.000000e+00> : vector<8x128xf32>
    %683 = tpu.matmul %647, %545, %cst_273 {dimension_numbers = #tpu.dot_dimension_numbers<[1], [0], [0], [1], [0, 0, 1, 1], [], []>} : vector<8x16xf32>, vector<16x128xf32>, vector<8x128xf32> -> vector<8x128xf32>
    %684 = arith.addf %682, %683 : vector<8x128xf32>
    %685 = arith.index_cast %678 : i32 to index
    %c0_274 = arith.constant 0 : index
    %c0_275 = arith.constant 0 : index
    %686 = vector.load %arg15[%685, %c0_274, %c0_275] : memref<8x8x256xf32, #tpu.memory_space<vmem>>, vector<1x8x256xf32>
    %687 = vector.shape_cast %686 : vector<1x8x256xf32> to vector<8x256xf32>
    %688 = vector.extract_strided_slice %687 {offsets = [0, 128], sizes = [8, 128], strides = [1, 1]} : vector<8x256xf32> to vector<8x128xf32>
    %cst_276 = arith.constant dense<0.000000e+00> : vector<8x128xf32>
    %689 = tpu.matmul %669, %546, %cst_276 {dimension_numbers = #tpu.dot_dimension_numbers<[1], [0], [0], [1], [0, 0, 1, 1], [], []>} : vector<8x16xf32>, vector<16x128xf32>, vector<8x128xf32> -> vector<8x128xf32>
    %690 = arith.addf %688, %689 : vector<8x128xf32>
    %691 = math.tanh %684 : vector<8x128xf32>
    %692 = vector.extract_strided_slice %691 {offsets = [0, 0], sizes = [8, 16], strides = [1, 1]} : vector<8x128xf32> to vector<8x16xf32>
    %cst_277 = arith.constant 5.000000e-01 : f32
    %693 = vector.broadcast %cst_277 : f32 to vector<8x16xf32>
    %694 = arith.mulf %693, %692 : vector<8x16xf32>
    %cst_278 = arith.constant 5.000000e-01 : f32
    %695 = vector.broadcast %cst_278 : f32 to vector<8x16xf32>
    %696 = arith.addf %694, %695 : vector<8x16xf32>
    %697 = vector.extract_strided_slice %691 {offsets = [0, 16], sizes = [8, 16], strides = [1, 1]} : vector<8x128xf32> to vector<8x16xf32>
    %cst_279 = arith.constant 5.000000e-01 : f32
    %698 = vector.broadcast %cst_279 : f32 to vector<8x16xf32>
    %699 = arith.mulf %698, %697 : vector<8x16xf32>
    %cst_280 = arith.constant 5.000000e-01 : f32
    %700 = vector.broadcast %cst_280 : f32 to vector<8x16xf32>
    %701 = arith.addf %699, %700 : vector<8x16xf32>
    %702 = vector.extract_strided_slice %691 {offsets = [0, 32], sizes = [8, 16], strides = [1, 1]} : vector<8x128xf32> to vector<8x16xf32>
    %703 = vector.extract_strided_slice %691 {offsets = [0, 48], sizes = [8, 16], strides = [1, 1]} : vector<8x128xf32> to vector<8x16xf32>
    %cst_281 = arith.constant 5.000000e-01 : f32
    %704 = vector.broadcast %cst_281 : f32 to vector<8x16xf32>
    %705 = arith.mulf %704, %703 : vector<8x16xf32>
    %cst_282 = arith.constant 5.000000e-01 : f32
    %706 = vector.broadcast %cst_282 : f32 to vector<8x16xf32>
    %707 = arith.addf %705, %706 : vector<8x16xf32>
    %708 = arith.mulf %701, %645 : vector<8x16xf32>
    %709 = arith.mulf %696, %702 : vector<8x16xf32>
    %710 = arith.addf %708, %709 : vector<8x16xf32>
    %711 = math.tanh %710 : vector<8x16xf32>
    %712 = arith.mulf %707, %711 : vector<8x16xf32>
    %713 = math.tanh %690 : vector<8x128xf32>
    %714 = vector.extract_strided_slice %713 {offsets = [0, 0], sizes = [8, 16], strides = [1, 1]} : vector<8x128xf32> to vector<8x16xf32>
    %cst_283 = arith.constant 5.000000e-01 : f32
    %715 = vector.broadcast %cst_283 : f32 to vector<8x16xf32>
    %716 = arith.mulf %715, %714 : vector<8x16xf32>
    %cst_284 = arith.constant 5.000000e-01 : f32
    %717 = vector.broadcast %cst_284 : f32 to vector<8x16xf32>
    %718 = arith.addf %716, %717 : vector<8x16xf32>
    %719 = vector.extract_strided_slice %713 {offsets = [0, 16], sizes = [8, 16], strides = [1, 1]} : vector<8x128xf32> to vector<8x16xf32>
    %cst_285 = arith.constant 5.000000e-01 : f32
    %720 = vector.broadcast %cst_285 : f32 to vector<8x16xf32>
    %721 = arith.mulf %720, %719 : vector<8x16xf32>
    %cst_286 = arith.constant 5.000000e-01 : f32
    %722 = vector.broadcast %cst_286 : f32 to vector<8x16xf32>
    %723 = arith.addf %721, %722 : vector<8x16xf32>
    %724 = vector.extract_strided_slice %713 {offsets = [0, 32], sizes = [8, 16], strides = [1, 1]} : vector<8x128xf32> to vector<8x16xf32>
    %725 = vector.extract_strided_slice %713 {offsets = [0, 48], sizes = [8, 16], strides = [1, 1]} : vector<8x128xf32> to vector<8x16xf32>
    %cst_287 = arith.constant 5.000000e-01 : f32
    %726 = vector.broadcast %cst_287 : f32 to vector<8x16xf32>
    %727 = arith.mulf %726, %725 : vector<8x16xf32>
    %cst_288 = arith.constant 5.000000e-01 : f32
    %728 = vector.broadcast %cst_288 : f32 to vector<8x16xf32>
    %729 = arith.addf %727, %728 : vector<8x16xf32>
    %730 = arith.mulf %723, %667 : vector<8x16xf32>
    %731 = arith.mulf %718, %724 : vector<8x16xf32>
    %732 = arith.addf %730, %731 : vector<8x16xf32>
    %733 = math.tanh %732 : vector<8x16xf32>
    %734 = arith.mulf %729, %733 : vector<8x16xf32>
    %735 = arith.index_cast %c2_i32_269 : i32 to index
    %c0_289 = arith.constant 0 : index
    %c0_290 = arith.constant 0 : index
    %736 = vector.load %arg14[%735, %c0_289, %c0_290] : memref<8x8x256xf32, #tpu.memory_space<vmem>>, vector<1x8x16xf32>
    %737 = vector.shape_cast %736 : vector<1x8x16xf32> to vector<8x16xf32>
    %738 = vector.shape_cast %712 : vector<8x16xf32> to vector<1x8x16xf32>
    tpu.vector_store %arg14[%735, %c0_289, %c0_290], %738 {strides = array<i32>} : memref<8x8x256xf32, #tpu.memory_space<vmem>>, vector<1x8x16xf32>,
    %739 = arith.index_cast %678 : i32 to index
    %c0_291 = arith.constant 0 : index
    %c128_292 = arith.constant 128 : index
    %740 = vector.load %arg14[%739, %c0_291, %c128_292] : memref<8x8x256xf32, #tpu.memory_space<vmem>>, vector<1x8x16xf32>
    %741 = vector.shape_cast %740 : vector<1x8x16xf32> to vector<8x16xf32>
    %742 = vector.shape_cast %734 : vector<8x16xf32> to vector<1x8x16xf32>
    tpu.vector_store %arg14[%739, %c0_291, %c128_292], %742 {strides = array<i32>} : memref<8x8x256xf32, #tpu.memory_space<vmem>>, vector<1x8x16xf32>,
    %c3_i32_293 = arith.constant 3 : i32
    %c7_i32_294 = arith.constant 7 : i32
    %743 = arith.subi %c7_i32_294, %c3_i32_293 : i32
    %744 = arith.index_cast %c3_i32_293 : i32 to index
    %c0_295 = arith.constant 0 : index
    %c0_296 = arith.constant 0 : index
    %745 = vector.load %arg15[%744, %c0_295, %c0_296] : memref<8x8x256xf32, #tpu.memory_space<vmem>>, vector<1x8x256xf32>
    %746 = vector.shape_cast %745 : vector<1x8x256xf32> to vector<8x256xf32>
    %747 = vector.extract_strided_slice %746 {offsets = [0, 0], sizes = [8, 128], strides = [1, 1]} : vector<8x256xf32> to vector<8x128xf32>
    %cst_297 = arith.constant dense<0.000000e+00> : vector<8x128xf32>
    %748 = tpu.matmul %712, %545, %cst_297 {dimension_numbers = #tpu.dot_dimension_numbers<[1], [0], [0], [1], [0, 0, 1, 1], [], []>} : vector<8x16xf32>, vector<16x128xf32>, vector<8x128xf32> -> vector<8x128xf32>
    %749 = arith.addf %747, %748 : vector<8x128xf32>
    %750 = arith.index_cast %743 : i32 to index
    %c0_298 = arith.constant 0 : index
    %c0_299 = arith.constant 0 : index
    %751 = vector.load %arg15[%750, %c0_298, %c0_299] : memref<8x8x256xf32, #tpu.memory_space<vmem>>, vector<1x8x256xf32>
    %752 = vector.shape_cast %751 : vector<1x8x256xf32> to vector<8x256xf32>
    %753 = vector.extract_strided_slice %752 {offsets = [0, 128], sizes = [8, 128], strides = [1, 1]} : vector<8x256xf32> to vector<8x128xf32>
    %cst_300 = arith.constant dense<0.000000e+00> : vector<8x128xf32>
    %754 = tpu.matmul %734, %546, %cst_300 {dimension_numbers = #tpu.dot_dimension_numbers<[1], [0], [0], [1], [0, 0, 1, 1], [], []>} : vector<8x16xf32>, vector<16x128xf32>, vector<8x128xf32> -> vector<8x128xf32>
    %755 = arith.addf %753, %754 : vector<8x128xf32>
    %756 = math.tanh %749 : vector<8x128xf32>
    %757 = vector.extract_strided_slice %756 {offsets = [0, 0], sizes = [8, 16], strides = [1, 1]} : vector<8x128xf32> to vector<8x16xf32>
    %cst_301 = arith.constant 5.000000e-01 : f32
    %758 = vector.broadcast %cst_301 : f32 to vector<8x16xf32>
    %759 = arith.mulf %758, %757 : vector<8x16xf32>
    %cst_302 = arith.constant 5.000000e-01 : f32
    %760 = vector.broadcast %cst_302 : f32 to vector<8x16xf32>
    %761 = arith.addf %759, %760 : vector<8x16xf32>
    %762 = vector.extract_strided_slice %756 {offsets = [0, 16], sizes = [8, 16], strides = [1, 1]} : vector<8x128xf32> to vector<8x16xf32>
    %cst_303 = arith.constant 5.000000e-01 : f32
    %763 = vector.broadcast %cst_303 : f32 to vector<8x16xf32>
    %764 = arith.mulf %763, %762 : vector<8x16xf32>
    %cst_304 = arith.constant 5.000000e-01 : f32
    %765 = vector.broadcast %cst_304 : f32 to vector<8x16xf32>
    %766 = arith.addf %764, %765 : vector<8x16xf32>
    %767 = vector.extract_strided_slice %756 {offsets = [0, 32], sizes = [8, 16], strides = [1, 1]} : vector<8x128xf32> to vector<8x16xf32>
    %768 = vector.extract_strided_slice %756 {offsets = [0, 48], sizes = [8, 16], strides = [1, 1]} : vector<8x128xf32> to vector<8x16xf32>
    %cst_305 = arith.constant 5.000000e-01 : f32
    %769 = vector.broadcast %cst_305 : f32 to vector<8x16xf32>
    %770 = arith.mulf %769, %768 : vector<8x16xf32>
    %cst_306 = arith.constant 5.000000e-01 : f32
    %771 = vector.broadcast %cst_306 : f32 to vector<8x16xf32>
    %772 = arith.addf %770, %771 : vector<8x16xf32>
    %773 = arith.mulf %766, %710 : vector<8x16xf32>
    %774 = arith.mulf %761, %767 : vector<8x16xf32>
    %775 = arith.addf %773, %774 : vector<8x16xf32>
    %776 = math.tanh %775 : vector<8x16xf32>
    %777 = arith.mulf %772, %776 : vector<8x16xf32>
    %778 = math.tanh %755 : vector<8x128xf32>
    %779 = vector.extract_strided_slice %778 {offsets = [0, 0], sizes = [8, 16], strides = [1, 1]} : vector<8x128xf32> to vector<8x16xf32>
    %cst_307 = arith.constant 5.000000e-01 : f32
    %780 = vector.broadcast %cst_307 : f32 to vector<8x16xf32>
    %781 = arith.mulf %780, %779 : vector<8x16xf32>
    %cst_308 = arith.constant 5.000000e-01 : f32
    %782 = vector.broadcast %cst_308 : f32 to vector<8x16xf32>
    %783 = arith.addf %781, %782 : vector<8x16xf32>
    %784 = vector.extract_strided_slice %778 {offsets = [0, 16], sizes = [8, 16], strides = [1, 1]} : vector<8x128xf32> to vector<8x16xf32>
    %cst_309 = arith.constant 5.000000e-01 : f32
    %785 = vector.broadcast %cst_309 : f32 to vector<8x16xf32>
    %786 = arith.mulf %785, %784 : vector<8x16xf32>
    %cst_310 = arith.constant 5.000000e-01 : f32
    %787 = vector.broadcast %cst_310 : f32 to vector<8x16xf32>
    %788 = arith.addf %786, %787 : vector<8x16xf32>
    %789 = vector.extract_strided_slice %778 {offsets = [0, 32], sizes = [8, 16], strides = [1, 1]} : vector<8x128xf32> to vector<8x16xf32>
    %790 = vector.extract_strided_slice %778 {offsets = [0, 48], sizes = [8, 16], strides = [1, 1]} : vector<8x128xf32> to vector<8x16xf32>
    %cst_311 = arith.constant 5.000000e-01 : f32
    %791 = vector.broadcast %cst_311 : f32 to vector<8x16xf32>
    %792 = arith.mulf %791, %790 : vector<8x16xf32>
    %cst_312 = arith.constant 5.000000e-01 : f32
    %793 = vector.broadcast %cst_312 : f32 to vector<8x16xf32>
    %794 = arith.addf %792, %793 : vector<8x16xf32>
    %795 = arith.mulf %788, %732 : vector<8x16xf32>
    %796 = arith.mulf %783, %789 : vector<8x16xf32>
    %797 = arith.addf %795, %796 : vector<8x16xf32>
    %798 = math.tanh %797 : vector<8x16xf32>
    %799 = arith.mulf %794, %798 : vector<8x16xf32>
    %800 = arith.index_cast %c3_i32_293 : i32 to index
    %c0_313 = arith.constant 0 : index
    %c0_314 = arith.constant 0 : index
    %801 = vector.load %arg14[%800, %c0_313, %c0_314] : memref<8x8x256xf32, #tpu.memory_space<vmem>>, vector<1x8x16xf32>
    %802 = vector.shape_cast %801 : vector<1x8x16xf32> to vector<8x16xf32>
    %803 = vector.shape_cast %777 : vector<8x16xf32> to vector<1x8x16xf32>
    tpu.vector_store %arg14[%800, %c0_313, %c0_314], %803 {strides = array<i32>} : memref<8x8x256xf32, #tpu.memory_space<vmem>>, vector<1x8x16xf32>,
    %804 = arith.index_cast %743 : i32 to index
    %c0_315 = arith.constant 0 : index
    %c128_316 = arith.constant 128 : index
    %805 = vector.load %arg14[%804, %c0_315, %c128_316] : memref<8x8x256xf32, #tpu.memory_space<vmem>>, vector<1x8x16xf32>
    %806 = vector.shape_cast %805 : vector<1x8x16xf32> to vector<8x16xf32>
    %807 = vector.shape_cast %799 : vector<8x16xf32> to vector<1x8x16xf32>
    tpu.vector_store %arg14[%804, %c0_315, %c128_316], %807 {strides = array<i32>} : memref<8x8x256xf32, #tpu.memory_space<vmem>>, vector<1x8x16xf32>,
    %c4_i32_317 = arith.constant 4 : i32
    %c7_i32_318 = arith.constant 7 : i32
    %808 = arith.subi %c7_i32_318, %c4_i32_317 : i32
    %809 = arith.index_cast %c4_i32_317 : i32 to index
    %c0_319 = arith.constant 0 : index
    %c0_320 = arith.constant 0 : index
    %810 = vector.load %arg15[%809, %c0_319, %c0_320] : memref<8x8x256xf32, #tpu.memory_space<vmem>>, vector<1x8x256xf32>
    %811 = vector.shape_cast %810 : vector<1x8x256xf32> to vector<8x256xf32>
    %812 = vector.extract_strided_slice %811 {offsets = [0, 0], sizes = [8, 128], strides = [1, 1]} : vector<8x256xf32> to vector<8x128xf32>
    %cst_321 = arith.constant dense<0.000000e+00> : vector<8x128xf32>
    %813 = tpu.matmul %777, %545, %cst_321 {dimension_numbers = #tpu.dot_dimension_numbers<[1], [0], [0], [1], [0, 0, 1, 1], [], []>} : vector<8x16xf32>, vector<16x128xf32>, vector<8x128xf32> -> vector<8x128xf32>
    %814 = arith.addf %812, %813 : vector<8x128xf32>
    %815 = arith.index_cast %808 : i32 to index
    %c0_322 = arith.constant 0 : index
    %c0_323 = arith.constant 0 : index
    %816 = vector.load %arg15[%815, %c0_322, %c0_323] : memref<8x8x256xf32, #tpu.memory_space<vmem>>, vector<1x8x256xf32>
    %817 = vector.shape_cast %816 : vector<1x8x256xf32> to vector<8x256xf32>
    %818 = vector.extract_strided_slice %817 {offsets = [0, 128], sizes = [8, 128], strides = [1, 1]} : vector<8x256xf32> to vector<8x128xf32>
    %cst_324 = arith.constant dense<0.000000e+00> : vector<8x128xf32>
    %819 = tpu.matmul %799, %546, %cst_324 {dimension_numbers = #tpu.dot_dimension_numbers<[1], [0], [0], [1], [0, 0, 1, 1], [], []>} : vector<8x16xf32>, vector<16x128xf32>, vector<8x128xf32> -> vector<8x128xf32>
    %820 = arith.addf %818, %819 : vector<8x128xf32>
    %821 = math.tanh %814 : vector<8x128xf32>
    %822 = vector.extract_strided_slice %821 {offsets = [0, 0], sizes = [8, 16], strides = [1, 1]} : vector<8x128xf32> to vector<8x16xf32>
    %cst_325 = arith.constant 5.000000e-01 : f32
    %823 = vector.broadcast %cst_325 : f32 to vector<8x16xf32>
    %824 = arith.mulf %823, %822 : vector<8x16xf32>
    %cst_326 = arith.constant 5.000000e-01 : f32
    %825 = vector.broadcast %cst_326 : f32 to vector<8x16xf32>
    %826 = arith.addf %824, %825 : vector<8x16xf32>
    %827 = vector.extract_strided_slice %821 {offsets = [0, 16], sizes = [8, 16], strides = [1, 1]} : vector<8x128xf32> to vector<8x16xf32>
    %cst_327 = arith.constant 5.000000e-01 : f32
    %828 = vector.broadcast %cst_327 : f32 to vector<8x16xf32>
    %829 = arith.mulf %828, %827 : vector<8x16xf32>
    %cst_328 = arith.constant 5.000000e-01 : f32
    %830 = vector.broadcast %cst_328 : f32 to vector<8x16xf32>
    %831 = arith.addf %829, %830 : vector<8x16xf32>
    %832 = vector.extract_strided_slice %821 {offsets = [0, 32], sizes = [8, 16], strides = [1, 1]} : vector<8x128xf32> to vector<8x16xf32>
    %833 = vector.extract_strided_slice %821 {offsets = [0, 48], sizes = [8, 16], strides = [1, 1]} : vector<8x128xf32> to vector<8x16xf32>
    %cst_329 = arith.constant 5.000000e-01 : f32
    %834 = vector.broadcast %cst_329 : f32 to vector<8x16xf32>
    %835 = arith.mulf %834, %833 : vector<8x16xf32>
    %cst_330 = arith.constant 5.000000e-01 : f32
    %836 = vector.broadcast %cst_330 : f32 to vector<8x16xf32>
    %837 = arith.addf %835, %836 : vector<8x16xf32>
    %838 = arith.mulf %831, %775 : vector<8x16xf32>
    %839 = arith.mulf %826, %832 : vector<8x16xf32>
    %840 = arith.addf %838, %839 : vector<8x16xf32>
    %841 = math.tanh %840 : vector<8x16xf32>
    %842 = arith.mulf %837, %841 : vector<8x16xf32>
    %843 = math.tanh %820 : vector<8x128xf32>
    %844 = vector.extract_strided_slice %843 {offsets = [0, 0], sizes = [8, 16], strides = [1, 1]} : vector<8x128xf32> to vector<8x16xf32>
    %cst_331 = arith.constant 5.000000e-01 : f32
    %845 = vector.broadcast %cst_331 : f32 to vector<8x16xf32>
    %846 = arith.mulf %845, %844 : vector<8x16xf32>
    %cst_332 = arith.constant 5.000000e-01 : f32
    %847 = vector.broadcast %cst_332 : f32 to vector<8x16xf32>
    %848 = arith.addf %846, %847 : vector<8x16xf32>
    %849 = vector.extract_strided_slice %843 {offsets = [0, 16], sizes = [8, 16], strides = [1, 1]} : vector<8x128xf32> to vector<8x16xf32>
    %cst_333 = arith.constant 5.000000e-01 : f32
    %850 = vector.broadcast %cst_333 : f32 to vector<8x16xf32>
    %851 = arith.mulf %850, %849 : vector<8x16xf32>
    %cst_334 = arith.constant 5.000000e-01 : f32
    %852 = vector.broadcast %cst_334 : f32 to vector<8x16xf32>
    %853 = arith.addf %851, %852 : vector<8x16xf32>
    %854 = vector.extract_strided_slice %843 {offsets = [0, 32], sizes = [8, 16], strides = [1, 1]} : vector<8x128xf32> to vector<8x16xf32>
    %855 = vector.extract_strided_slice %843 {offsets = [0, 48], sizes = [8, 16], strides = [1, 1]} : vector<8x128xf32> to vector<8x16xf32>
    %cst_335 = arith.constant 5.000000e-01 : f32
    %856 = vector.broadcast %cst_335 : f32 to vector<8x16xf32>
    %857 = arith.mulf %856, %855 : vector<8x16xf32>
    %cst_336 = arith.constant 5.000000e-01 : f32
    %858 = vector.broadcast %cst_336 : f32 to vector<8x16xf32>
    %859 = arith.addf %857, %858 : vector<8x16xf32>
    %860 = arith.mulf %853, %797 : vector<8x16xf32>
    %861 = arith.mulf %848, %854 : vector<8x16xf32>
    %862 = arith.addf %860, %861 : vector<8x16xf32>
    %863 = math.tanh %862 : vector<8x16xf32>
    %864 = arith.mulf %859, %863 : vector<8x16xf32>
    %865 = arith.index_cast %c4_i32_317 : i32 to index
    %c0_337 = arith.constant 0 : index
    %c0_338 = arith.constant 0 : index
    %866 = vector.load %arg14[%865, %c0_337, %c0_338] : memref<8x8x256xf32, #tpu.memory_space<vmem>>, vector<1x8x16xf32>
    %867 = vector.shape_cast %866 : vector<1x8x16xf32> to vector<8x16xf32>
    %868 = vector.shape_cast %842 : vector<8x16xf32> to vector<1x8x16xf32>
    tpu.vector_store %arg14[%865, %c0_337, %c0_338], %868 {strides = array<i32>} : memref<8x8x256xf32, #tpu.memory_space<vmem>>, vector<1x8x16xf32>,
    %869 = arith.index_cast %808 : i32 to index
    %c0_339 = arith.constant 0 : index
    %c128_340 = arith.constant 128 : index
    %870 = vector.load %arg14[%869, %c0_339, %c128_340] : memref<8x8x256xf32, #tpu.memory_space<vmem>>, vector<1x8x16xf32>
    %871 = vector.shape_cast %870 : vector<1x8x16xf32> to vector<8x16xf32>
    %872 = vector.shape_cast %864 : vector<8x16xf32> to vector<1x8x16xf32>
    tpu.vector_store %arg14[%869, %c0_339, %c128_340], %872 {strides = array<i32>} : memref<8x8x256xf32, #tpu.memory_space<vmem>>, vector<1x8x16xf32>,
    %c5_i32_341 = arith.constant 5 : i32
    %c7_i32_342 = arith.constant 7 : i32
    %873 = arith.subi %c7_i32_342, %c5_i32_341 : i32
    %874 = arith.index_cast %c5_i32_341 : i32 to index
    %c0_343 = arith.constant 0 : index
    %c0_344 = arith.constant 0 : index
    %875 = vector.load %arg15[%874, %c0_343, %c0_344] : memref<8x8x256xf32, #tpu.memory_space<vmem>>, vector<1x8x256xf32>
    %876 = vector.shape_cast %875 : vector<1x8x256xf32> to vector<8x256xf32>
    %877 = vector.extract_strided_slice %876 {offsets = [0, 0], sizes = [8, 128], strides = [1, 1]} : vector<8x256xf32> to vector<8x128xf32>
    %cst_345 = arith.constant dense<0.000000e+00> : vector<8x128xf32>
    %878 = tpu.matmul %842, %545, %cst_345 {dimension_numbers = #tpu.dot_dimension_numbers<[1], [0], [0], [1], [0, 0, 1, 1], [], []>} : vector<8x16xf32>, vector<16x128xf32>, vector<8x128xf32> -> vector<8x128xf32>
    %879 = arith.addf %877, %878 : vector<8x128xf32>
    %880 = arith.index_cast %873 : i32 to index
    %c0_346 = arith.constant 0 : index
    %c0_347 = arith.constant 0 : index
    %881 = vector.load %arg15[%880, %c0_346, %c0_347] : memref<8x8x256xf32, #tpu.memory_space<vmem>>, vector<1x8x256xf32>
    %882 = vector.shape_cast %881 : vector<1x8x256xf32> to vector<8x256xf32>
    %883 = vector.extract_strided_slice %882 {offsets = [0, 128], sizes = [8, 128], strides = [1, 1]} : vector<8x256xf32> to vector<8x128xf32>
    %cst_348 = arith.constant dense<0.000000e+00> : vector<8x128xf32>
    %884 = tpu.matmul %864, %546, %cst_348 {dimension_numbers = #tpu.dot_dimension_numbers<[1], [0], [0], [1], [0, 0, 1, 1], [], []>} : vector<8x16xf32>, vector<16x128xf32>, vector<8x128xf32> -> vector<8x128xf32>
    %885 = arith.addf %883, %884 : vector<8x128xf32>
    %886 = math.tanh %879 : vector<8x128xf32>
    %887 = vector.extract_strided_slice %886 {offsets = [0, 0], sizes = [8, 16], strides = [1, 1]} : vector<8x128xf32> to vector<8x16xf32>
    %cst_349 = arith.constant 5.000000e-01 : f32
    %888 = vector.broadcast %cst_349 : f32 to vector<8x16xf32>
    %889 = arith.mulf %888, %887 : vector<8x16xf32>
    %cst_350 = arith.constant 5.000000e-01 : f32
    %890 = vector.broadcast %cst_350 : f32 to vector<8x16xf32>
    %891 = arith.addf %889, %890 : vector<8x16xf32>
    %892 = vector.extract_strided_slice %886 {offsets = [0, 16], sizes = [8, 16], strides = [1, 1]} : vector<8x128xf32> to vector<8x16xf32>
    %cst_351 = arith.constant 5.000000e-01 : f32
    %893 = vector.broadcast %cst_351 : f32 to vector<8x16xf32>
    %894 = arith.mulf %893, %892 : vector<8x16xf32>
    %cst_352 = arith.constant 5.000000e-01 : f32
    %895 = vector.broadcast %cst_352 : f32 to vector<8x16xf32>
    %896 = arith.addf %894, %895 : vector<8x16xf32>
    %897 = vector.extract_strided_slice %886 {offsets = [0, 32], sizes = [8, 16], strides = [1, 1]} : vector<8x128xf32> to vector<8x16xf32>
    %898 = vector.extract_strided_slice %886 {offsets = [0, 48], sizes = [8, 16], strides = [1, 1]} : vector<8x128xf32> to vector<8x16xf32>
    %cst_353 = arith.constant 5.000000e-01 : f32
    %899 = vector.broadcast %cst_353 : f32 to vector<8x16xf32>
    %900 = arith.mulf %899, %898 : vector<8x16xf32>
    %cst_354 = arith.constant 5.000000e-01 : f32
    %901 = vector.broadcast %cst_354 : f32 to vector<8x16xf32>
    %902 = arith.addf %900, %901 : vector<8x16xf32>
    %903 = arith.mulf %896, %840 : vector<8x16xf32>
    %904 = arith.mulf %891, %897 : vector<8x16xf32>
    %905 = arith.addf %903, %904 : vector<8x16xf32>
    %906 = math.tanh %905 : vector<8x16xf32>
    %907 = arith.mulf %902, %906 : vector<8x16xf32>
    %908 = math.tanh %885 : vector<8x128xf32>
    %909 = vector.extract_strided_slice %908 {offsets = [0, 0], sizes = [8, 16], strides = [1, 1]} : vector<8x128xf32> to vector<8x16xf32>
    %cst_355 = arith.constant 5.000000e-01 : f32
    %910 = vector.broadcast %cst_355 : f32 to vector<8x16xf32>
    %911 = arith.mulf %910, %909 : vector<8x16xf32>
    %cst_356 = arith.constant 5.000000e-01 : f32
    %912 = vector.broadcast %cst_356 : f32 to vector<8x16xf32>
    %913 = arith.addf %911, %912 : vector<8x16xf32>
    %914 = vector.extract_strided_slice %908 {offsets = [0, 16], sizes = [8, 16], strides = [1, 1]} : vector<8x128xf32> to vector<8x16xf32>
    %cst_357 = arith.constant 5.000000e-01 : f32
    %915 = vector.broadcast %cst_357 : f32 to vector<8x16xf32>
    %916 = arith.mulf %915, %914 : vector<8x16xf32>
    %cst_358 = arith.constant 5.000000e-01 : f32
    %917 = vector.broadcast %cst_358 : f32 to vector<8x16xf32>
    %918 = arith.addf %916, %917 : vector<8x16xf32>
    %919 = vector.extract_strided_slice %908 {offsets = [0, 32], sizes = [8, 16], strides = [1, 1]} : vector<8x128xf32> to vector<8x16xf32>
    %920 = vector.extract_strided_slice %908 {offsets = [0, 48], sizes = [8, 16], strides = [1, 1]} : vector<8x128xf32> to vector<8x16xf32>
    %cst_359 = arith.constant 5.000000e-01 : f32
    %921 = vector.broadcast %cst_359 : f32 to vector<8x16xf32>
    %922 = arith.mulf %921, %920 : vector<8x16xf32>
    %cst_360 = arith.constant 5.000000e-01 : f32
    %923 = vector.broadcast %cst_360 : f32 to vector<8x16xf32>
    %924 = arith.addf %922, %923 : vector<8x16xf32>
    %925 = arith.mulf %918, %862 : vector<8x16xf32>
    %926 = arith.mulf %913, %919 : vector<8x16xf32>
    %927 = arith.addf %925, %926 : vector<8x16xf32>
    %928 = math.tanh %927 : vector<8x16xf32>
    %929 = arith.mulf %924, %928 : vector<8x16xf32>
    %930 = arith.index_cast %c5_i32_341 : i32 to index
    %c0_361 = arith.constant 0 : index
    %c0_362 = arith.constant 0 : index
    %931 = vector.load %arg14[%930, %c0_361, %c0_362] : memref<8x8x256xf32, #tpu.memory_space<vmem>>, vector<1x8x16xf32>
    %932 = vector.shape_cast %931 : vector<1x8x16xf32> to vector<8x16xf32>
    %933 = vector.shape_cast %907 : vector<8x16xf32> to vector<1x8x16xf32>
    tpu.vector_store %arg14[%930, %c0_361, %c0_362], %933 {strides = array<i32>} : memref<8x8x256xf32, #tpu.memory_space<vmem>>, vector<1x8x16xf32>,
    %934 = arith.index_cast %873 : i32 to index
    %c0_363 = arith.constant 0 : index
    %c128_364 = arith.constant 128 : index
    %935 = vector.load %arg14[%934, %c0_363, %c128_364] : memref<8x8x256xf32, #tpu.memory_space<vmem>>, vector<1x8x16xf32>
    %936 = vector.shape_cast %935 : vector<1x8x16xf32> to vector<8x16xf32>
    %937 = vector.shape_cast %929 : vector<8x16xf32> to vector<1x8x16xf32>
    tpu.vector_store %arg14[%934, %c0_363, %c128_364], %937 {strides = array<i32>} : memref<8x8x256xf32, #tpu.memory_space<vmem>>, vector<1x8x16xf32>,
    %c6_i32_365 = arith.constant 6 : i32
    %c7_i32_366 = arith.constant 7 : i32
    %938 = arith.subi %c7_i32_366, %c6_i32_365 : i32
    %939 = arith.index_cast %c6_i32_365 : i32 to index
    %c0_367 = arith.constant 0 : index
    %c0_368 = arith.constant 0 : index
    %940 = vector.load %arg15[%939, %c0_367, %c0_368] : memref<8x8x256xf32, #tpu.memory_space<vmem>>, vector<1x8x256xf32>
    %941 = vector.shape_cast %940 : vector<1x8x256xf32> to vector<8x256xf32>
    %942 = vector.extract_strided_slice %941 {offsets = [0, 0], sizes = [8, 128], strides = [1, 1]} : vector<8x256xf32> to vector<8x128xf32>
    %cst_369 = arith.constant dense<0.000000e+00> : vector<8x128xf32>
    %943 = tpu.matmul %907, %545, %cst_369 {dimension_numbers = #tpu.dot_dimension_numbers<[1], [0], [0], [1], [0, 0, 1, 1], [], []>} : vector<8x16xf32>, vector<16x128xf32>, vector<8x128xf32> -> vector<8x128xf32>
    %944 = arith.addf %942, %943 : vector<8x128xf32>
    %945 = arith.index_cast %938 : i32 to index
    %c0_370 = arith.constant 0 : index
    %c0_371 = arith.constant 0 : index
    %946 = vector.load %arg15[%945, %c0_370, %c0_371] : memref<8x8x256xf32, #tpu.memory_space<vmem>>, vector<1x8x256xf32>
    %947 = vector.shape_cast %946 : vector<1x8x256xf32> to vector<8x256xf32>
    %948 = vector.extract_strided_slice %947 {offsets = [0, 128], sizes = [8, 128], strides = [1, 1]} : vector<8x256xf32> to vector<8x128xf32>
    %cst_372 = arith.constant dense<0.000000e+00> : vector<8x128xf32>
    %949 = tpu.matmul %929, %546, %cst_372 {dimension_numbers = #tpu.dot_dimension_numbers<[1], [0], [0], [1], [0, 0, 1, 1], [], []>} : vector<8x16xf32>, vector<16x128xf32>, vector<8x128xf32> -> vector<8x128xf32>
    %950 = arith.addf %948, %949 : vector<8x128xf32>
    %951 = math.tanh %944 : vector<8x128xf32>
    %952 = vector.extract_strided_slice %951 {offsets = [0, 0], sizes = [8, 16], strides = [1, 1]} : vector<8x128xf32> to vector<8x16xf32>
    %cst_373 = arith.constant 5.000000e-01 : f32
    %953 = vector.broadcast %cst_373 : f32 to vector<8x16xf32>
    %954 = arith.mulf %953, %952 : vector<8x16xf32>
    %cst_374 = arith.constant 5.000000e-01 : f32
    %955 = vector.broadcast %cst_374 : f32 to vector<8x16xf32>
    %956 = arith.addf %954, %955 : vector<8x16xf32>
    %957 = vector.extract_strided_slice %951 {offsets = [0, 16], sizes = [8, 16], strides = [1, 1]} : vector<8x128xf32> to vector<8x16xf32>
    %cst_375 = arith.constant 5.000000e-01 : f32
    %958 = vector.broadcast %cst_375 : f32 to vector<8x16xf32>
    %959 = arith.mulf %958, %957 : vector<8x16xf32>
    %cst_376 = arith.constant 5.000000e-01 : f32
    %960 = vector.broadcast %cst_376 : f32 to vector<8x16xf32>
    %961 = arith.addf %959, %960 : vector<8x16xf32>
    %962 = vector.extract_strided_slice %951 {offsets = [0, 32], sizes = [8, 16], strides = [1, 1]} : vector<8x128xf32> to vector<8x16xf32>
    %963 = vector.extract_strided_slice %951 {offsets = [0, 48], sizes = [8, 16], strides = [1, 1]} : vector<8x128xf32> to vector<8x16xf32>
    %cst_377 = arith.constant 5.000000e-01 : f32
    %964 = vector.broadcast %cst_377 : f32 to vector<8x16xf32>
    %965 = arith.mulf %964, %963 : vector<8x16xf32>
    %cst_378 = arith.constant 5.000000e-01 : f32
    %966 = vector.broadcast %cst_378 : f32 to vector<8x16xf32>
    %967 = arith.addf %965, %966 : vector<8x16xf32>
    %968 = arith.mulf %961, %905 : vector<8x16xf32>
    %969 = arith.mulf %956, %962 : vector<8x16xf32>
    %970 = arith.addf %968, %969 : vector<8x16xf32>
    %971 = math.tanh %970 : vector<8x16xf32>
    %972 = arith.mulf %967, %971 : vector<8x16xf32>
    %973 = math.tanh %950 : vector<8x128xf32>
    %974 = vector.extract_strided_slice %973 {offsets = [0, 0], sizes = [8, 16], strides = [1, 1]} : vector<8x128xf32> to vector<8x16xf32>
    %cst_379 = arith.constant 5.000000e-01 : f32
    %975 = vector.broadcast %cst_379 : f32 to vector<8x16xf32>
    %976 = arith.mulf %975, %974 : vector<8x16xf32>
    %cst_380 = arith.constant 5.000000e-01 : f32
    %977 = vector.broadcast %cst_380 : f32 to vector<8x16xf32>
    %978 = arith.addf %976, %977 : vector<8x16xf32>
    %979 = vector.extract_strided_slice %973 {offsets = [0, 16], sizes = [8, 16], strides = [1, 1]} : vector<8x128xf32> to vector<8x16xf32>
    %cst_381 = arith.constant 5.000000e-01 : f32
    %980 = vector.broadcast %cst_381 : f32 to vector<8x16xf32>
    %981 = arith.mulf %980, %979 : vector<8x16xf32>
    %cst_382 = arith.constant 5.000000e-01 : f32
    %982 = vector.broadcast %cst_382 : f32 to vector<8x16xf32>
    %983 = arith.addf %981, %982 : vector<8x16xf32>
    %984 = vector.extract_strided_slice %973 {offsets = [0, 32], sizes = [8, 16], strides = [1, 1]} : vector<8x128xf32> to vector<8x16xf32>
    %985 = vector.extract_strided_slice %973 {offsets = [0, 48], sizes = [8, 16], strides = [1, 1]} : vector<8x128xf32> to vector<8x16xf32>
    %cst_383 = arith.constant 5.000000e-01 : f32
    %986 = vector.broadcast %cst_383 : f32 to vector<8x16xf32>
    %987 = arith.mulf %986, %985 : vector<8x16xf32>
    %cst_384 = arith.constant 5.000000e-01 : f32
    %988 = vector.broadcast %cst_384 : f32 to vector<8x16xf32>
    %989 = arith.addf %987, %988 : vector<8x16xf32>
    %990 = arith.mulf %983, %927 : vector<8x16xf32>
    %991 = arith.mulf %978, %984 : vector<8x16xf32>
    %992 = arith.addf %990, %991 : vector<8x16xf32>
    %993 = math.tanh %992 : vector<8x16xf32>
    %994 = arith.mulf %989, %993 : vector<8x16xf32>
    %995 = arith.index_cast %c6_i32_365 : i32 to index
    %c0_385 = arith.constant 0 : index
    %c0_386 = arith.constant 0 : index
    %996 = vector.load %arg14[%995, %c0_385, %c0_386] : memref<8x8x256xf32, #tpu.memory_space<vmem>>, vector<1x8x16xf32>
    %997 = vector.shape_cast %996 : vector<1x8x16xf32> to vector<8x16xf32>
    %998 = vector.shape_cast %972 : vector<8x16xf32> to vector<1x8x16xf32>
    tpu.vector_store %arg14[%995, %c0_385, %c0_386], %998 {strides = array<i32>} : memref<8x8x256xf32, #tpu.memory_space<vmem>>, vector<1x8x16xf32>,
    %999 = arith.index_cast %938 : i32 to index
    %c0_387 = arith.constant 0 : index
    %c128_388 = arith.constant 128 : index
    %1000 = vector.load %arg14[%999, %c0_387, %c128_388] : memref<8x8x256xf32, #tpu.memory_space<vmem>>, vector<1x8x16xf32>
    %1001 = vector.shape_cast %1000 : vector<1x8x16xf32> to vector<8x16xf32>
    %1002 = vector.shape_cast %994 : vector<8x16xf32> to vector<1x8x16xf32>
    tpu.vector_store %arg14[%999, %c0_387, %c128_388], %1002 {strides = array<i32>} : memref<8x8x256xf32, #tpu.memory_space<vmem>>, vector<1x8x16xf32>,
    %c7_i32_389 = arith.constant 7 : i32
    %c7_i32_390 = arith.constant 7 : i32
    %1003 = arith.subi %c7_i32_390, %c7_i32_389 : i32
    %1004 = arith.index_cast %c7_i32_389 : i32 to index
    %c0_391 = arith.constant 0 : index
    %c0_392 = arith.constant 0 : index
    %1005 = vector.load %arg15[%1004, %c0_391, %c0_392] : memref<8x8x256xf32, #tpu.memory_space<vmem>>, vector<1x8x256xf32>
    %1006 = vector.shape_cast %1005 : vector<1x8x256xf32> to vector<8x256xf32>
    %1007 = vector.extract_strided_slice %1006 {offsets = [0, 0], sizes = [8, 128], strides = [1, 1]} : vector<8x256xf32> to vector<8x128xf32>
    %cst_393 = arith.constant dense<0.000000e+00> : vector<8x128xf32>
    %1008 = tpu.matmul %972, %545, %cst_393 {dimension_numbers = #tpu.dot_dimension_numbers<[1], [0], [0], [1], [0, 0, 1, 1], [], []>} : vector<8x16xf32>, vector<16x128xf32>, vector<8x128xf32> -> vector<8x128xf32>
    %1009 = arith.addf %1007, %1008 : vector<8x128xf32>
    %1010 = arith.index_cast %1003 : i32 to index
    %c0_394 = arith.constant 0 : index
    %c0_395 = arith.constant 0 : index
    %1011 = vector.load %arg15[%1010, %c0_394, %c0_395] : memref<8x8x256xf32, #tpu.memory_space<vmem>>, vector<1x8x256xf32>
    %1012 = vector.shape_cast %1011 : vector<1x8x256xf32> to vector<8x256xf32>
    %1013 = vector.extract_strided_slice %1012 {offsets = [0, 128], sizes = [8, 128], strides = [1, 1]} : vector<8x256xf32> to vector<8x128xf32>
    %cst_396 = arith.constant dense<0.000000e+00> : vector<8x128xf32>
    %1014 = tpu.matmul %994, %546, %cst_396 {dimension_numbers = #tpu.dot_dimension_numbers<[1], [0], [0], [1], [0, 0, 1, 1], [], []>} : vector<8x16xf32>, vector<16x128xf32>, vector<8x128xf32> -> vector<8x128xf32>
    %1015 = arith.addf %1013, %1014 : vector<8x128xf32>
    %1016 = math.tanh %1009 : vector<8x128xf32>
    %1017 = vector.extract_strided_slice %1016 {offsets = [0, 0], sizes = [8, 16], strides = [1, 1]} : vector<8x128xf32> to vector<8x16xf32>
    %cst_397 = arith.constant 5.000000e-01 : f32
    %1018 = vector.broadcast %cst_397 : f32 to vector<8x16xf32>
    %1019 = arith.mulf %1018, %1017 : vector<8x16xf32>
    %cst_398 = arith.constant 5.000000e-01 : f32
    %1020 = vector.broadcast %cst_398 : f32 to vector<8x16xf32>
    %1021 = arith.addf %1019, %1020 : vector<8x16xf32>
    %1022 = vector.extract_strided_slice %1016 {offsets = [0, 16], sizes = [8, 16], strides = [1, 1]} : vector<8x128xf32> to vector<8x16xf32>
    %cst_399 = arith.constant 5.000000e-01 : f32
    %1023 = vector.broadcast %cst_399 : f32 to vector<8x16xf32>
    %1024 = arith.mulf %1023, %1022 : vector<8x16xf32>
    %cst_400 = arith.constant 5.000000e-01 : f32
    %1025 = vector.broadcast %cst_400 : f32 to vector<8x16xf32>
    %1026 = arith.addf %1024, %1025 : vector<8x16xf32>
    %1027 = vector.extract_strided_slice %1016 {offsets = [0, 32], sizes = [8, 16], strides = [1, 1]} : vector<8x128xf32> to vector<8x16xf32>
    %1028 = vector.extract_strided_slice %1016 {offsets = [0, 48], sizes = [8, 16], strides = [1, 1]} : vector<8x128xf32> to vector<8x16xf32>
    %cst_401 = arith.constant 5.000000e-01 : f32
    %1029 = vector.broadcast %cst_401 : f32 to vector<8x16xf32>
    %1030 = arith.mulf %1029, %1028 : vector<8x16xf32>
    %cst_402 = arith.constant 5.000000e-01 : f32
    %1031 = vector.broadcast %cst_402 : f32 to vector<8x16xf32>
    %1032 = arith.addf %1030, %1031 : vector<8x16xf32>
    %1033 = arith.mulf %1026, %970 : vector<8x16xf32>
    %1034 = arith.mulf %1021, %1027 : vector<8x16xf32>
    %1035 = arith.addf %1033, %1034 : vector<8x16xf32>
    %1036 = math.tanh %1035 : vector<8x16xf32>
    %1037 = arith.mulf %1032, %1036 : vector<8x16xf32>
    %1038 = math.tanh %1015 : vector<8x128xf32>
    %1039 = vector.extract_strided_slice %1038 {offsets = [0, 0], sizes = [8, 16], strides = [1, 1]} : vector<8x128xf32> to vector<8x16xf32>
    %cst_403 = arith.constant 5.000000e-01 : f32
    %1040 = vector.broadcast %cst_403 : f32 to vector<8x16xf32>
    %1041 = arith.mulf %1040, %1039 : vector<8x16xf32>
    %cst_404 = arith.constant 5.000000e-01 : f32
    %1042 = vector.broadcast %cst_404 : f32 to vector<8x16xf32>
    %1043 = arith.addf %1041, %1042 : vector<8x16xf32>
    %1044 = vector.extract_strided_slice %1038 {offsets = [0, 16], sizes = [8, 16], strides = [1, 1]} : vector<8x128xf32> to vector<8x16xf32>
    %cst_405 = arith.constant 5.000000e-01 : f32
    %1045 = vector.broadcast %cst_405 : f32 to vector<8x16xf32>
    %1046 = arith.mulf %1045, %1044 : vector<8x16xf32>
    %cst_406 = arith.constant 5.000000e-01 : f32
    %1047 = vector.broadcast %cst_406 : f32 to vector<8x16xf32>
    %1048 = arith.addf %1046, %1047 : vector<8x16xf32>
    %1049 = vector.extract_strided_slice %1038 {offsets = [0, 32], sizes = [8, 16], strides = [1, 1]} : vector<8x128xf32> to vector<8x16xf32>
    %1050 = vector.extract_strided_slice %1038 {offsets = [0, 48], sizes = [8, 16], strides = [1, 1]} : vector<8x128xf32> to vector<8x16xf32>
    %cst_407 = arith.constant 5.000000e-01 : f32
    %1051 = vector.broadcast %cst_407 : f32 to vector<8x16xf32>
    %1052 = arith.mulf %1051, %1050 : vector<8x16xf32>
    %cst_408 = arith.constant 5.000000e-01 : f32
    %1053 = vector.broadcast %cst_408 : f32 to vector<8x16xf32>
    %1054 = arith.addf %1052, %1053 : vector<8x16xf32>
    %1055 = arith.mulf %1048, %992 : vector<8x16xf32>
    %1056 = arith.mulf %1043, %1049 : vector<8x16xf32>
    %1057 = arith.addf %1055, %1056 : vector<8x16xf32>
    %1058 = math.tanh %1057 : vector<8x16xf32>
    %1059 = arith.mulf %1054, %1058 : vector<8x16xf32>
    %1060 = arith.index_cast %c7_i32_389 : i32 to index
    %c0_409 = arith.constant 0 : index
    %c0_410 = arith.constant 0 : index
    %1061 = vector.load %arg14[%1060, %c0_409, %c0_410] : memref<8x8x256xf32, #tpu.memory_space<vmem>>, vector<1x8x16xf32>
    %1062 = vector.shape_cast %1061 : vector<1x8x16xf32> to vector<8x16xf32>
    %1063 = vector.shape_cast %1037 : vector<8x16xf32> to vector<1x8x16xf32>
    tpu.vector_store %arg14[%1060, %c0_409, %c0_410], %1063 {strides = array<i32>} : memref<8x8x256xf32, #tpu.memory_space<vmem>>, vector<1x8x16xf32>,
    %1064 = arith.index_cast %1003 : i32 to index
    %c0_411 = arith.constant 0 : index
    %c128_412 = arith.constant 128 : index
    %1065 = vector.load %arg14[%1064, %c0_411, %c128_412] : memref<8x8x256xf32, #tpu.memory_space<vmem>>, vector<1x8x16xf32>
    %1066 = vector.shape_cast %1065 : vector<1x8x16xf32> to vector<8x16xf32>
    %1067 = vector.shape_cast %1059 : vector<8x16xf32> to vector<1x8x16xf32>
    tpu.vector_store %arg14[%1064, %c0_411, %c128_412], %1067 {strides = array<i32>} : memref<8x8x256xf32, #tpu.memory_space<vmem>>, vector<1x8x16xf32>,
    %c8_i32_413 = arith.constant 8 : i32
    %c0_414 = arith.constant 0 : index
    %c0_415 = arith.constant 0 : index
    %c0_416 = arith.constant 0 : index
    %1068 = vector.load %arg0[%c0_414, %c0_415, %c0_416] : memref<8x8x128xf32, #tpu.memory_space<vmem>>, vector<8x8x128xf32>
    %cst_417 = arith.constant dense<0xFF800000> : vector<8x128xf32>
    %1069 = vector.multi_reduction <maximumf>, %1068, %cst_417 [0] : vector<8x8x128xf32> to vector<8x128xf32>
    %cst_418 = arith.constant 0.000000e+00 : f32
    %1070 = vector.broadcast %cst_418 : f32 to vector<8x128xf32>
    %1071 = arith.maximumf %1069, %1070 : vector<8x128xf32>
    %c0_419 = arith.constant 0 : index
    %c0_420 = arith.constant 0 : index
    %c0_421 = arith.constant 0 : index
    %1072 = vector.load %arg14[%c0_419, %c0_420, %c0_421] : memref<8x8x256xf32, #tpu.memory_space<vmem>>, vector<8x8x256xf32>
    %cst_422 = arith.constant dense<0xFF800000> : vector<8x256xf32>
    %1073 = vector.multi_reduction <maximumf>, %1072, %cst_422 [0] : vector<8x8x256xf32> to vector<8x256xf32>
    %cst_423 = arith.constant 0.000000e+00 : f32
    %1074 = vector.broadcast %cst_423 : f32 to vector<8x256xf32>
    %1075 = arith.maximumf %1073, %1074 : vector<8x256xf32>
    %c0_424 = arith.constant 0 : index
    %c0_425 = arith.constant 0 : index
    %1076 = vector.load %arg9[%c0_424, %c0_425] : memref<128x128xf32, #tpu.memory_space<vmem>>, vector<128x128xf32>
    %cst_426 = arith.constant dense<0.000000e+00> : vector<8x128xf32>
    %1077 = tpu.matmul %1071, %1076, %cst_426 {dimension_numbers = #tpu.dot_dimension_numbers<[1], [0], [0], [1], [0, 0, 1, 1], [], []>} : vector<8x128xf32>, vector<128x128xf32>, vector<8x128xf32> -> vector<8x128xf32>
    %c0_427 = arith.constant 0 : index
    %c0_428 = arith.constant 0 : index
    %1078 = vector.load %arg10[%c0_427, %c0_428] : memref<256x128xf32, #tpu.memory_space<vmem>>, vector<256x128xf32>
    %cst_429 = arith.constant dense<0.000000e+00> : vector<8x128xf32>
    %1079 = tpu.matmul %1075, %1078, %cst_429 {dimension_numbers = #tpu.dot_dimension_numbers<[1], [0], [0], [1], [0, 0, 1, 1], [], []>} : vector<8x256xf32>, vector<256x128xf32>, vector<8x128xf32> -> vector<8x128xf32>
    %1080 = arith.addf %1077, %1079 : vector<8x128xf32>
    %c0_430 = arith.constant 0 : index
    %c0_431 = arith.constant 0 : index
    %1081 = vector.load %arg11[%c0_430, %c0_431] : memref<1x128xf32, #tpu.memory_space<vmem>>, vector<1x128xf32>
    %1082 = vector.broadcast %1081 : vector<1x128xf32> to vector<8x128xf32>
    %1083 = arith.addf %1080, %1082 : vector<8x128xf32>
    %c0_432 = arith.constant 0 : index
    %c0_433 = arith.constant 0 : index
    %1084 = vector.load %arg12[%c0_432, %c0_433] : memref<8x128xf32, #tpu.memory_space<vmem>>, vector<8x128xf32>
    tpu.vector_store %arg12[%c0_432, %c0_433], %1083 {strides = array<i32>} : memref<8x128xf32, #tpu.memory_space<vmem>>, vector<8x128xf32>,
    return
  }
}

</mosaic_0001>

<bundles_post_ra>
// kernel: tpu_custom_call.1
= control target key start
LH: loop header
LB: loop body
LE: loop exit
PB: predicated region body
PF: predicated region fallthrough
CT: control target
= control target key end

     0   :  { %17 = vsyncpa [#allocation6], 0  ;;  %s3447_s0 = inlined_call_operand.hbm [shape: f32[8,8,128], index: 0, kind: input, shape index: {}]   ;;  %s3448_s1 = inlined_call_operand.hbm [shape: f32[128,256], index: 1, kind: input, shape index: {}]   ;;  %s3449_s2 = inlined_call_operand.hbm [shape: f32[16,128], index: 2, kind: input, shape index: {}]   ;;  %s3450_s3 = inlined_call_operand.hbm [shape: f32[16,128], index: 3, kind: input, shape index: {}]   ;;  %s3451_s4 = inlined_call_operand.vmem [shape: f32[1,256], index: 4, kind: input, shape index: {}]   ;;  %s3452_s5 = inlined_call_operand.hbm [shape: f32[256,256], index: 5, kind: input, shape index: {}]   ;;  %s3453_s6 = inlined_call_operand.hbm [shape: f32[16,128], index: 6, kind: input, shape index: {}]   ;;  %s3454_s7 = inlined_call_operand.hbm [shape: f32[16,128], index: 7, kind: input, shape index: {}]   ;;  %s3455_s8 = inlined_call_operand.vmem [shape: f32[1,256], index: 8, kind: input, shape index: {}]   ;;  %s3456_s9 = inlined_call_operand.hbm [shape: f32[128,128], index: 9, kind: input, shape index: {}]   ;;  %s3457_s10 = inlined_call_operand.hbm [shape: f32[256,128], index: 10, kind: input, shape index: {}]   ;;  %s3458_s11 = inlined_call_operand.vmem [shape: f32[1,128], index: 11, kind: input, shape index: {}]   ;;  %s3459_s12 = inlined_call_operand.hbm [shape: f32[8,128], index: 12, kind: output, shape index: {}]  }
   0x1   :  { %18 = vsyncpa [#allocation9], 0 }
   0x2   :  { %19 = vsyncpa [#allocation12], 0 }
   0x3   :  { %20 = vsyncpa [#allocation15], 0 }
   0x4   :  { %21 = vsyncpa [#allocation18], 0  ;;  %s40_s23 = sshll.u32 %s3448_s1, 4  ;;  %s41_s23 = int_to_ptr.hbm [resolvable:$true] %s40_s23 }
   0x5   :  { %22 = vsyncpa [#allocation7], 0  ;;  %s2828_s24 = smov [#allocation8]   ;;  %s2829_s26 = smov 256  }
   0x6   :  { %s42_s25 = sshll.u32 %s2828_s24, 4  ;;  %s2830_s27 = smov 16   ;;  %s43_s25 = int_to_ptr.vmem [resolvable:$true] %s42_s25 }
   0x7   :  { %48 = dma.hbm_to_vmem [thread:$0]  %s41_s23, 4096, %s43_s25, [#allocation9], %s2829_s26, %s2829_s26, %s2830_s27  }
   0x8   :  { %s66_s30 = sshll.u32 %s3450_s3, 4  ;;  %s2831_s13 = smov [#allocation11]   ;;  %s67_s30 = int_to_ptr.hbm [resolvable:$true] %s66_s30 }
   0x9   :  { %s68_s14 = sshll.u32 %s2831_s13, 4  ;;  %s94_s16 = sshll.u32 %s3453_s6, 4  ;;  %s69_s14 = int_to_ptr.vmem [resolvable:$true] %s68_s14  ;;  %s95_s16 = int_to_ptr.hbm [resolvable:$true] %s94_s16 }
   0xa   :  { %s2832_s17 = smov 128   ;;  %s2833_s18 = smov 8  }
   0xb   :  { %74 = dma.hbm_to_vmem [thread:$0]  %s67_s30, 256, %s69_s14, [#allocation12], %s2832_s17, %s2832_s17, %s2833_s18  }
   0xc   :  { %s122_s21 = sshll.u32 %s3456_s9, 4  ;;  %s2834_s3 = smov [#allocation14]   ;;  %s123_s21 = int_to_ptr.hbm [resolvable:$true] %s122_s21 }
   0xd   :  { %s96_s22 = sshll.u32 %s2834_s3, 4  ;;  %s2835_s6 = smov [#allocation17]   ;;  %s97_s22 = int_to_ptr.vmem [resolvable:$true] %s96_s22 }
   0xe   :  { %102 = dma.hbm_to_vmem [thread:$0]  %s95_s16, 256, %s97_s22, [#allocation15], %s2832_s17, %s2832_s17, %s2833_s18  }
   0xf   :  { %s124_s23 = sshll.u32 %s2835_s6, 4  ;;  %s27_s28 = sshll.u32 %s3447_s0, 4  ;;  %s125_s23 = int_to_ptr.vmem [resolvable:$true] %s124_s23  ;;  %s28_s28 = int_to_ptr.hbm [resolvable:$true] %s27_s28 }
  0x10   :  { %130 = dma.hbm_to_vmem [thread:$0]  %s123_s21, 2048, %s125_s23, [#allocation18], %s2832_s17, %s2832_s17, %s2833_s18  }
  0x11   :  { %s53_s30 = sshll.u32 %s3449_s2, 4  ;;  %s2836_s13 = smov [#allocation5]   ;;  %s54_s30 = int_to_ptr.hbm [resolvable:$true] %s53_s30 }
  0x12   :  { %s29_s14 = sshll.u32 %s2836_s13, 4  ;;  %s2837_s15 = smov [#allocation10]   ;;  %s30_s14 = int_to_ptr.vmem [resolvable:$true] %s29_s14 }
  0x13   :  { %35 = dma.hbm_to_vmem [thread:$0]  %s28_s28, 1024, %s30_s14, [#allocation6], %s2832_s17, %s2832_s17, %s2833_s18  }
  0x14   :  { %s55_s0 = sshll.u32 %s2837_s15, 4  ;;  %s81_s19 = sshll.u32 %s3452_s5, 4  ;;  %s56_s0 = int_to_ptr.vmem [resolvable:$true] %s55_s0  ;;  %s82_s19 = int_to_ptr.hbm [resolvable:$true] %s81_s19 }
  0x15   :  { %61 = dma.hbm_to_vmem [thread:$0]  %s54_s30, 256, %s56_s0, [#allocation9], %s2832_s17, %s2832_s17, %s2833_s18  }
  0x16   :  { %s107_s21 = sshll.u32 %s3454_s7, 4  ;;  %s2838_s3 = smov [#allocation13]   ;;  %s108_s21 = int_to_ptr.hbm [resolvable:$true] %s107_s21 }
  0x17   :  { %s83_s22 = sshll.u32 %s2838_s3, 4  ;;  %s2839_s6 = smov [#allocation16]   ;;  %s84_s22 = int_to_ptr.vmem [resolvable:$true] %s83_s22 }
  0x18   :  { %89 = dma.hbm_to_vmem [thread:$0]  %s82_s19, 8192, %s84_s22, [#allocation12], %s2829_s26, %s2829_s26, %s2830_s27  }
  0x19   :  { %s109_s5 = sshll.u32 %s2839_s6, 4  ;;  %s135_s25 = sshll.u32 %s3457_s10, 4  ;;  %s110_s5 = int_to_ptr.vmem [resolvable:$true] %s109_s5  ;;  %s136_s25 = int_to_ptr.hbm [resolvable:$true] %s135_s25 }
  0x1a   :  { %115 = dma.hbm_to_vmem [thread:$0]  %s108_s21, 256, %s110_s5, [#allocation15], %s2832_s17, %s2832_s17, %s2833_s18  }
  0x1b   :  { %s2840_s7 = smov [#allocation19]  }
  0x1c   :  { %s137_s28 = sshll.u32 %s2840_s7, 4  ;;  %s138_s28 = int_to_ptr.vmem [resolvable:$true] %s137_s28 }
  0x1d   :  { %143 = dma.hbm_to_vmem [thread:$0]  %s136_s25, 4096, %s138_s28, [#allocation18], %s2832_s17, %s2832_s17, %s2833_s18  }
  0x1e   :  { %2816 = dma.done.wait [#allocation6], 1024  }
  0x1f   :  { %2817 = vsyncadd [#allocation6], 4294966272 }
  0x20   :  { %2818 = dma.done.wait [#allocation9], 4352  }
  0x21   :  { %2819 = vsyncadd [#allocation9], 4294962944 }
  0x22   :  { %2820 = dma.done.wait [#allocation12], 8448  }
  0x23   :  { %2821 = vsyncadd [#allocation12], 4294958848 }
  0x24   :  { %2822 = dma.done.wait [#allocation15], 512  }
  0x25   :  { %2823 = vsyncadd [#allocation15], 4294966784 }
  0x26   :  { %2824 = dma.done.wait [#allocation18], 6144  }
  0x27   :  { %2825 = vsyncadd [#allocation18], 4294961152  ;;  %v2841_v0 = vmov 0.0   ;;  %v252_v1 = vld [vmem:[#allocation8 + $0xf0] sm:$0xff]  ;;  %v253_v2 = vld [vmem:[#allocation8 + $0xf8] sm:$0xff]  ;;  %s2842_s17 = smov 96  }
  0x28   :  { %182 = vst [vmem:[#allocation2] sm:$0xff] %v2841_v0  ;;  %v250_v3 = vld [vmem:[#allocation8 + $0xe0] sm:$0xff]  ;;  %260 = vmatpush.msra.mxu0 %v252_v1  ;;  %301 = vmatpush.msra.mxu1 %v253_v2  ;;  %v251_v4 = vld [vmem:[#allocation8 + $0xe8] sm:$0xff]  ;;  %v248_v5 = vld [vmem:[#allocation8 + $0xd0] sm:$0xff]  ;;  %s2844_s18 = smov 80   ;;  %vm363_vm0 = vcmask 130048  }
  0x29   :  { %183 = vst [vmem:[#allocation2 + $0x8] sm:$0xff] %v2841_v0  ;;  %v249_v6 = vld [vmem:[#allocation8 + $0xd8] sm:$0xff]  ;;  %v246_v7 = vld [vmem:[#allocation8 + $0xc0] sm:$0xff]  ;;  %v247_v8 = vld [vmem:[#allocation8 + $0xc8] sm:$0xff]  ;;  %s2845_s30 = smov [#allocation20]   ;;  %s2386_s0 = sshll.u32 %s3459_s12, 4  ;;  %s2387_s0 = int_to_ptr.hbm [resolvable:$true] %s2386_s0 }
  0x2a   :  { %184 = vst [vmem:[#allocation2 + $0x10] sm:$0xff] %v2841_v0  ;;  %261 = vmatpush.msra.mxu0 %v250_v3  ;;  %302 = vmatpush.msra.mxu1 %v251_v4  ;;  %v244_v9 = vld [vmem:[#allocation8 + $0xb0] sm:$0xff]  ;;  %v245_v10 = vld [vmem:[#allocation8 + $0xb8] sm:$0xff]  ;;  %v242_v11 = vld [vmem:[#allocation8 + $0xa0] sm:$0xff]  ;;  %s2384_s13 = sshll.u32 %s2845_s30, 4  ;;  %s2385_s13 = int_to_ptr.vmem [resolvable:$true] %s2384_s13 }
  0x2b   :  { %185 = vst [vmem:[#allocation2 + $0x18] sm:$0xff] %v2841_v0  ;;  %v243_v12 = vld [vmem:[#allocation8 + $0xa8] sm:$0xff]  ;;  %v2980_v14 = vld [vmem:[#allocation10] sm:$0xff]  ;;  %v240_v15 = vld [vmem:[#allocation8 + $0x90] sm:$0xff] }
  0x2c   :  { %186 = vst [vmem:[#allocation2 + $0x20] sm:$0xff] %v2841_v0  ;;  %262 = vmatpush.msra.mxu0 %v248_v5  ;;  %303 = vmatpush.msra.mxu1 %v249_v6  ;;  %v2977_v13 = vld [vmem:[#allocation10 + $0x8] sm:$0xff]  ;;  %v241_v16 = vld [vmem:[#allocation8 + $0x98] sm:$0xff]  ;;  %v238_v17 = vld [vmem:[#allocation8 + $0x80] sm:$0xff] }
  0x2d   :  { %187 = vst [vmem:[#allocation2 + $0x28] sm:$0xff] %v2841_v0  ;;  %381 = vmatpush.msra.mxu2 %v2977_v13  ;;  %v239_v18 = vld [vmem:[#allocation8 + $0x88] sm:$0xff]  ;;  %v236_v19 = vld [vmem:[#allocation8 + $0x70] sm:$0xff]  ;;  %v237_v20 = vld [vmem:[#allocation8 + $0x78] sm:$0xff] }
  0x2e   :  { %188 = vst [vmem:[#allocation2 + $0x30] sm:$0xff] %v2841_v0  ;;  %263 = vmatpush.msra.mxu0 %v246_v7  ;;  %304 = vmatpush.msra.mxu1 %v247_v8  ;;  %v234_v21 = vld [vmem:[#allocation8 + $0x60] sm:$0xff]  ;;  %v235_v22 = vld [vmem:[#allocation8 + $0x68] sm:$0xff]  ;;  %v232_v23 = vld [vmem:[#allocation8 + $0x50] sm:$0xff] }
  0x2f   :  { %189 = vst [vmem:[#allocation2 + $0x38] sm:$0xff] %v2841_v0  ;;  %382 = vmatpush.msra.mxu2 %v2980_v14  ;;  %v233_v24 = vld [vmem:[#allocation8 + $0x58] sm:$0xff]  ;;  %v230_v25 = vld [vmem:[#allocation8 + $0x40] sm:$0xff]  ;;  %v231_v26 = vld [vmem:[#allocation8 + $0x48] sm:$0xff] }
  0x30   :  { %190 = vst [vmem:[#allocation2 + $0x40] sm:$0xff] %v2841_v0  ;;  %264 = vmatpush.msra.mxu0 %v244_v9  ;;  %305 = vmatpush.msra.mxu1 %v245_v10  ;;  %v228_v27 = vld [vmem:[#allocation8 + $0x30] sm:$0xff]  ;;  %v229_v28 = vld [vmem:[#allocation8 + $0x38] sm:$0xff]  ;;  %v226_v29 = vld [vmem:[#allocation8 + $0x20] sm:$0xff] }
  0x31   :  { %191 = vst [vmem:[#allocation2 + $0x48] sm:$0xff] %v2841_v0  ;;  %383 = vmatmul.f32.vlgmr.msra.gmra.mxu2 %v2841_v0  ;;  %v227_v30 = vld [vmem:[#allocation8 + $0x28] sm:$0xff]  ;;  %v224_v31 = vld [vmem:[#allocation8 + $0x10] sm:$0xff]  ;;  %v225_v32 = vld [vmem:[#allocation8 + $0x18] sm:$0xff] }
  0x32   :  { %192 = vst [vmem:[#allocation2 + $0x50] sm:$0xff] %v2841_v0  ;;  %265 = vmatpush.msra.mxu0 %v242_v11  ;;  %306 = vmatpush.msra.mxu1 %v243_v12  ;;  %v222_v33 = vld [vmem:[#allocation8] sm:$0xff]  ;;  %v223_v34 = vld [vmem:[#allocation8 + $0x8] sm:$0xff]  ;;  %v216_v37 = vld [vmem:[#allocation5 + $0x10] sm:$0xff] }
  0x33   :  { %193 = vst [vmem:[#allocation2 + $0x58] sm:$0xff] %v2841_v0  ;;  %480 = vmatpush.msrb.mxu2 %v2977_v13  ;;  %v214_v35 = vld [vmem:[#allocation5] sm:$0xff]  ;;  %v215_v36 = vld [vmem:[#allocation5 + $0x8] sm:$0xff]  ;;  %v3008_v38 = vld [vmem:[#allocation11 + $0x8] sm:$0xff] }
  0x34   :  { %194 = vst [vmem:[#allocation2 + $0x60] sm:$0xff] %v2841_v0  ;;  %266 = vmatpush.msra.mxu0 %v240_v15  ;;  %307 = vmatpush.msra.mxu1 %v241_v16  ;;  %v3010_v39 = vld [vmem:[#allocation11] sm:$0xff]  ;;  %v217_v40 = vld [vmem:[#allocation5 + $0x18] sm:$0xff]  ;;  %v218_v41 = vld [vmem:[#allocation5 + $0x20] sm:$0xff] }
  0x35   :  { %195 = vst [vmem:[#allocation2 + $0x68] sm:$0xff] %v2841_v0  ;;  %481 = vmatpush.msrb.mxu2 %v2980_v14  ;;  %404 = vmatpush.msra.mxu3 %v3008_v38  ;;  %v219_v42 = vld [vmem:[#allocation5 + $0x28] sm:$0xff]  ;;  %v220_v43 = vld [vmem:[#allocation5 + $0x30] sm:$0xff]  ;;  %v221_v44 = vld [vmem:[#allocation5 + $0x38] sm:$0xff] }
  0x36   :  { %196 = vst [vmem:[#allocation2 + $0x70] sm:$0xff] %v2841_v0  ;;  %267 = vmatpush.msra.mxu0 %v238_v17  ;;  %308 = vmatpush.msra.mxu1 %v239_v18  ;;  %v254_v45 = vld [vmem:[%s3451_s4] sm:$0x3]  ;;  %s2843_s4 = smov 32  }
  0x37   :  { %197 = vst [vmem:[#allocation2 + $0x78] sm:$0xff] %v2841_v0  ;;  %582 = vmatpush.msra.mxu2 %v2977_v13  ;;  %405 = vmatpush.msra.mxu3 %v3010_v39  ;;  %v3022_v46 = vperm.slane %v254_v45, 0  ;;  %v257_v47 = vperm.slane %v254_v45, 1  ;;  %v1181_v45 = vld [vmem:[#allocation13 + $0x28] sm:$0xff] }
  0x38   :  { %198 = vst [vmem:[#allocation3] sm:$0xff] %v2841_v0  ;;  %268 = vmatpush.msra.mxu0 %v236_v19  ;;  %309 = vmatpush.msra.mxu1 %v237_v20 }
  0x39   :  { %199 = vst [vmem:[#allocation3 + $0x8] sm:$0xff] %v2841_v0  ;;  %583 = vmatpush.msra.mxu2 %v2980_v14  ;;  %406 = vmatmul.f32.vlgmr.msra.gmra.mxu3 %v2841_v0 }
  0x3a   :  { %200 = vst [vmem:[#allocation3 + $0x10] sm:$0xff] %v2841_v0  ;;  %269 = vmatpush.msra.mxu0 %v234_v21  ;;  %310 = vmatpush.msra.mxu1 %v235_v22 }
  0x3b   :  { %201 = vst [vmem:[#allocation3 + $0x18] sm:$0xff] %v2841_v0  ;;  %505 = vmatpush.msrb.mxu3 %v3008_v38 }
  0x3c   :  { %202 = vst [vmem:[#allocation3 + $0x20] sm:$0xff] %v2841_v0  ;;  %270 = vmatpush.msra.mxu0 %v232_v23  ;;  %311 = vmatpush.msra.mxu1 %v233_v24 }
  0x3d   :  { %203 = vst [vmem:[#allocation3 + $0x28] sm:$0xff] %v2841_v0  ;;  %506 = vmatpush.msrb.mxu3 %v3010_v39 }
  0x3e   :  { %204 = vst [vmem:[#allocation3 + $0x30] sm:$0xff] %v2841_v0  ;;  %271 = vmatpush.msra.mxu0 %v230_v25  ;;  %312 = vmatpush.msra.mxu1 %v231_v26 }
  0x3f   :  { %205 = vst [vmem:[#allocation3 + $0x38] sm:$0xff] %v2841_v0  ;;  %607 = vmatpush.msra.mxu3 %v3008_v38 }
  0x40   :  { %206 = vst [vmem:[#allocation3 + $0x40] sm:$0xff] %v2841_v0  ;;  %272 = vmatpush.msra.mxu0 %v228_v27  ;;  %313 = vmatpush.msra.mxu1 %v229_v28  ;;  %v1207_v28 = vld [vmem:[#allocation13 + $0xf8] sm:$0xff] }
  0x41   :  { %207 = vst [vmem:[#allocation3 + $0x48] sm:$0xff] %v2841_v0  ;;  %608 = vmatpush.msra.mxu3 %v3010_v39 }
  0x42   :  { %208 = vst [vmem:[#allocation3 + $0x50] sm:$0xff] %v2841_v0  ;;  %273 = vmatpush.msra.mxu0 %v226_v29  ;;  %314 = vmatpush.msra.mxu1 %v227_v30  ;;  %v1205_v29 = vld [vmem:[#allocation13 + $0xe8] sm:$0xff]  ;;  %v1203_v30 = vld [vmem:[#allocation13 + $0xd8] sm:$0xff] }
  0x43   :  { %209 = vst [vmem:[#allocation3 + $0x58] sm:$0xff] %v2841_v0 }
  0x44   :  { %210 = vst [vmem:[#allocation3 + $0x60] sm:$0xff] %v2841_v0  ;;  %274 = vmatpush.msra.mxu0 %v224_v31  ;;  %315 = vmatpush.msra.mxu1 %v225_v32  ;;  %v1201_v31 = vld [vmem:[#allocation13 + $0xc8] sm:$0xff]  ;;  %v1199_v32 = vld [vmem:[#allocation13 + $0xb8] sm:$0xff] }
  0x45   :  { %211 = vst [vmem:[#allocation3 + $0x68] sm:$0xff] %v2841_v0 }
  0x46   :  { %212 = vst [vmem:[#allocation3 + $0x70] sm:$0xff] %v2841_v0  ;;  %275 = vmatpush.msra.mxu0 %v222_v33  ;;  %316 = vmatpush.msra.mxu1 %v223_v34  ;;  %v1197_v33 = vld [vmem:[#allocation13 + $0xa8] sm:$0xff]  ;;  %v1195_v34 = vld [vmem:[#allocation13 + $0x98] sm:$0xff] }
  0x47   :  { %213 = vst [vmem:[#allocation3 + $0x78] sm:$0xff] %v2841_v0  ;;  %276 = vmatmul.f32.vlgmr.msra.gmra.mxu0 %v214_v35  ;;  %317 = vmatmul.f32.vlgmr.msra.gmra.mxu1 %v214_v35  ;;  %v1193_v35 = vld [vmem:[#allocation13 + $0x88] sm:$0xff] }
  0x48   :  { %1328 = vmatpush.msrb.mxu0 %v1207_v28 }
  0x4a   :  { %1329 = vmatpush.msrb.mxu0 %v1205_v29 }
  0x4c   :  { %1330 = vmatpush.msrb.mxu0 %v1203_v30 }
  0x4e   :  { %1331 = vmatpush.msrb.mxu0 %v1201_v31 }
  0x4f   :  { %320 = vmatmul.f32.gmra.mxu1 %v215_v36  ;;  %279 = vmatmul.f32.gmra.mxu0 %v215_v36  ;;  %v1191_v36 = vld [vmem:[#allocation13 + $0x78] sm:$0xff] }
  0x50   :  { %1332 = vmatpush.msrb.mxu0 %v1199_v32 }
  0x52   :  { %1333 = vmatpush.msrb.mxu0 %v1197_v33 }
  0x54   :  { %1334 = vmatpush.msrb.mxu0 %v1195_v34 }
  0x56   :  { %1335 = vmatpush.msrb.mxu0 %v1193_v35 }
  0x57   :  { %323 = vmatmul.f32.gmra.mxu1 %v216_v37  ;;  %282 = vmatmul.f32.gmra.mxu0 %v216_v37  ;;  %v1189_v37 = vld [vmem:[#allocation13 + $0x68] sm:$0xff] }
  0x58   :  { %1336 = vmatpush.msrb.mxu0 %v1191_v36 }
  0x5a   :  { %1337 = vmatpush.msrb.mxu0 %v1189_v37 }
  0x5f   :  { %326 = vmatmul.f32.gmra.mxu1 %v217_v40  ;;  %285 = vmatmul.f32.gmra.mxu0 %v217_v40  ;;  %v1187_v40 = vld [vmem:[#allocation13 + $0x58] sm:$0xff] }
  0x60   :  { %1338 = vmatpush.msrb.mxu0 %v1187_v40 }
  0x67   :  { %329 = vmatmul.f32.gmra.mxu1 %v218_v41  ;;  %288 = vmatmul.f32.gmra.mxu0 %v218_v41  ;;  %v1185_v41 = vld [vmem:[#allocation13 + $0x48] sm:$0xff] }
  0x68   :  { %1339 = vmatpush.msrb.mxu0 %v1185_v41 }
  0x6f   :  { %332 = vmatmul.f32.gmra.mxu1 %v219_v42  ;;  %291 = vmatmul.f32.gmra.mxu0 %v219_v42 }
  0x77   :  { %335 = vmatmul.f32.gmra.mxu1 %v220_v43  ;;  %294 = vmatmul.f32.gmra.mxu0 %v220_v43 }
  0x7f   :  { %338 = vmatmul.f32.gmra.mxu1 %v221_v44  ;;  %297 = vmatmul.f32.gmra.mxu0 %v221_v44  ;;  %v1183_v44 = vld [vmem:[#allocation13 + $0x38] sm:$0xff] }
  0x80   :  { %1340 = vmatpush.msrb.mxu0 %v1183_v44 }
  0x82   :  { %1341 = vmatpush.msrb.mxu0 %v1181_v45 }
  0xb4   :  { %v384_v48 = vpop.f32.mrf.mxu2 }
  0xbc   :  { %v407_v4 = vpop.f32.mrf.mxu3 }
  0xc4   :  { %v277_v49 = vpop.f32.mrf.mxu0  ;;  %v318_v50 = vpop.f32.mrf.mxu1 }
  0xc5   :  { %v278_v51 = vadd.f32 %v277_v49, %v3022_v46  ;;  %v3025_v52 = vadd.f32 %v318_v50, %v257_v47 }
  0xc7   :  { %v387_v53 = vadd.f32 %v384_v48, %v278_v51  ;;  %v1177_v48 = vld [vmem:[#allocation13 + $0x8] sm:$0xff] }
  0xc9   :  { %2447 = vtanh.f32 %v387_v53 }
  0xcc   :  { %v321_v54 = vpop.f32.mrf.mxu1  ;;  %v280_v53 = vpop.f32.mrf.mxu0 }
  0xcd   :  { %v3027_v55 = vadd.f32 %v321_v54, %v257_v47  ;;  %v281_v54 = vadd.f32 %v280_v53, %v3022_v46 }
  0xcf   :  { %v2448_v56 = vpop.eup %2447 }
  0xd0   :  { %416 = vrot.lane.b32.xlu1 %v2448_v56, %s2842_s17  ;;  %v412_v8 = vmul.f32 0.5, %v2448_v56 }
  0xd2   :  { %v413_v9 = vadd.f32 0.5, %v412_v8 }
  0xd4   :  { %v324_v57 = vpop.f32.mrf.mxu1  ;;  %v414_v18 = vmul.f32 0.0, %v413_v9  ;;  %v283_v29 = vpop.f32.mrf.mxu0 }
  0xd5   :  { %v3030_v58 = vadd.f32 %v324_v57, %v257_v47  ;;  %v284_v30 = vadd.f32 %v283_v29, %v3022_v46 }
  0xdc   :  { %v327_v59 = vpop.f32.mrf.mxu1 }
  0xdd   :  { %v3032_v60 = vadd.f32 %v327_v59, %v257_v47 }
  0xe4   :  { %v330_v61 = vpop.f32.mrf.mxu1 }
  0xe5   :  { %v3034_v62 = vadd.f32 %v330_v61, %v257_v47 }
  0xec   :  { %v333_v63 = vpop.f32.mrf.mxu1 }
  0xed   :  { %v3036_v0 = vadd.f32 %v333_v63, %v257_v47 }
  0xf4   :  { %v336_v1 = vpop.f32.mrf.mxu1 }
  0xf5   :  { %v3038_v2 = vadd.f32 %v336_v1, %v257_v47 }
  0xfc   :  { %v339_v3 = vpop.f32.mrf.mxu1 }
  0xfd   :  { %v340_v5 = vadd.f32 %v339_v3, %v257_v47  ;;  %v1179_v47 = vld [vmem:[#allocation13 + $0x18] sm:$0xff] }
  0xfe   :  { %1342 = vmatpush.msrb.mxu0 %v1179_v47 }
  0xff   :  { %v410_v6 = vadd.f32 %v407_v4, %v340_v5 }
 0x100   :  { %1343 = vmatpush.msrb.mxu0 %v1177_v48 }
 0x101   :  { %2449 = vtanh.f32 %v410_v6 }
 0x107   :  { %v2450_v7 = vpop.eup %2449 }
 0x108   :  { %436 = vrot.lane.b32.xlu0 %v2450_v7, %s2842_s17  ;;  %v432_v12 = vmul.f32 0.5, %v2450_v7 }
 0x10a   :  { %v433_v15 = vadd.f32 0.5, %v432_v12 }
 0x10c   :  { %v434_v22 = vmul.f32 0.0, %v433_v15 }
 0x142   :  { %v417_v10 = vpop.permute.xlu1 %416 }
 0x143   :  { %v419_v11 = vmul.f32 %v417_v10, %v413_v9 }
 0x145   :  { %421 = vrot.lane.b32.xlu2 %v419_v11, %s2830_s27 }
 0x17a   :  { %v437_v16 = vpop.permute.xlu0 %436 }
 0x17b   :  { %v439_v17 = vmul.f32 %v437_v16, %v433_v15 }
 0x17d   :  { %441 = vrot.lane.b32.xlu0 %v439_v17, %s2830_s27 }
 0x19f   :  { %v422_v19 = vpop.permute.xlu2 %421 }
 0x1a0   :  { %v3043_v20 = vadd.f32 %v422_v19, %v414_v18 }
 0x1a2   :  { %2451 = vtanh.f32 %v3043_v20 }
 0x1a8   :  { %v2452_v21 = vpop.eup %2451 }
 0x1a9   :  { %427 = vrot.lane.b32.xlu0 %v2452_v21, %s2843_s4 }
 0x1ef   :  { %v442_v23 = vpop.permute.xlu0 %441 }
 0x1f0   :  { %v3047_v24 = vadd.f32 %v442_v23, %v434_v22 }
 0x1f2   :  { %2453 = vtanh.f32 %v3047_v24 }
 0x1f8   :  { %v2454_v25 = vpop.eup %2453 }
 0x1f9   :  { %447 = vrot.lane.b32.xlu1 %v2454_v25, %s2843_s4 }
 0x21b   :  { %v428_v26 = vpop.permute.xlu0 %427 }
 0x21c   :  { %v430_v27 = vmul.f32 %v428_v26, %v413_v9 }
 0x21e   :  { %452 = vrot.lane.b32.xlu1 %v430_v27, %s2844_s18 }
 0x26b   :  { %v448_v42 = vpop.permute.xlu1 %447 }
 0x26c   :  { %v450_v43 = vmul.f32 %v448_v42, %v433_v15 }
 0x26e   :  { %457 = vrot.lane.b32.xlu2 %v450_v43, %s2844_s18 }
 0x290   :  { %v453_v49 = vpop.permute.xlu1 %452 }
 0x291   :  { %455 = vst.msk [vmem:[#allocation2] sm:$0xff] %vm363_vm0, %v453_v49  ;;  %2400 = vmatmul.msk.f32.vlgmr.msrb.gmra.mxu2 %vm363_vm0, %v453_v49 }
 0x292   :  { %684 = vmatpush.msrb.mxu2 %v2977_v13 }
 0x294   :  { %685 = vmatpush.msrb.mxu2 %v2980_v14 }
 0x298   :  { %v3057_v50 = vld [vmem:[#allocation2] sm:$0xff] }
 0x299   :  { %1344 = vmatmul.f32.vlgmr.msrb.gmra.mxu0 %v3057_v50 }
 0x2c8   :  { %v458_v51 = vpop.permute.xlu2 %457 }
 0x2c9   :  { %461 = vst.msk [vmem:[#allocation2 + $0x78] sm:$0xff] %vm363_vm0, %v458_v51  ;;  %2401 = vmatmul.msk.f32.vlgmr.msrb.gmra.mxu3 %vm363_vm0, %v458_v51 }
 0x2ca   :  { %709 = vmatpush.msrb.mxu3 %v3008_v38 }
 0x2cc   :  { %710 = vmatpush.msrb.mxu3 %v3010_v39 }
 0x314   :  { %v483_v56 = vpop.f32.mrf.mxu2 }
 0x315   :  { %v486_v57 = vadd.f32 %v483_v56, %v281_v54 }
 0x317   :  { %2455 = vtanh.f32 %v486_v57 }
 0x31d   :  { %v2456_v59 = vpop.eup %2455 }
 0x31e   :  { %517 = vrot.lane.b32.xlu1 %v2456_v59, %s2842_s17  ;;  %v513_v7 = vmul.f32 0.5, %v2456_v59 }
 0x320   :  { %v514_v9 = vadd.f32 0.5, %v513_v7 }
 0x322   :  { %v515_v15 = vmul.f32 %v514_v9, %v3043_v20 }
 0x34c   :  { %v508_v61 = vpop.f32.mrf.mxu3 }
 0x34d   :  { %v511_v63 = vadd.f32 %v508_v61, %v3038_v2 }
 0x34f   :  { %2457 = vtanh.f32 %v511_v63 }
 0x355   :  { %v2458_v1 = vpop.eup %2457 }
 0x356   :  { %537 = vrot.lane.b32.xlu2 %v2458_v1, %s2842_s17  ;;  %v533_v3 = vmul.f32 0.5, %v2458_v1 }
 0x358   :  { %v534_v4 = vadd.f32 0.5, %v533_v3 }
 0x35a   :  { %v535_v11 = vmul.f32 %v534_v4, %v3047_v24 }
 0x390   :  { %v518_v8 = vpop.permute.xlu1 %517 }
 0x391   :  { %v520_v10 = vmul.f32 %v518_v8, %v514_v9 }
 0x3b0   :  { %v538_v5 = vpop.permute.xlu2 %537 }
 0x3b1   :  { %v540_v6 = vmul.f32 %v538_v5, %v534_v4 }
 0x3b3   :  { %542 = vrot.lane.b32.xlu0 %v540_v6, %s2830_s27 }
 0x3bb   :  { %522 = vrot.lane.b32.xlu0 %v520_v10, %s2830_s27 }
 0x425   :  { %v543_v12 = vpop.permute.xlu0 %542 }
 0x426   :  { %v545_v2 = vadd.f32 %v543_v12, %v535_v11 }
 0x428   :  { %2459 = vtanh.f32 %v545_v2 }
 0x42d   :  { %v523_v16 = vpop.permute.xlu0 %522 }
 0x42e   :  { %v2460_v17 = vpop.eup %2459  ;;  %v525_v18 = vadd.f32 %v523_v16, %v515_v15 }
 0x42f   :  { %548 = vrot.lane.b32.xlu2 %v2460_v17, %s2843_s4 }
 0x430   :  { %2461 = vtanh.f32 %v525_v18 }
 0x436   :  { %v2462_v19 = vpop.eup %2461 }
 0x437   :  { %528 = vrot.lane.b32.xlu2 %v2462_v19, %s2843_s4 }
 0x489   :  { %v549_v21 = vpop.permute.xlu2 %548 }
 0x48a   :  { %v551_v22 = vmul.f32 %v549_v21, %v534_v4  ;;  %v286_v4 = vpop.f32.mrf.mxu0 }
 0x48b   :  { %v287_v5 = vadd.f32 %v286_v4, %v3022_v46 }
 0x48c   :  { %559 = vrot.lane.b32.xlu1 %v551_v22, %s2844_s18 }
 0x491   :  { %v529_v23 = vpop.permute.xlu2 %528 }
 0x492   :  { %v531_v24 = vmul.f32 %v529_v23, %v514_v9 }
 0x494   :  { %553 = vrot.lane.b32.xlu0 %v531_v24, %s2844_s18 }
 0x4fe   :  { %v560_v25 = vpop.permute.xlu1 %559 }
 0x4ff   :  { %563 = vst.msk [vmem:[#allocation2 + $0x68] sm:$0xff] %vm363_vm0, %v560_v25  ;;  %2403 = vmatmul.msk.f32.vlgmr.msra.gmra.mxu3 %vm363_vm0, %v560_v25 }
 0x500   :  { %809 = vmatpush.msra.mxu3 %v3008_v38 }
 0x502   :  { %810 = vmatpush.msra.mxu3 %v3010_v39 }
 0x506   :  { %v554_v20 = vpop.permute.xlu0 %553 }
 0x507   :  { %557 = vst.msk [vmem:[#allocation2 + $0x10] sm:$0xff] %vm363_vm0, %v554_v20  ;;  %2402 = vmatmul.msk.f32.vlgmr.msra.gmra.mxu2 %vm363_vm0, %v554_v20 }
 0x508   :  { %785 = vmatpush.msra.mxu2 %v2977_v13 }
 0x50a   :  { %786 = vmatpush.msra.mxu2 %v2980_v14 }
 0x50e   :  { %v3084_v26 = vld [vmem:[#allocation2 + $0x10] sm:$0xff] }
 0x50f   :  { %1347 = vmatmul.f32.gmra.mxu0 %v3084_v26 }
 0x582   :  { %v610_v27 = vpop.f32.mrf.mxu3 }
 0x583   :  { %v613_v28 = vadd.f32 %v610_v27, %v3036_v0 }
 0x585   :  { %2463 = vtanh.f32 %v613_v28 }
 0x58a   :  { %v585_v31 = vpop.f32.mrf.mxu2 }
 0x58b   :  { %v2464_v32 = vpop.eup %2463  ;;  %v588_v33 = vadd.f32 %v585_v31, %v284_v30 }
 0x58c   :  { %639 = vrot.lane.b32.xlu1 %v2464_v32, %s2842_s17  ;;  %v635_v35 = vmul.f32 0.5, %v2464_v32 }
 0x58d   :  { %2465 = vtanh.f32 %v588_v33 }
 0x58e   :  { %v636_v36 = vadd.f32 0.5, %v635_v35 }
 0x590   :  { %v637_v44 = vmul.f32 %v636_v36, %v545_v2 }
 0x593   :  { %v2466_v34 = vpop.eup %2465 }
 0x594   :  { %619 = vrot.lane.b32.xlu0 %v2466_v34, %s2842_s17  ;;  %v615_v0 = vmul.f32 0.5, %v2466_v34 }
 0x596   :  { %v616_v41 = vadd.f32 0.5, %v615_v0  ;;  %v289_v0 = vpop.f32.mrf.mxu0 }
 0x598   :  { %v617_v48 = vmul.f32 %v616_v41, %v525_v18 }
 0x5fe   :  { %v640_v37 = vpop.permute.xlu1 %639 }
 0x5ff   :  { %v642_v40 = vmul.f32 %v640_v37, %v636_v36 }
 0x601   :  { %644 = vrot.lane.b32.xlu2 %v642_v40, %s2830_s27 }
 0x606   :  { %v620_v42 = vpop.permute.xlu0 %619 }
 0x607   :  { %v622_v43 = vmul.f32 %v620_v42, %v616_v41 }
 0x609   :  { %624 = vrot.lane.b32.xlu2 %v622_v43, %s2830_s27 }
 0x65b   :  { %v645_v45 = vpop.permute.xlu2 %644 }
 0x65c   :  { %v647_v47 = vadd.f32 %v645_v45, %v637_v44 }
 0x65e   :  { %2467 = vtanh.f32 %v647_v47 }
 0x663   :  { %v625_v49 = vpop.permute.xlu2 %624 }
 0x664   :  { %v2468_v51 = vpop.eup %2467  ;;  %v627_v53 = vadd.f32 %v625_v49, %v617_v48 }
 0x665   :  { %650 = vrot.lane.b32.xlu1 %v2468_v51, %s2843_s4 }
 0x666   :  { %2469 = vtanh.f32 %v627_v53 }
 0x66c   :  { %v2470_v54 = vpop.eup %2469 }
 0x66d   :  { %630 = vrot.lane.b32.xlu1 %v2470_v54, %s2843_s4 }
 0x6d7   :  { %v651_v56 = vpop.permute.xlu1 %650 }
 0x6d8   :  { %v653_v57 = vmul.f32 %v651_v56, %v636_v36 }
 0x6da   :  { %661 = vrot.lane.b32.xlu0 %v653_v57, %s2844_s18 }
 0x6df   :  { %v631_v59 = vpop.permute.xlu1 %630 }
 0x6e0   :  { %v633_v61 = vmul.f32 %v631_v59, %v616_v41  ;;  %v290_v41 = vadd.f32 %v289_v0, %v3022_v46 }
 0x6e2   :  { %655 = vrot.lane.b32.xlu2 %v633_v61, %s2844_s18 }
 0x73c   :  { %v656_v63 = vpop.permute.xlu2 %655 }
 0x73d   :  { %659 = vst.msk [vmem:[#allocation2 + $0x20] sm:$0xff] %vm363_vm0, %v656_v63  ;;  %2404 = vmatmul.msk.f32.vlgmr.msrb.gmra.mxu2 %vm363_vm0, %v656_v63 }
 0x73e   :  { %883 = vmatpush.msrb.mxu2 %v2977_v13 }
 0x740   :  { %884 = vmatpush.msrb.mxu2 %v2980_v14 }
 0x744   :  { %v3101_v1 = vld [vmem:[#allocation2 + $0x20] sm:$0xff] }
 0x745   :  { %1350 = vmatmul.f32.gmra.mxu0 %v3101_v1 }
 0x74c   :  { %v662_v3 = vpop.permute.xlu0 %661 }
 0x74d   :  { %665 = vst.msk [vmem:[#allocation2 + $0x58] sm:$0xff] %vm363_vm0, %v662_v3  ;;  %2405 = vmatmul.msk.f32.vlgmr.msrb.gmra.mxu3 %vm363_vm0, %v662_v3 }
 0x74e   :  { %907 = vmatpush.msrb.mxu3 %v3008_v38 }
 0x750   :  { %908 = vmatpush.msrb.mxu3 %v3010_v39 }
 0x7c0   :  { %v687_v6 = vpop.f32.mrf.mxu2 }
 0x7c1   :  { %v690_v7 = vadd.f32 %v687_v6, %v287_v5 }
 0x7c3   :  { %2471 = vtanh.f32 %v690_v7 }
 0x7c9   :  { %v2472_v8 = vpop.eup %2471 }
 0x7ca   :  { %721 = vrot.lane.b32.xlu2 %v2472_v8, %s2842_s17  ;;  %v717_v17 = vmul.f32 0.5, %v2472_v8 }
 0x7cc   :  { %v718_v19 = vadd.f32 0.5, %v717_v17 }
 0x7d0   :  { %v712_v9 = vpop.f32.mrf.mxu3 }
 0x7d1   :  { %v715_v10 = vadd.f32 %v712_v9, %v3034_v62  ;;  %v719_v62 = vmul.f32 %v718_v19, %v627_v53 }
 0x7d3   :  { %2473 = vtanh.f32 %v715_v10 }
 0x7d9   :  { %v2474_v11 = vpop.eup %2473 }
 0x7da   :  { %741 = vrot.lane.b32.xlu0 %v2474_v11, %s2842_s17  ;;  %v737_v12 = vmul.f32 0.5, %v2474_v11 }
 0x7dc   :  { %v738_v2 = vadd.f32 0.5, %v737_v12 }
 0x7de   :  { %v739_v22 = vmul.f32 %v738_v2, %v647_v47 }
 0x824   :  { %v722_v18 = vpop.permute.xlu2 %721 }
 0x825   :  { %v724_v21 = vmul.f32 %v722_v18, %v718_v19 }
 0x84c   :  { %v742_v15 = vpop.permute.xlu0 %741 }
 0x84d   :  { %v744_v16 = vmul.f32 %v742_v15, %v738_v2 }
 0x84f   :  { %746 = vrot.lane.b32.xlu1 %v744_v16, %s2830_s27 }
 0x857   :  { %726 = vrot.lane.b32.xlu1 %v724_v21, %s2830_s27 }
 0x8c1   :  { %v747_v23 = vpop.permute.xlu1 %746 }
 0x8c2   :  { %v749_v24 = vadd.f32 %v747_v23, %v739_v22 }
 0x8c4   :  { %2475 = vtanh.f32 %v749_v24 }
 0x8c9   :  { %v727_v25 = vpop.permute.xlu1 %726 }
 0x8ca   :  { %v2476_v20 = vpop.eup %2475  ;;  %v729_v27 = vadd.f32 %v727_v25, %v719_v62 }
 0x8cb   :  { %752 = vrot.lane.b32.xlu0 %v2476_v20, %s2843_s4 }
 0x8cc   :  { %2477 = vtanh.f32 %v729_v27 }
 0x8d2   :  { %v2478_v28 = vpop.eup %2477 }
 0x8d3   :  { %732 = vrot.lane.b32.xlu0 %v2478_v28, %s2843_s4 }
 0x93d   :  { %v753_v29 = vpop.permute.xlu0 %752 }
 0x93e   :  { %v755_v30 = vmul.f32 %v753_v29, %v738_v2 }
 0x940   :  { %763 = vrot.lane.b32.xlu2 %v755_v30, %s2844_s18 }
 0x945   :  { %v733_v31 = vpop.permute.xlu0 %732 }
 0x946   :  { %v735_v32 = vmul.f32 %v733_v31, %v718_v19 }
 0x948   :  { %757 = vrot.lane.b32.xlu1 %v735_v32, %s2844_s18 }
 0x99a   :  { %v764_v33 = vpop.permute.xlu2 %763 }
 0x99b   :  { %767 = vst.msk [vmem:[#allocation2 + $0x48] sm:$0xff] %vm363_vm0, %v764_v33  ;;  %2407 = vmatmul.msk.f32.vlgmr.msra.gmra.mxu3 %vm363_vm0, %v764_v33 }
 0x99c   :  { %1005 = vmatpush.msra.mxu3 %v3008_v38 }
 0x99e   :  { %1006 = vmatpush.msra.mxu3 %v3010_v39 }
 0x9ba   :  { %v758_v34 = vpop.permute.xlu1 %757 }
 0x9bb   :  { %761 = vst.msk [vmem:[#allocation2 + $0x30] sm:$0xff] %vm363_vm0, %v758_v34  ;;  %2406 = vmatmul.msk.f32.vlgmr.msra.gmra.mxu2 %vm363_vm0, %v758_v34 }
 0x9bc   :  { %981 = vmatpush.msra.mxu2 %v2977_v13 }
 0x9be   :  { %982 = vmatpush.msra.mxu2 %v2980_v14 }
 0x9c2   :  { %v3126_v35 = vld [vmem:[#allocation2 + $0x30] sm:$0xff] }
 0x9c3   :  { %1353 = vmatmul.f32.gmra.mxu0 %v3126_v35 }
 0xa1e   :  { %v812_v36 = vpop.f32.mrf.mxu3 }
 0xa1f   :  { %v815_v37 = vadd.f32 %v812_v36, %v3032_v60 }
 0xa21   :  { %2479 = vtanh.f32 %v815_v37 }
 0xa27   :  { %v2480_v40 = vpop.eup %2479 }
 0xa28   :  { %841 = vrot.lane.b32.xlu2 %v2480_v40, %s2842_s17  ;;  %v837_v45 = vmul.f32 0.5, %v2480_v40 }
 0xa2a   :  { %v838_v47 = vadd.f32 0.5, %v837_v45 }
 0xa2c   :  { %v839_v56 = vmul.f32 %v838_v47, %v749_v24 }
 0xa3e   :  { %v788_v42 = vpop.f32.mrf.mxu2 }
 0xa3f   :  { %v791_v43 = vadd.f32 %v788_v42, %v290_v41 }
 0xa41   :  { %2481 = vtanh.f32 %v791_v43 }
 0xa47   :  { %v2482_v44 = vpop.eup %2481 }
 0xa48   :  { %821 = vrot.lane.b32.xlu1 %v2482_v44, %s2842_s17  ;;  %v817_v60 = vmul.f32 0.5, %v2482_v44 }
 0xa4a   :  { %v818_v51 = vadd.f32 0.5, %v817_v60 }
 0xa4c   :  { %v819_v63 = vmul.f32 %v818_v51, %v729_v27 }
 0xa82   :  { %v842_v48 = vpop.permute.xlu2 %841 }
 0xa83   :  { %v844_v49 = vmul.f32 %v842_v48, %v838_v47 }
 0xa85   :  { %846 = vrot.lane.b32.xlu0 %v844_v49, %s2830_s27 }
 0xaba   :  { %v822_v53 = vpop.permute.xlu1 %821 }
 0xabb   :  { %v824_v54 = vmul.f32 %v822_v53, %v818_v51 }
 0xabd   :  { %826 = vrot.lane.b32.xlu0 %v824_v54, %s2830_s27 }
 0xaf7   :  { %v847_v57 = vpop.permute.xlu0 %846 }
 0xaf8   :  { %v849_v59 = vadd.f32 %v847_v57, %v839_v56 }
 0xafa   :  { %2483 = vtanh.f32 %v849_v59 }
 0xb00   :  { %v2484_v61 = vpop.eup %2483 }
 0xb01   :  { %852 = vrot.lane.b32.xlu2 %v2484_v61, %s2843_s4 }
 0xb2f   :  { %v827_v3 = vpop.permute.xlu0 %826 }
 0xb30   :  { %v829_v4 = vadd.f32 %v827_v3, %v819_v63 }
 0xb32   :  { %2485 = vtanh.f32 %v829_v4 }
 0xb38   :  { %v2486_v5 = vpop.eup %2485 }
 0xb39   :  { %832 = vrot.lane.b32.xlu2 %v2486_v5, %s2843_s4 }
 0xb5b   :  { %v853_v6 = vpop.permute.xlu2 %852 }
 0xb5c   :  { %v855_v7 = vmul.f32 %v853_v6, %v838_v47 }
 0xb5e   :  { %862 = vrot.lane.b32.xlu1 %v855_v7, %s2844_s18 }
 0xb93   :  { %v833_v8 = vpop.permute.xlu2 %832 }
 0xb94   :  { %v835_v9 = vmul.f32 %v833_v8, %v818_v51 }
 0xb96   :  { %857 = vrot.lane.b32.xlu0 %v835_v9, %s2844_s18 }
 0xbd0   :  { %v863_v10 = vpop.permute.xlu1 %862 }
 0xbd1   :  { %865 = vst.msk [vmem:[#allocation2 + $0x38] sm:$0xff] %vm363_vm0, %v863_v10  ;;  %2409 = vmatmul.msk.f32.vlgmr.msrb.gmra.mxu3 %vm363_vm0, %v863_v10 }
 0xbd2   :  { %1103 = vmatpush.msrb.mxu3 %v3008_v38 }
 0xbd4   :  { %1104 = vmatpush.msrb.mxu3 %v3010_v39  ;;  %v292_v39 = vpop.f32.mrf.mxu0 }
 0xbd5   :  { %v293_v16 = vadd.f32 %v292_v39, %v3022_v46  ;;  %v1204_v39 = vld [vmem:[#allocation13 + $0xe0] sm:$0xff] }
 0xbdc   :  { %v295_v45 = vpop.f32.mrf.mxu0 }
 0xbdd   :  { %v296_v47 = vadd.f32 %v295_v45, %v3022_v46 }
 0xc08   :  { %v858_v11 = vpop.permute.xlu0 %857 }
 0xc09   :  { %860 = vst.msk [vmem:[#allocation2 + $0x40] sm:$0xff] %vm363_vm0, %v858_v11  ;;  %2408 = vmatmul.msk.f32.vlgmr.msrb.gmra.mxu2 %vm363_vm0, %v858_v11 }
 0xc0a   :  { %1079 = vmatpush.msrb.mxu2 %v2977_v13 }
 0xc0c   :  { %1080 = vmatpush.msrb.mxu2 %v2980_v14 }
 0xc10   :  { %v3147_v12 = vld [vmem:[#allocation2 + $0x40] sm:$0xff] }
 0xc11   :  { %1356 = vmatmul.f32.gmra.mxu0 %v3147_v12 }
 0xc54   :  { %v910_v2 = vpop.f32.mrf.mxu3 }
 0xc55   :  { %v913_v15 = vadd.f32 %v910_v2, %v3030_v58 }
 0xc57   :  { %2487 = vtanh.f32 %v913_v15 }
 0xc5d   :  { %v2488_v38 = vpop.eup %2487 }
 0xc5e   :  { %939 = vrot.lane.b32.xlu1 %v2488_v38, %s2842_s17  ;;  %v935_v14 = vmul.f32 0.5, %v2488_v38  ;;  %v1206_v38 = vld [vmem:[#allocation13 + $0xf0] sm:$0xff] }
 0xc60   :  { %v936_v19 = vadd.f32 0.5, %v935_v14  ;;  %v1194_v14 = vld [vmem:[#allocation13 + $0x90] sm:$0xff] }
 0xc62   :  { %v937_v25 = vmul.f32 %v936_v19, %v849_v59 }
 0xc8c   :  { %v886_v17 = vpop.f32.mrf.mxu2 }
 0xc8d   :  { %v889_v18 = vadd.f32 %v886_v17, %v293_v16  ;;  %v1202_v16 = vld [vmem:[#allocation13 + $0xd0] sm:$0xff]  ;;  %v1200_v17 = vld [vmem:[#allocation13 + $0xc0] sm:$0xff] }
 0xc8f   :  { %2489 = vtanh.f32 %v889_v18  ;;  %v1198_v18 = vld [vmem:[#allocation13 + $0xb0] sm:$0xff] }
 0xc95   :  { %v2490_v13 = vpop.eup %2489 }
 0xc96   :  { %919 = vrot.lane.b32.xlu0 %v2490_v13, %s2842_s17  ;;  %v915_v58 = vmul.f32 0.5, %v2490_v13  ;;  %v1196_v13 = vld [vmem:[#allocation13 + $0xa0] sm:$0xff] }
 0xc98   :  { %v916_v23 = vadd.f32 0.5, %v915_v58  ;;  %v1186_v58 = vld [vmem:[#allocation13 + $0x50] sm:$0xff] }
 0xc9a   :  { %v917_v29 = vmul.f32 %v916_v23, %v829_v4 }
 0xcd0   :  { %v940_v21 = vpop.permute.xlu1 %939 }
 0xcd1   :  { %v942_v22 = vmul.f32 %v940_v21, %v936_v19  ;;  %v1190_v21 = vld [vmem:[#allocation13 + $0x70] sm:$0xff] }
 0xcd3   :  { %944 = vrot.lane.b32.xlu2 %v942_v22, %s2830_s27  ;;  %v1188_v22 = vld [vmem:[#allocation13 + $0x60] sm:$0xff] }
 0xd08   :  { %v920_v24 = vpop.permute.xlu0 %919 }
 0xd09   :  { %v922_v62 = vmul.f32 %v920_v24, %v916_v23 }
 0xd0b   :  { %924 = vrot.lane.b32.xlu2 %v922_v62, %s2830_s27  ;;  %v1182_v62 = vld [vmem:[#allocation13 + $0x30] sm:$0xff] }
 0xd2d   :  { %v945_v20 = vpop.permute.xlu2 %944 }
 0xd2e   :  { %v947_v27 = vadd.f32 %v945_v20, %v937_v25  ;;  %v1180_v25 = vld [vmem:[#allocation13 + $0x20] sm:$0xff]  ;;  %v1178_v20 = vld [vmem:[#allocation13 + $0x10] sm:$0xff] }
 0xd30   :  { %2491 = vtanh.f32 %v947_v27 }
 0xd36   :  { %v2492_v28 = vpop.eup %2491 }
 0xd37   :  { %950 = vrot.lane.b32.xlu1 %v2492_v28, %s2843_s4 }
 0xd65   :  { %v925_v30 = vpop.permute.xlu2 %924 }
 0xd66   :  { %v927_v31 = vadd.f32 %v925_v30, %v917_v29 }
 0xd68   :  { %2493 = vtanh.f32 %v927_v31 }
 0xd6e   :  { %v2494_v32 = vpop.eup %2493 }
 0xd6f   :  { %930 = vrot.lane.b32.xlu1 %v2494_v32, %s2843_s4 }
 0xda9   :  { %v951_v33 = vpop.permute.xlu1 %950 }
 0xdaa   :  { %v953_v34 = vmul.f32 %v951_v33, %v936_v19  ;;  %v1192_v19 = vld [vmem:[#allocation13 + $0x80] sm:$0xff] }
 0xdac   :  { %960 = vrot.lane.b32.xlu0 %v953_v34, %s2844_s18 }
 0xde1   :  { %v931_v36 = vpop.permute.xlu1 %930 }
 0xde2   :  { %v933_v37 = vmul.f32 %v931_v36, %v916_v23  ;;  %v1184_v23 = vld [vmem:[#allocation13 + $0x40] sm:$0xff] }
 0xde4   :  { %955 = vrot.lane.b32.xlu2 %v933_v37, %s2844_s18 }
 0xe1e   :  { %v961_v40 = vpop.permute.xlu0 %960 }
 0xe1f   :  { %963 = vst.msk [vmem:[#allocation2 + $0x28] sm:$0xff] %vm363_vm0, %v961_v40  ;;  %2411 = vmatmul.msk.f32.vlgmr.msra.gmra.mxu3 %vm363_vm0, %v961_v40 }
 0xe3e   :  { %v956_v0 = vpop.permute.xlu2 %955 }
 0xe3f   :  { %958 = vst.msk [vmem:[#allocation2 + $0x50] sm:$0xff] %vm363_vm0, %v956_v0  ;;  %2410 = vmatmul.msk.f32.vlgmr.msra.gmra.mxu2 %vm363_vm0, %v956_v0 }
 0xe40   :  { %1246 = vmatpush.msra.mxu2 %v1206_v38  ;;  %v1219_v38 = vld [vmem:[#allocation13 + $0x158] sm:$0xff] }
 0xe42   :  { %1247 = vmatpush.msra.mxu2 %v1204_v39  ;;  %v1220_v39 = vld [vmem:[#allocation13 + $0x160] sm:$0xff] }
 0xe44   :  { %1248 = vmatpush.msra.mxu2 %v1202_v16  ;;  %v1217_v16 = vld [vmem:[#allocation13 + $0x148] sm:$0xff] }
 0xe46   :  { %v3164_v41 = vld [vmem:[#allocation2 + $0x50] sm:$0xff]  ;;  %1249 = vmatpush.msra.mxu2 %v1200_v17 }
 0xe47   :  { %1359 = vmatmul.f32.gmra.mxu0 %v3164_v41  ;;  %v1218_v17 = vld [vmem:[#allocation13 + $0x150] sm:$0xff] }
 0xe48   :  { %1250 = vmatpush.msra.mxu2 %v1198_v18  ;;  %v1215_v18 = vld [vmem:[#allocation13 + $0x138] sm:$0xff] }
 0xe4a   :  { %1251 = vmatpush.msra.mxu2 %v1196_v13  ;;  %v1216_v13 = vld [vmem:[#allocation13 + $0x140] sm:$0xff] }
 0xe4c   :  { %1252 = vmatpush.msra.mxu2 %v1194_v14  ;;  %v1213_v14 = vld [vmem:[#allocation13 + $0x128] sm:$0xff] }
 0xe4e   :  { %1253 = vmatpush.msra.mxu2 %v1192_v19 }
 0xe50   :  { %1254 = vmatpush.msra.mxu2 %v1190_v21 }
 0xe52   :  { %1255 = vmatpush.msra.mxu2 %v1188_v22  ;;  %v1211_v22 = vld [vmem:[#allocation13 + $0x118] sm:$0xff] }
 0xe54   :  { %1256 = vmatpush.msra.mxu2 %v1186_v58  ;;  %v1214_v58 = vld [vmem:[#allocation13 + $0x130] sm:$0xff] }
 0xe56   :  { %1257 = vmatpush.msra.mxu2 %v1184_v23  ;;  %v1212_v23 = vld [vmem:[#allocation13 + $0x120] sm:$0xff] }
 0xe58   :  { %1258 = vmatpush.msra.mxu2 %v1182_v62  ;;  %v1210_v62 = vld [vmem:[#allocation13 + $0x110] sm:$0xff] }
 0xe5a   :  { %1259 = vmatpush.msra.mxu2 %v1180_v25  ;;  %v1208_v25 = vld [vmem:[#allocation13 + $0x100] sm:$0xff] }
 0xe5c   :  { %1260 = vmatpush.msra.mxu2 %v1178_v20  ;;  %v3210_v20 = vld [vmem:[#allocation14 + $0x8] sm:$0xff] }
 0xe5d   :  { %1742 = vmatpush.msra.mxu0 %v3210_v20 }
 0xea2   :  { %v1008_v42 = vpop.f32.mrf.mxu3 }
 0xea3   :  { %v1011_v43 = vadd.f32 %v1008_v42, %v3027_v55 }
 0xea5   :  { %2495 = vtanh.f32 %v1011_v43 }
 0xeab   :  { %v2496_v44 = vpop.eup %2495 }
 0xeac   :  { %1037 = vrot.lane.b32.xlu0 %v2496_v44, %s2842_s17  ;;  %v1033_v51 = vmul.f32 0.5, %v2496_v44 }
 0xeae   :  { %v1034_v53 = vadd.f32 0.5, %v1033_v51 }
 0xeb0   :  { %v1035_v63 = vmul.f32 %v1034_v53, %v947_v27  ;;  %v1176_v27 = vld [vmem:[#allocation13] sm:$0xff] }
 0xeb1   :  { %1261 = vmatpush.msra.mxu2 %v1176_v27 }
 0xec2   :  { %v984_v48 = vpop.f32.mrf.mxu2 }
 0xec3   :  { %v987_v49 = vadd.f32 %v984_v48, %v296_v47 }
 0xec5   :  { %2497 = vtanh.f32 %v987_v49 }
 0xecb   :  { %v2498_v60 = vpop.eup %2497 }
 0xecc   :  { %1017 = vrot.lane.b32.xlu2 %v2498_v60, %s2842_s17  ;;  %v1013_v55 = vmul.f32 0.5, %v2498_v60 }
 0xece   :  { %v1014_v57 = vadd.f32 0.5, %v1013_v55  ;;  %v1238_v55 = vld [vmem:[#allocation13 + $0x1f0] sm:$0xff] }
 0xecf   :  { %1287 = vmatpush.msra.mxu3 %v1238_v55 }
 0xed0   :  { %v1015_v5 = vmul.f32 %v1014_v57, %v927_v31 }
 0xf1e   :  { %v1038_v54 = vpop.permute.xlu0 %1037 }
 0xf1f   :  { %v1040_v56 = vmul.f32 %v1038_v54, %v1034_v53  ;;  %v1237_v54 = vld [vmem:[#allocation13 + $0x1e8] sm:$0xff] }
 0xf21   :  { %1042 = vrot.lane.b32.xlu1 %v1040_v56, %s2830_s27  ;;  %v1235_v56 = vld [vmem:[#allocation13 + $0x1d8] sm:$0xff] }
 0xf26   :  { %v1018_v59 = vpop.permute.xlu2 %1017 }
 0xf27   :  { %v1020_v61 = vmul.f32 %v1018_v59, %v1014_v57  ;;  %v1233_v59 = vld [vmem:[#allocation13 + $0x1c8] sm:$0xff] }
 0xf29   :  { %1022 = vrot.lane.b32.xlu1 %v1020_v61, %s2830_s27  ;;  %v1234_v61 = vld [vmem:[#allocation13 + $0x1d0] sm:$0xff] }
 0xf93   :  { %v1043_v3 = vpop.permute.xlu1 %1042 }
 0xf94   :  { %v3173_v4 = vadd.f32 %v1043_v3, %v1035_v63  ;;  %v1231_v63 = vld [vmem:[#allocation13 + $0x1b8] sm:$0xff]  ;;  %v1232_v3 = vld [vmem:[#allocation13 + $0x1c0] sm:$0xff] }
 0xf96   :  { %2499 = vtanh.f32 %v3173_v4 }
 0xf9b   :  { %v1023_v6 = vpop.permute.xlu1 %1022 }
 0xf9c   :  { %v2500_v7 = vpop.eup %2499  ;;  %v3176_v8 = vadd.f32 %v1023_v6, %v1015_v5  ;;  %v1230_v5 = vld [vmem:[#allocation13 + $0x1b0] sm:$0xff]  ;;  %v1227_v6 = vld [vmem:[#allocation13 + $0x198] sm:$0xff] }
 0xf9d   :  { %1048 = vrot.lane.b32.xlu0 %v2500_v7, %s2843_s4  ;;  %v1228_v7 = vld [vmem:[#allocation13 + $0x1a0] sm:$0xff] }
 0xf9e   :  { %2501 = vtanh.f32 %v3176_v8 }
 0xfa4   :  { %v2502_v9 = vpop.eup %2501 }
 0xfa5   :  { %1028 = vrot.lane.b32.xlu0 %v2502_v9, %s2843_s4  ;;  %v1226_v9 = vld [vmem:[#allocation13 + $0x190] sm:$0xff] }
0x100f   :  { %v1049_v10 = vpop.permute.xlu0 %1048 }
0x1010   :  { %v1051_v11 = vmul.f32 %v1049_v10, %v1034_v53  ;;  %v1239_v53 = vld [vmem:[#allocation13 + $0x1f8] sm:$0xff] }
0x1011   :  { %1369 = vmatpush.msrb.mxu1 %v1239_v53  ;;  %v1223_v10 = vld [vmem:[#allocation13 + $0x178] sm:$0xff]  ;;  %v1240_v53 = vld [vmem:[%s3455_s8] sm:$0x3] }
0x1012   :  { %1058 = vrot.lane.b32.xlu2 %v1051_v11, %s2844_s18  ;;  %v1224_v11 = vld [vmem:[#allocation13 + $0x180] sm:$0xff] }
0x1013   :  { %1370 = vmatpush.msrb.mxu1 %v1237_v54  ;;  %v3265_v54 = vperm.slane %v1240_v53, 0 }
0x1015   :  { %1371 = vmatpush.msrb.mxu1 %v1235_v56 }
0x1017   :  { %v1029_v2 = vpop.permute.xlu0 %1028  ;;  %1372 = vmatpush.msrb.mxu1 %v1233_v59 }
0x1018   :  { %v1031_v15 = vmul.f32 %v1029_v2, %v1014_v57  ;;  %v1236_v57 = vld [vmem:[#allocation13 + $0x1e0] sm:$0xff]  ;;  %v1221_v2 = vld [vmem:[#allocation13 + $0x168] sm:$0xff] }
0x1019   :  { %1288 = vmatpush.msra.mxu3 %v1236_v57  ;;  %1373 = vmatpush.msrb.mxu1 %v1231_v63 }
0x101a   :  { %1053 = vrot.lane.b32.xlu1 %v1031_v15, %s2844_s18  ;;  %v1222_v15 = vld [vmem:[#allocation13 + $0x170] sm:$0xff] }
0x101b   :  { %1289 = vmatpush.msra.mxu3 %v1234_v61 }
0x101d   :  { %1290 = vmatpush.msra.mxu3 %v1232_v3 }
0x101f   :  { %1291 = vmatpush.msra.mxu3 %v1230_v5 }
0x1021   :  { %1292 = vmatpush.msra.mxu3 %v1228_v7 }
0x1023   :  { %1293 = vmatpush.msra.mxu3 %v1226_v9 }
0x1025   :  { %1294 = vmatpush.msra.mxu3 %v1224_v11 }
0x1027   :  { %1295 = vmatpush.msra.mxu3 %v1222_v15 }
0x1029   :  { %1296 = vmatpush.msra.mxu3 %v1220_v39 }
0x102b   :  { %1297 = vmatpush.msra.mxu3 %v1218_v17 }
0x102d   :  { %1298 = vmatpush.msra.mxu3 %v1216_v13 }
0x102f   :  { %1299 = vmatpush.msra.mxu3 %v1214_v58 }
0x1031   :  { %1300 = vmatpush.msra.mxu3 %v1212_v23 }
0x1033   :  { %1301 = vmatpush.msra.mxu3 %v1210_v62 }
0x1035   :  { %1302 = vmatpush.msra.mxu3 %v1208_v25 }
0x106c   :  { %v1059_v24 = vpop.permute.xlu2 %1058 }
0x106d   :  { %1061 = vst.msk [vmem:[#allocation2 + $0x18] sm:$0xff] %vm363_vm0, %v1059_v24  ;;  %2413 = vmatmul.msk.f32.vlgmr.msrb.gmra.mxu3 %vm363_vm0, %v1059_v24  ;;  %v1209_v24 = vld [vmem:[#allocation13 + $0x108] sm:$0xff] }
0x108c   :  { %v1054_v28 = vpop.permute.xlu1 %1053 }
0x108d   :  { %1056 = vst.msk [vmem:[#allocation2 + $0x60] sm:$0xff] %vm363_vm0, %v1054_v28  ;;  %2412 = vmatmul.msk.f32.vlgmr.msrb.gmra.mxu2 %vm363_vm0, %v1054_v28 }
0x108e   :  { %1642 = vmatpush.msrb.mxu2 %v3210_v20 }
0x1094   :  { %v1172_v29 = vld [vmem:[#allocation2 + $0x60] sm:$0xff] }
0x1095   :  { %1262 = vmatmul.f32.vlgmr.msra.gmra.mxu2 %v3057_v50  ;;  %1362 = vmatmul.f32.gmra.mxu0 %v1172_v29  ;;  %v298_v50 = vpop.f32.mrf.mxu0 }
0x1096   :  { %v299_v33 = vadd.f32 %v298_v50, %v3022_v46  ;;  %v1169_v50 = vld [vmem:[#allocation2 + $0x48] sm:$0xff] }
0x109d   :  { %1265 = vmatmul.f32.gmra.mxu2 %v3084_v26 }
0x10a5   :  { %1268 = vmatmul.f32.gmra.mxu2 %v3101_v1 }
0x10ad   :  { %1271 = vmatmul.f32.gmra.mxu2 %v3126_v35 }
0x10b5   :  { %1274 = vmatmul.f32.gmra.mxu2 %v3147_v12 }
0x10bd   :  { %1277 = vmatmul.f32.gmra.mxu2 %v3164_v41 }
0x10c5   :  { %1280 = vmatmul.f32.gmra.mxu2 %v1172_v29  ;;  %v3216_v29 = vld [vmem:[#allocation14] sm:$0xff] }
0x10c6   :  { %1643 = vmatpush.msrb.mxu2 %v3216_v29  ;;  %1743 = vmatpush.msra.mxu0 %v3216_v29 }
0x10c8   :  { %1842 = vmatpush.msra.mxu2 %v3210_v20  ;;  %1940 = vmatpush.msrb.mxu0 %v3210_v20 }
0x10ca   :  { %1843 = vmatpush.msra.mxu2 %v3216_v29  ;;  %1941 = vmatpush.msrb.mxu0 %v3216_v29 }
0x10f0   :  { %v1106_v30 = vpop.f32.mrf.mxu3 }
0x10f1   :  { %v1109_v31 = vadd.f32 %v1106_v30, %v3025_v52  ;;  %v1163_v30 = vld [vmem:[#allocation2 + $0x18] sm:$0xff] }
0x10f3   :  { %2503 = vtanh.f32 %v1109_v31  ;;  %v1165_v31 = vld [vmem:[#allocation2 + $0x28] sm:$0xff] }
0x10f9   :  { %v2504_v32 = vpop.eup %2503 }
0x10fa   :  { %1135 = vrot.lane.b32.xlu2 %v2504_v32, %s2842_s17  ;;  %v1131_v35 = vmul.f32 0.5, %v2504_v32  ;;  %v1167_v32 = vld [vmem:[#allocation2 + $0x38] sm:$0xff] }
0x10fc   :  { %v1132_v12 = vadd.f32 0.5, %v1131_v35  ;;  %v1173_v35 = vld [vmem:[#allocation2 + $0x68] sm:$0xff] }
0x10fe   :  { %v1133_v46 = vmul.f32 %v1132_v12, %v3173_v4  ;;  %v1229_v4 = vld [vmem:[#allocation13 + $0x1a8] sm:$0xff] }
0x10ff   :  { %1374 = vmatpush.msrb.mxu1 %v1229_v4 }
0x1101   :  { %1375 = vmatpush.msrb.mxu1 %v1227_v6 }
0x1110   :  { %v1082_v26 = vpop.f32.mrf.mxu2 }
0x1111   :  { %v1085_v34 = vadd.f32 %v1082_v26, %v299_v33  ;;  %v3225_v33 = vld [vmem:[#allocation16 + $0x8] sm:$0xff]  ;;  %v3227_v26 = vld [vmem:[#allocation16] sm:$0xff] }
0x1112   :  { %1666 = vmatpush.msrb.mxu3 %v3225_v33 }
0x1113   :  { %2505 = vtanh.f32 %v1085_v34  ;;  %v1171_v34 = vld [vmem:[#allocation2 + $0x58] sm:$0xff] }
0x1114   :  { %1667 = vmatpush.msrb.mxu3 %v3227_v26 }
0x1119   :  { %v2506_v1 = vpop.eup %2505 }
0x111a   :  { %1115 = vrot.lane.b32.xlu1 %v2506_v1, %s2842_s17  ;;  %v1111_v52 = vmul.f32 0.5, %v2506_v1 }
0x111c   :  { %v3198_v40 = vadd.f32 0.5, %v1111_v52  ;;  %v1263_v52 = vpop.f32.mrf.mxu2 }
0x111e   :  { %v1113_v45 = vmul.f32 %v3198_v40, %v3176_v8  ;;  %v1225_v8 = vld [vmem:[#allocation13 + $0x188] sm:$0xff] }
0x111f   :  { %1376 = vmatpush.msrb.mxu1 %v1225_v8 }
0x1121   :  { %1377 = vmatpush.msrb.mxu1 %v1223_v10 }
0x1123   :  { %1378 = vmatpush.msrb.mxu1 %v1221_v2 }
0x1125   :  { %1379 = vmatpush.msrb.mxu1 %v1219_v38 }
0x1127   :  { %1380 = vmatpush.msrb.mxu1 %v1217_v16  ;;  %v1264_v16 = vadd.f32 %v1263_v52, %v3265_v54 }
0x1129   :  { %1381 = vmatpush.msrb.mxu1 %v1215_v18 }
0x112b   :  { %1382 = vmatpush.msrb.mxu1 %v1213_v14  ;;  %v3289_v14 = vperm.slane %v1240_v53, 1 }
0x112d   :  { %1383 = vmatpush.msrb.mxu1 %v1211_v22 }
0x112f   :  { %1384 = vmatpush.msrb.mxu1 %v1209_v24 }
0x1131   :  { %1445 = vmatpush.msra.mxu1 %v3210_v20 }
0x1133   :  { %1446 = vmatpush.msra.mxu1 %v3216_v29 }
0x1154   :  { %v1136_v36 = vpop.permute.xlu2 %1135 }
0x1155   :  { %v1138_v37 = vmul.f32 %v1136_v36, %v1132_v12  ;;  %v1175_v36 = vld [vmem:[#allocation2 + $0x78] sm:$0xff] }
0x1157   :  { %1140 = vrot.lane.b32.xlu0 %v1138_v37, %s2830_s27  ;;  %v2575_v37 = vld [vmem:[#allocation3] sm:$0xff] }
0x118c   :  { %v1116_v0 = vpop.permute.xlu1 %1115 }
0x118d   :  { %v1118_v41 = vmul.f32 %v1116_v0, %v3198_v40  ;;  %v3242_v0 = vpop.f32.mrf.mxu2 }
0x118f   :  { %1120 = vrot.lane.b32.xlu0 %v1118_v41, %s2830_s27 }
0x11c9   :  { %v1141_v42 = vpop.permute.xlu0 %1140 }
0x11ca   :  { %v1143_v43 = vadd.f32 %v1141_v42, %v1133_v46  ;;  %v3246_v42 = vpop.f32.mrf.mxu0 }
0x11cc   :  { %2507 = vtanh.f32 %v1143_v43  ;;  %v3248_v43 = vpop.f32.mrf.mxu2 }
0x11d2   :  { %v2508_v44 = vpop.eup %2507 }
0x11d3   :  { %1146 = vrot.lane.b32.xlu2 %v2508_v44, %s2843_s4 }
0x1201   :  { %v1121_v47 = vpop.permute.xlu0 %1120 }
0x1202   :  { %v1123_v48 = vadd.f32 %v1121_v47, %v1113_v45  ;;  %v3254_v47 = vpop.f32.mrf.mxu0 }
0x1204   :  { %2509 = vtanh.f32 %v1123_v48  ;;  %v1272_v48 = vpop.f32.mrf.mxu2 }
0x1205   :  { %v1273_v56 = vadd.f32 %v1272_v48, %v3265_v54 }
0x120a   :  { %v2510_v49 = vpop.eup %2509 }
0x120b   :  { %1126 = vrot.lane.b32.xlu2 %v2510_v49, %s2843_s4 }
0x120c   :  { %v1275_v59 = vpop.f32.mrf.mxu2 }
0x120d   :  { %v1276_v3 = vadd.f32 %v1275_v59, %v3265_v54 }
0x1214   :  { %v1278_v8 = vpop.f32.mrf.mxu2 }
0x1215   :  { %v1279_v9 = vadd.f32 %v1278_v8, %v3265_v54  ;;  %v1267_v8 = vadd.f32 %v3242_v0, %v3265_v54 }
0x122d   :  { %v1147_v60 = vpop.permute.xlu2 %1146 }
0x122e   :  { %v1149_v51 = vmul.f32 %v1147_v60, %v1132_v12 }
0x1230   :  { %1156 = vrot.lane.b32.xlu1 %v1149_v51, %s2844_s18  ;;  %v3260_v51 = vpop.f32.mrf.mxu0 }
0x1238   :  { %v3272_v63 = vpop.f32.mrf.mxu0 }
0x1240   :  { %v3279_v7 = vpop.f32.mrf.mxu0 }
0x1248   :  { %v3286_v15 = vpop.f32.mrf.mxu0 }
0x1250   :  { %v1363_v38 = vpop.f32.mrf.mxu0 }
0x1265   :  { %v1127_v19 = vpop.permute.xlu2 %1126 }
0x1266   :  { %v1129_v21 = vmul.f32 %v1127_v19, %v3198_v40 }
0x1268   :  { %1151 = vrot.lane.b32.xlu0 %v1129_v21, %s2844_s18 }
0x12a2   :  { %v1157_v27 = vpop.permute.xlu1 %1156 }
0x12a3   :  { %1159 = vst.msk [vmem:[#allocation2 + $0x8] sm:$0xff] %vm363_vm0, %v1157_v27 }
0x12aa   :  { %v1161_v28 = vld [vmem:[#allocation2 + $0x8] sm:$0xff] }
0x12ab   :  { %1303 = vmatmul.f32.vlgmr.msra.gmra.mxu3 %v1161_v28  ;;  %1385 = vmatmul.f32.vlgmr.msrb.gmra.mxu1 %v1161_v28 }
0x12ac   :  { %1467 = vmatpush.msrb.mxu1 %v3225_v33  ;;  %1866 = vmatpush.msra.mxu3 %v3225_v33 }
0x12ae   :  { %1468 = vmatpush.msrb.mxu1 %v3227_v26  ;;  %1867 = vmatpush.msra.mxu3 %v3227_v26 }
0x12b3   :  { %1306 = vmatmul.f32.gmra.mxu3 %v1163_v30  ;;  %1388 = vmatmul.f32.gmra.mxu1 %v1163_v30 }
0x12bb   :  { %1309 = vmatmul.f32.gmra.mxu3 %v1165_v31  ;;  %1391 = vmatmul.f32.gmra.mxu1 %v1165_v31 }
0x12c3   :  { %1312 = vmatmul.f32.gmra.mxu3 %v1167_v32  ;;  %1394 = vmatmul.f32.gmra.mxu1 %v1167_v32 }
0x12cb   :  { %1315 = vmatmul.f32.gmra.mxu3 %v1169_v50  ;;  %1397 = vmatmul.f32.gmra.mxu1 %v1169_v50 }
0x12d3   :  { %1318 = vmatmul.f32.gmra.mxu3 %v1171_v34  ;;  %1400 = vmatmul.f32.gmra.mxu1 %v1171_v34 }
0x12da   :  { %v1152_v1 = vpop.permute.xlu0 %1151 }
0x12db   :  { %1154 = vst.msk [vmem:[#allocation2 + $0x70] sm:$0xff] %vm363_vm0, %v1152_v1  ;;  %1321 = vmatmul.f32.gmra.mxu3 %v1173_v35  ;;  %1403 = vmatmul.f32.gmra.mxu1 %v1173_v35 }
0x12e2   :  { %v1174_v12 = vld [vmem:[#allocation2 + $0x70] sm:$0xff] }
0x12e3   :  { %1283 = vmatmul.f32.gmra.mxu2 %v1174_v12  ;;  %1324 = vmatmul.f32.gmra.mxu3 %v1175_v36 }
0x12e4   :  { %1365 = vmatmul.f32.gmra.mxu0 %v1174_v12  ;;  %1406 = vmatmul.f32.gmra.mxu1 %v1175_v36 }
0x12ec   :  { %1447 = vmatmul.f32.vlgmr.msra.gmra.mxu1 %v2575_v37 }
0x12ed   :  { %1542 = vmatpush.msra.mxu1 %v3210_v20 }
0x12ef   :  { %1543 = vmatpush.msra.mxu1 %v3216_v29 }
0x12f4   :  { %1469 = vmatmul.f32.vlgmr.msrb.gmra.mxu1 %v2575_v37 }
0x12f5   :  { %1566 = vmatpush.msrb.mxu1 %v3225_v33 }
0x12f7   :  { %1567 = vmatpush.msrb.mxu1 %v3227_v26 }
0x1328   :  { %v3240_v40 = vpop.f32.mrf.mxu1 }
0x132e   :  { %v1304_v41 = vpop.f32.mrf.mxu3 }
0x132f   :  { %v1305_v17 = vadd.f32 %v1304_v41, %v1264_v16  ;;  %v1364_v16 = vadd.f32 %v1363_v38, %v3289_v14 }
0x1330   :  { %v3244_v46 = vpop.f32.mrf.mxu1 }
0x1336   :  { %v3250_v44 = vpop.f32.mrf.mxu3 }
0x1338   :  { %v3252_v45 = vpop.f32.mrf.mxu1 }
0x133e   :  { %v3256_v49 = vpop.f32.mrf.mxu3 }
0x1340   :  { %v3258_v60 = vpop.f32.mrf.mxu1 }
0x1346   :  { %v1313_v55 = vpop.f32.mrf.mxu3 }
0x1347   :  { %v3268_v57 = vadd.f32 %v1313_v55, %v1273_v56 }
0x1348   :  { %v3270_v61 = vpop.f32.mrf.mxu1 }
0x134e   :  { %v1316_v4 = vpop.f32.mrf.mxu3 }
0x134f   :  { %v3275_v5 = vadd.f32 %v1316_v4, %v1276_v3 }
0x1350   :  { %v3277_v6 = vpop.f32.mrf.mxu1 }
0x1356   :  { %v1319_v10 = vpop.f32.mrf.mxu3 }
0x1357   :  { %v3282_v11 = vadd.f32 %v1319_v10, %v1279_v9  ;;  %v1308_v9 = vadd.f32 %v3250_v44, %v1267_v8 }
0x1358   :  { %v3284_v2 = vpop.f32.mrf.mxu1 }
0x1361   :  { %v1407_v39 = vpop.f32.mrf.mxu1  ;;  %v1366_v18 = vpop.f32.mrf.mxu0 }
0x1362   :  { %v1367_v21 = vadd.f32 %v1366_v18, %v3289_v14 }
0x1364   :  { %v1408_v22 = vadd.f32 %v1407_v39, %v1367_v21 }
0x1369   :  { %v1448_v13 = vpop.f32.mrf.mxu1 }
0x136a   :  { %v1451_v19 = vadd.f32 %v1448_v13, %v1305_v17  ;;  %v1405_v17 = vadd.f32 %v3284_v2, %v1364_v16 }
0x136c   :  { %2511 = vtanh.f32 %v1451_v19 }
0x1371   :  { %v1470_v58 = vpop.f32.mrf.mxu1 }
0x1372   :  { %v2512_v23 = vpop.eup %2511  ;;  %v1473_v24 = vadd.f32 %v1470_v58, %v1408_v22 }
0x1373   :  { %1479 = vrot.lane.b32.xlu1 %v2512_v23, %s2842_s17  ;;  %v1475_v31 = vmul.f32 0.5, %v2512_v23 }
0x1374   :  { %2513 = vtanh.f32 %v1473_v24 }
0x1375   :  { %v1476_v32 = vadd.f32 0.5, %v1475_v31 }
0x1377   :  { %v1477_v37 = vmul.f32 0.0, %v1476_v32 }
0x137a   :  { %v2514_v62 = vpop.eup %2513 }
0x137b   :  { %1499 = vrot.lane.b32.xlu2 %v2514_v62, %s2842_s17  ;;  %v1495_v25 = vmul.f32 0.5, %v2514_v62 }
0x137d   :  { %v1496_v27 = vadd.f32 0.5, %v1495_v25 }
0x137f   :  { %v1497_v1 = vmul.f32 0.0, %v1496_v27 }
0x13d5   :  { %v1500_v28 = vpop.permute.xlu2 %1499 }
0x13d6   :  { %v1502_v30 = vmul.f32 %v1500_v28, %v1496_v27 }
0x13d8   :  { %1504 = vrot.lane.b32.xlu1 %v1502_v30, %s2830_s27 }
0x13e5   :  { %v1480_v50 = vpop.permute.xlu1 %1479 }
0x13e6   :  { %v1482_v34 = vmul.f32 %v1480_v50, %v1476_v32 }
0x13e8   :  { %1484 = vrot.lane.b32.xlu0 %v1482_v34, %s2830_s27 }
0x144a   :  { %v1505_v35 = vpop.permute.xlu1 %1504 }
0x144b   :  { %v1507_v12 = vadd.f32 %v1505_v35, %v1497_v1 }
0x144d   :  { %2515 = vtanh.f32 %v1507_v12 }
0x1453   :  { %v2516_v36 = vpop.eup %2515 }
0x1454   :  { %1510 = vrot.lane.b32.xlu0 %v2516_v36, %s2843_s4 }
0x145a   :  { %v1485_v52 = vpop.permute.xlu0 %1484 }
0x145b   :  { %v1487_v41 = vadd.f32 %v1485_v52, %v1477_v37  ;;  %v3329_v52 = vpop.f32.mrf.mxu2 }
0x145d   :  { %2517 = vtanh.f32 %v1487_v41 }
0x1463   :  { %v2518_v48 = vpop.eup %2517 }
0x1464   :  { %1490 = vrot.lane.b32.xlu2 %v2518_v48, %s2843_s4  ;;  %v3333_v48 = vpop.f32.mrf.mxu2 }
0x14be   :  { %v1491_v53 = vpop.permute.xlu2 %1490 }
0x14bf   :  { %v1493_v56 = vmul.f32 %v1491_v53, %v1476_v32  ;;  %v1270_v53 = vadd.f32 %v3248_v43, %v3265_v54 }
0x14c1   :  { %1515 = vrot.lane.b32.xlu1 %v1493_v56, %s2844_s18  ;;  %v1311_v56 = vadd.f32 %v3256_v49, %v1270_v53 }
0x14c6   :  { %v1511_v55 = vpop.permute.xlu0 %1510 }
0x14c7   :  { %v1513_v59 = vmul.f32 %v1511_v55, %v1496_v27 }
0x14c9   :  { %1520 = vrot.lane.b32.xlu2 %v1513_v59, %s2844_s18 }
0x1523   :  { %v1521_v3 = vpop.permute.xlu2 %1520 }
0x1524   :  { %1524 = vst.msk [vmem:[#allocation3 + $0x78] sm:$0xff] %vm363_vm0, %v1521_v3 }
0x1533   :  { %v1516_v4 = vpop.permute.xlu1 %1515 }
0x1534   :  { %1518 = vst.msk [vmem:[#allocation3] sm:$0xff] %vm363_vm0, %v1516_v4  ;;  %2414 = vmatmul.msk.f32.vlgmr.msra.gmra.mxu1 %vm363_vm0, %v1516_v4  ;;  %v1361_v4 = vadd.f32 %v3286_v15, %v3289_v14 }
0x1535   :  { %1766 = vmatpush.msra.mxu1 %v3225_v33 }
0x1536   :  { %v1402_v8 = vadd.f32 %v3277_v6, %v1361_v4 }
0x1537   :  { %1767 = vmatpush.msra.mxu1 %v3227_v26 }
0x153c   :  { %2415 = vmatmul.msk.f32.vlgmr.msrb.gmra.mxu1 %vm363_vm0, %v1521_v3 }
0x153d   :  { %1964 = vmatpush.msrb.mxu1 %v3225_v33 }
0x153f   :  { %1965 = vmatpush.msrb.mxu1 %v3227_v26 }
0x15b1   :  { %v1545_v10 = vpop.f32.mrf.mxu1 }
0x15b2   :  { %v1548_v39 = vadd.f32 %v1545_v10, %v1308_v9 }
0x15b4   :  { %2519 = vtanh.f32 %v1548_v39 }
0x15b9   :  { %v1569_v18 = vpop.f32.mrf.mxu1 }
0x15ba   :  { %v2520_v13 = vpop.eup %2519  ;;  %v1572_v19 = vadd.f32 %v1569_v18, %v1405_v17 }
0x15bb   :  { %1578 = vrot.lane.b32.xlu1 %v2520_v13, %s2842_s17  ;;  %v1574_v22 = vmul.f32 0.5, %v2520_v13 }
0x15bc   :  { %2521 = vtanh.f32 %v1572_v19 }
0x15bd   :  { %v1575_v0 = vadd.f32 0.5, %v1574_v22 }
0x15bf   :  { %v1576_v30 = vmul.f32 %v1575_v0, %v1487_v41  ;;  %v3331_v41 = vpop.f32.mrf.mxu3 }
0x15c2   :  { %v2522_v21 = vpop.eup %2521 }
0x15c3   :  { %1598 = vrot.lane.b32.xlu0 %v2522_v21, %s2842_s17  ;;  %v1594_v23 = vmul.f32 0.5, %v2522_v21 }
0x15c5   :  { %v1595_v24 = vadd.f32 0.5, %v1594_v23 }
0x15c7   :  { %v1596_v2 = vmul.f32 %v1595_v24, %v1507_v12  ;;  %v3338_v55 = vpop.f32.mrf.mxu3 }
0x162d   :  { %v1579_v58 = vpop.permute.xlu1 %1578 }
0x162e   :  { %v1581_v44 = vmul.f32 %v1579_v58, %v1575_v0 }
0x1630   :  { %1583 = vrot.lane.b32.xlu0 %v1581_v44, %s2830_s27 }
0x1635   :  { %v1599_v38 = vpop.permute.xlu0 %1598 }
0x1636   :  { %v1601_v62 = vmul.f32 %v1599_v38, %v1595_v24 }
0x1638   :  { %1603 = vrot.lane.b32.xlu2 %v1601_v62, %s2830_s27 }
0x1692   :  { %v1604_v25 = vpop.permute.xlu2 %1603 }
0x1693   :  { %v1606_v27 = vadd.f32 %v1604_v25, %v1596_v2 }
0x1695   :  { %2523 = vtanh.f32 %v1606_v27 }
0x169b   :  { %v2524_v28 = vpop.eup %2523 }
0x169c   :  { %1609 = vrot.lane.b32.xlu1 %v2524_v28, %s2843_s4 }
0x16a2   :  { %v1584_v31 = vpop.permute.xlu0 %1583 }
0x16a3   :  { %v1586_v32 = vadd.f32 %v1584_v31, %v1576_v30  ;;  %v1358_v31 = vadd.f32 %v3279_v7, %v3289_v14 }
0x16a5   :  { %2525 = vtanh.f32 %v1586_v32 }
0x16ab   :  { %v2526_v50 = vpop.eup %2525 }
0x16ac   :  { %1589 = vrot.lane.b32.xlu2 %v2526_v50, %s2843_s4 }
0x1706   :  { %v1590_v34 = vpop.permute.xlu2 %1589 }
0x1707   :  { %v1592_v1 = vmul.f32 %v1590_v34, %v1575_v0 }
0x1709   :  { %1614 = vrot.lane.b32.xlu1 %v1592_v1, %s2844_s18 }
0x170e   :  { %v1610_v35 = vpop.permute.xlu1 %1609 }
0x170f   :  { %v1612_v36 = vmul.f32 %v1610_v35, %v1595_v24 }
0x1711   :  { %1620 = vrot.lane.b32.xlu0 %v1612_v36, %s2844_s18 }
0x177b   :  { %v1615_v12 = vpop.permute.xlu1 %1614 }
0x177c   :  { %1618 = vst.msk [vmem:[#allocation3 + $0x10] sm:$0xff] %vm363_vm0, %v1615_v12  ;;  %2416 = vmatmul.msk.f32.vlgmr.msrb.gmra.mxu2 %vm363_vm0, %v1615_v12 }
0x177d   :  { %2038 = vmatpush.msrb.mxu2 %v3210_v20 }
0x177f   :  { %2039 = vmatpush.msrb.mxu2 %v3216_v29 }
0x1783   :  { %v1621_v37 = vpop.permute.xlu0 %1620 }
0x1784   :  { %1624 = vst.msk [vmem:[#allocation3 + $0x68] sm:$0xff] %vm363_vm0, %v1621_v37  ;;  %2417 = vmatmul.msk.f32.vlgmr.msrb.gmra.mxu3 %vm363_vm0, %v1621_v37 }
0x1785   :  { %2062 = vmatpush.msrb.mxu3 %v3225_v33 }
0x1787   :  { %2063 = vmatpush.msrb.mxu3 %v3227_v26 }
0x17ff   :  { %v1645_v59 = vpop.f32.mrf.mxu2 }
0x1800   :  { %v1648_v3 = vadd.f32 %v1645_v59, %v1311_v56 }
0x1802   :  { %2527 = vtanh.f32 %v1648_v3 }
0x1807   :  { %v1669_v9 = vpop.f32.mrf.mxu3 }
0x1808   :  { %v2528_v10 = vpop.eup %2527  ;;  %v1672_v39 = vadd.f32 %v1669_v9, %v1402_v8 }
0x1809   :  { %1678 = vrot.lane.b32.xlu0 %v2528_v10, %s2842_s17  ;;  %v1674_v13 = vmul.f32 0.5, %v2528_v10 }
0x180a   :  { %2529 = vtanh.f32 %v1672_v39 }
0x180b   :  { %v1675_v19 = vadd.f32 0.5, %v1674_v13 }
0x180d   :  { %v1676_v6 = vmul.f32 %v1675_v19, %v1586_v32  ;;  %v1399_v32 = vadd.f32 %v3270_v61, %v1358_v31 }
0x1810   :  { %v2530_v16 = vpop.eup %2529 }
0x1811   :  { %1698 = vrot.lane.b32.xlu2 %v2530_v16, %s2842_s17  ;;  %v1694_v43 = vmul.f32 0.5, %v2530_v16 }
0x1813   :  { %v1695_v49 = vadd.f32 0.5, %v1694_v43 }
0x1815   :  { %v1696_v58 = vmul.f32 %v1695_v49, %v1606_v27 }
0x186b   :  { %v1699_v17 = vpop.permute.xlu2 %1698 }
0x186c   :  { %v1701_v18 = vmul.f32 %v1699_v17, %v1695_v49 }
0x186e   :  { %1703 = vrot.lane.b32.xlu1 %v1701_v18, %s2830_s27 }
0x187b   :  { %v1679_v15 = vpop.permute.xlu0 %1678 }
0x187c   :  { %v1681_v21 = vmul.f32 %v1679_v15, %v1675_v19  ;;  %v1355_v15 = vadd.f32 %v3272_v63, %v3289_v14 }
0x187e   :  { %1683 = vrot.lane.b32.xlu2 %v1681_v21, %s2830_s27  ;;  %v1396_v21 = vadd.f32 %v3258_v60, %v1355_v15 }
0x18d8   :  { %v1684_v22 = vpop.permute.xlu2 %1683 }
0x18d9   :  { %v1686_v0 = vadd.f32 %v1684_v22, %v1676_v6 }
0x18db   :  { %2531 = vtanh.f32 %v1686_v0 }
0x18e0   :  { %v1704_v44 = vpop.permute.xlu1 %1703 }
0x18e1   :  { %v2532_v23 = vpop.eup %2531  ;;  %v1706_v24 = vadd.f32 %v1704_v44, %v1696_v58 }
0x18e2   :  { %1689 = vrot.lane.b32.xlu1 %v2532_v23, %s2843_s4 }
0x18e3   :  { %2533 = vtanh.f32 %v1706_v24 }
0x18e9   :  { %v2534_v38 = vpop.eup %2533 }
0x18ea   :  { %1709 = vrot.lane.b32.xlu0 %v2534_v38, %s2843_s4 }
0x1954   :  { %v1690_v62 = vpop.permute.xlu1 %1689 }
0x1955   :  { %v1692_v2 = vmul.f32 %v1690_v62, %v1675_v19 }
0x1957   :  { %1714 = vrot.lane.b32.xlu0 %v1692_v2, %s2844_s18 }
0x195c   :  { %v1710_v25 = vpop.permute.xlu0 %1709 }
0x195d   :  { %v1712_v28 = vmul.f32 %v1710_v25, %v1695_v49 }
0x195f   :  { %1720 = vrot.lane.b32.xlu2 %v1712_v28, %s2844_s18 }
0x19b9   :  { %v1721_v30 = vpop.permute.xlu2 %1720 }
0x19ba   :  { %1724 = vst.msk [vmem:[#allocation3 + $0x58] sm:$0xff] %vm363_vm0, %v1721_v30  ;;  %2419 = vmatmul.msk.f32.vlgmr.msra.gmra.mxu1 %vm363_vm0, %v1721_v30 }
0x19bb   :  { %2160 = vmatpush.msra.mxu1 %v3225_v33 }
0x19bd   :  { %2161 = vmatpush.msra.mxu1 %v3227_v26 }
0x19c9   :  { %v1715_v27 = vpop.permute.xlu0 %1714 }
0x19ca   :  { %1718 = vst.msk [vmem:[#allocation3 + $0x20] sm:$0xff] %vm363_vm0, %v1715_v27  ;;  %2418 = vmatmul.msk.f32.vlgmr.msra.gmra.mxu0 %vm363_vm0, %v1715_v27 }
0x19cb   :  { %2136 = vmatpush.msra.mxu0 %v3210_v20 }
0x19cd   :  { %2137 = vmatpush.msra.mxu0 %v3216_v29 }
0x1a37   :  { %v1769_v50 = vpop.f32.mrf.mxu1 }
0x1a38   :  { %v1772_v34 = vadd.f32 %v1769_v50, %v1399_v32 }
0x1a3a   :  { %2535 = vtanh.f32 %v1772_v34 }
0x1a40   :  { %v2536_v33 = vpop.eup %2535 }
0x1a41   :  { %1798 = vrot.lane.b32.xlu1 %v2536_v33, %s2842_s17  ;;  %v1794_v61 = vmul.f32 0.5, %v2536_v33 }
0x1a43   :  { %v1795_v7 = vadd.f32 0.5, %v1794_v61 }
0x1a47   :  { %v1745_v26 = vpop.f32.mrf.mxu0 }
0x1a48   :  { %v1748_v1 = vadd.f32 %v1745_v26, %v3268_v57  ;;  %v1796_v57 = vmul.f32 %v1795_v7, %v1706_v24 }
0x1a4a   :  { %2537 = vtanh.f32 %v1748_v1 }
0x1a50   :  { %v2538_v35 = vpop.eup %2537 }
0x1a51   :  { %1778 = vrot.lane.b32.xlu2 %v2538_v35, %s2842_s17  ;;  %v1774_v20 = vmul.f32 0.5, %v2538_v35 }
0x1a53   :  { %v1775_v29 = vadd.f32 0.5, %v1774_v20 }
0x1a55   :  { %v1776_v56 = vmul.f32 %v1775_v29, %v1686_v0 }
0x1aab   :  { %v1779_v36 = vpop.permute.xlu2 %1778 }
0x1aac   :  { %v1781_v12 = vmul.f32 %v1779_v36, %v1775_v29 }
0x1aae   :  { %1783 = vrot.lane.b32.xlu1 %v1781_v12, %s2830_s27  ;;  %v1352_v12 = vadd.f32 %v3260_v51, %v3289_v14 }
0x1ab0   :  { %v1393_v61 = vadd.f32 %v3252_v45, %v1352_v12 }
0x1ab3   :  { %v1799_v37 = vpop.permute.xlu1 %1798 }
0x1ab4   :  { %v1801_v53 = vmul.f32 %v1799_v37, %v1795_v7 }
0x1ab6   :  { %1803 = vrot.lane.b32.xlu0 %v1801_v53, %s2830_s27 }
0x1b20   :  { %v1784_v59 = vpop.permute.xlu1 %1783 }
0x1b21   :  { %v1786_v3 = vadd.f32 %v1784_v59, %v1776_v56 }
0x1b23   :  { %2539 = vtanh.f32 %v1786_v3 }
0x1b28   :  { %v1804_v4 = vpop.permute.xlu0 %1803 }
0x1b29   :  { %v2540_v8 = vpop.eup %2539  ;;  %v1806_v9 = vadd.f32 %v1804_v4, %v1796_v57 }
0x1b2a   :  { %1789 = vrot.lane.b32.xlu0 %v2540_v8, %s2843_s4 }
0x1b2b   :  { %2541 = vtanh.f32 %v1806_v9 }
0x1b31   :  { %v2542_v10 = vpop.eup %2541 }
0x1b32   :  { %1809 = vrot.lane.b32.xlu2 %v2542_v10, %s2843_s4 }
0x1b8c   :  { %v1810_v39 = vpop.permute.xlu2 %1809 }
0x1b8d   :  { %v1812_v16 = vmul.f32 %v1810_v39, %v1795_v7 }
0x1b8f   :  { %1820 = vrot.lane.b32.xlu1 %v1812_v16, %s2844_s18 }
0x1b9c   :  { %v1790_v43 = vpop.permute.xlu0 %1789 }
0x1b9d   :  { %v1792_v49 = vmul.f32 %v1790_v43, %v1775_v29 }
0x1b9f   :  { %1814 = vrot.lane.b32.xlu2 %v1792_v49, %s2844_s18 }
0x1bf9   :  { %v1815_v17 = vpop.permute.xlu2 %1814 }
0x1bfa   :  { %1818 = vst.msk [vmem:[#allocation3 + $0x30] sm:$0xff] %vm363_vm0, %v1815_v17  ;;  %2420 = vmatmul.msk.f32.vlgmr.msra.gmra.mxu2 %vm363_vm0, %v1815_v17 }
0x1c01   :  { %v1821_v18 = vpop.permute.xlu1 %1820 }
0x1c02   :  { %1824 = vst.msk [vmem:[#allocation3 + $0x48] sm:$0xff] %vm363_vm0, %v1821_v18  ;;  %2421 = vmatmul.msk.f32.vlgmr.msra.gmra.mxu3 %vm363_vm0, %v1821_v18 }
0x1c7d   :  { %v1845_v13 = vpop.f32.mrf.mxu2 }
0x1c7e   :  { %v1848_v19 = vadd.f32 %v1845_v13, %v3275_v5 }
0x1c80   :  { %2543 = vtanh.f32 %v1848_v19 }
0x1c85   :  { %v1869_v6 = vpop.f32.mrf.mxu3 }
0x1c86   :  { %v2544_v22 = vpop.eup %2543  ;;  %v1872_v0 = vadd.f32 %v1869_v6, %v1396_v21 }
0x1c87   :  { %1878 = vrot.lane.b32.xlu1 %v2544_v22, %s2842_s17  ;;  %v1874_v44 = vmul.f32 0.5, %v2544_v22 }
0x1c88   :  { %2545 = vtanh.f32 %v1872_v0  ;;  %v1349_v0 = vadd.f32 %v3254_v47, %v3289_v14 }
0x1c89   :  { %v1875_v23 = vadd.f32 0.5, %v1874_v44 }
0x1c8b   :  { %v1876_v27 = vmul.f32 %v1875_v23, %v1786_v3 }
0x1c8e   :  { %v2546_v58 = vpop.eup %2545 }
0x1c8f   :  { %1898 = vrot.lane.b32.xlu0 %v2546_v58, %s2842_s17  ;;  %v1894_v5 = vmul.f32 0.5, %v2546_v58  ;;  %v1390_v58 = vadd.f32 %v3244_v46, %v1349_v0  ;;  %v2310_v0 = vld [vmem:[#allocation19 + $0xe8] sm:$0xff] }
0x1c91   :  { %v1895_v62 = vadd.f32 0.5, %v1894_v5 }
0x1c93   :  { %v1896_v60 = vmul.f32 %v1895_v62, %v1806_v9 }
0x1cf9   :  { %v1879_v24 = vpop.permute.xlu1 %1878 }
0x1cfa   :  { %v1881_v38 = vmul.f32 %v1879_v24, %v1875_v23 }
0x1cfc   :  { %1883 = vrot.lane.b32.xlu0 %v1881_v38, %s2830_s27  ;;  %v1282_v38 = vadd.f32 %v3329_v52, %v3265_v54 }
0x1cfe   :  { %v1323_v5 = vadd.f32 %v3331_v41, %v1282_v38  ;;  %v2288_v38 = vld [vmem:[#allocation19 + $0x38] sm:$0xff] }
0x1d01   :  { %v1899_v63 = vpop.permute.xlu0 %1898 }
0x1d02   :  { %v1901_v2 = vmul.f32 %v1899_v63, %v1895_v62 }
0x1d04   :  { %1903 = vrot.lane.b32.xlu2 %v1901_v2, %s2830_s27 }
0x1d5e   :  { %v1904_v25 = vpop.permute.xlu2 %1903 }
0x1d5f   :  { %v1906_v28 = vadd.f32 %v1904_v25, %v1896_v60 }
0x1d61   :  { %2547 = vtanh.f32 %v1906_v28 }
0x1d67   :  { %v2548_v30 = vpop.eup %2547 }
0x1d68   :  { %1909 = vrot.lane.b32.xlu1 %v2548_v30, %s2843_s4 }
0x1d6e   :  { %v1884_v31 = vpop.permute.xlu0 %1883 }
0x1d6f   :  { %v1886_v32 = vadd.f32 %v1884_v31, %v1876_v27 }
0x1d71   :  { %2549 = vtanh.f32 %v1886_v32 }
0x1d77   :  { %v2550_v50 = vpop.eup %2549 }
0x1d78   :  { %1889 = vrot.lane.b32.xlu2 %v2550_v50, %s2843_s4 }
0x1dd2   :  { %v1890_v34 = vpop.permute.xlu2 %1889 }
0x1dd3   :  { %v1892_v33 = vmul.f32 %v1890_v34, %v1875_v23 }
0x1dd5   :  { %1914 = vrot.lane.b32.xlu1 %v1892_v33, %s2844_s18 }
0x1dda   :  { %v1910_v26 = vpop.permute.xlu1 %1909 }
0x1ddb   :  { %v1912_v1 = vmul.f32 %v1910_v26, %v1895_v62 }
0x1ddd   :  { %1919 = vrot.lane.b32.xlu0 %v1912_v1, %s2844_s18 }
0x1e47   :  { %v1915_v35 = vpop.permute.xlu1 %1914 }
0x1e48   :  { %1917 = vst.msk [vmem:[#allocation3 + $0x40] sm:$0xff] %vm363_vm0, %v1915_v35  ;;  %2422 = vmatmul.msk.f32.vlgmr.msrb.gmra.mxu0 %vm363_vm0, %v1915_v35 }
0x1e4f   :  { %v1920_v20 = vpop.permute.xlu0 %1919 }
0x1e50   :  { %1922 = vst.msk [vmem:[#allocation3 + $0x38] sm:$0xff] %vm363_vm0, %v1920_v20  ;;  %2423 = vmatmul.msk.f32.vlgmr.msrb.gmra.mxu1 %vm363_vm0, %v1920_v20 }
0x1ec5   :  { %v1943_v29 = vpop.f32.mrf.mxu0 }
0x1ec6   :  { %v1946_v36 = vadd.f32 %v1943_v29, %v3282_v11 }
0x1ec8   :  { %2551 = vtanh.f32 %v1946_v36 }
0x1ecd   :  { %v1967_v7 = vpop.f32.mrf.mxu1 }
0x1ece   :  { %v2552_v37 = vpop.eup %2551  ;;  %v1970_v53 = vadd.f32 %v1967_v7, %v1393_v61  ;;  %v1285_v7 = vadd.f32 %v3333_v48, %v3265_v54 }
0x1ecf   :  { %1976 = vrot.lane.b32.xlu0 %v2552_v37, %s2842_s17  ;;  %v1972_v11 = vmul.f32 0.5, %v2552_v37 }
0x1ed0   :  { %2553 = vtanh.f32 %v1970_v53  ;;  %v1326_v37 = vadd.f32 %v3338_v55, %v1285_v7  ;;  %v2301_v7 = vld [vmem:[#allocation19 + $0xa0] sm:$0xff] }
0x1ed1   :  { %v1973_v8 = vadd.f32 0.5, %v1972_v11 }
0x1ed3   :  { %v1974_v45 = vmul.f32 %v1973_v8, %v1886_v32 }
0x1ed6   :  { %v2554_v56 = vpop.eup %2553 }
0x1ed7   :  { %1996 = vrot.lane.b32.xlu2 %v2554_v56, %s2842_s17  ;;  %v1992_v59 = vmul.f32 0.5, %v2554_v56 }
0x1ed9   :  { %v1993_v3 = vadd.f32 0.5, %v1992_v59  ;;  %v1346_v59 = vadd.f32 %v3246_v42, %v3289_v14 }
0x1edb   :  { %v1994_v16 = vmul.f32 %v1993_v3, %v1906_v28 }
0x1f31   :  { %v1997_v57 = vpop.permute.xlu2 %1996 }
0x1f32   :  { %v1999_v4 = vmul.f32 %v1997_v57, %v1993_v3 }
0x1f34   :  { %2001 = vrot.lane.b32.xlu1 %v1999_v4, %s2830_s27 }
0x1f41   :  { %v1977_v51 = vpop.permute.xlu0 %1976 }
0x1f42   :  { %v1979_v9 = vmul.f32 %v1977_v51, %v1973_v8 }
0x1f44   :  { %1981 = vrot.lane.b32.xlu2 %v1979_v9, %s2830_s27 }
0x1f9e   :  { %v1982_v10 = vpop.permute.xlu2 %1981 }
0x1f9f   :  { %v1984_v39 = vadd.f32 %v1982_v10, %v1974_v45 }
0x1fa1   :  { %2555 = vtanh.f32 %v1984_v39 }
0x1fa6   :  { %v2002_v43 = vpop.permute.xlu1 %2001 }
0x1fa7   :  { %v2556_v49 = vpop.eup %2555  ;;  %v2004_v17 = vadd.f32 %v2002_v43, %v1994_v16 }
0x1fa8   :  { %1987 = vrot.lane.b32.xlu1 %v2556_v49, %s2843_s4 }
0x1fa9   :  { %2557 = vtanh.f32 %v2004_v17 }
0x1faf   :  { %v2558_v18 = vpop.eup %2557 }
0x1fb0   :  { %2007 = vrot.lane.b32.xlu0 %v2558_v18, %s2843_s4 }
0x201a   :  { %v1988_v13 = vpop.permute.xlu1 %1987 }
0x201b   :  { %v1990_v19 = vmul.f32 %v1988_v13, %v1973_v8  ;;  %v2296_v13 = vld [vmem:[#allocation19 + $0x78] sm:$0xff] }
0x201c   :  { %2313 = vmatpush.msra.mxu2 %v2296_v13  ;;  %v2265_v13 = vld [vmem:[#allocation17] sm:$0xff] }
0x201d   :  { %2012 = vrot.lane.b32.xlu0 %v1990_v19, %s2844_s18  ;;  %v2295_v19 = vld [vmem:[#allocation19 + $0x70] sm:$0xff] }
0x201e   :  { %2314 = vmatpush.msra.mxu2 %v2295_v19 }
0x2022   :  { %v2008_v15 = vpop.permute.xlu0 %2007 }
0x2023   :  { %v2010_v21 = vmul.f32 %v2008_v15, %v1993_v3  ;;  %v1387_v3 = vadd.f32 %v3240_v40, %v1346_v59  ;;  %v2294_v15 = vld [vmem:[#allocation19 + $0x68] sm:$0xff]  ;;  %v2299_v59 = vld [vmem:[#allocation19 + $0x90] sm:$0xff] }
0x2024   :  { %2315 = vmatpush.msra.mxu2 %v2294_v15 }
0x2025   :  { %2017 = vrot.lane.b32.xlu2 %v2010_v21, %s2844_s18  ;;  %v2312_v21 = vld [vmem:[#allocation19 + $0xf8] sm:$0xff] }
0x2026   :  { %2333 = vmatpush.msra.mxu3 %v2312_v21  ;;  %v2237_v21 = vld [vmem:[#allocation3 + $0x20] sm:$0xff] }
0x207f   :  { %v2018_v6 = vpop.permute.xlu2 %2017 }
0x2080   :  { %2020 = vst.msk [vmem:[#allocation3 + $0x28] sm:$0xff] %vm363_vm0, %v2018_v6  ;;  %2425 = vmatmul.msk.f32.vlgmr.msrb.gmra.mxu3 %vm363_vm0, %v2018_v6  ;;  %v2311_v6 = vld [vmem:[#allocation19 + $0xf0] sm:$0xff] }
0x2081   :  { %2334 = vmatpush.msra.mxu3 %v2311_v6  ;;  %v2239_v6 = vld [vmem:[#allocation3 + $0x30] sm:$0xff] }
0x2083   :  { %2335 = vmatpush.msra.mxu3 %v2310_v0  ;;  %v2233_v0 = vld [vmem:[#allocation3] sm:$0xff] }
0x208f   :  { %v2013_v22 = vpop.permute.xlu0 %2012 }
0x2090   :  { %2015 = vst.msk [vmem:[#allocation3 + $0x50] sm:$0xff] %vm363_vm0, %v2013_v22  ;;  %2424 = vmatmul.msk.f32.vlgmr.msrb.gmra.mxu2 %vm363_vm0, %v2013_v22  ;;  %v2293_v22 = vld [vmem:[#allocation19 + $0x60] sm:$0xff] }
0x2091   :  { %2316 = vmatpush.msra.mxu2 %v2293_v22 }
0x2103   :  { %v2065_v44 = vpop.f32.mrf.mxu3 }
0x2104   :  { %v2068_v23 = vadd.f32 %v2065_v44, %v1390_v58  ;;  %v2292_v58 = vld [vmem:[#allocation19 + $0x58] sm:$0xff]  ;;  %v2291_v44 = vld [vmem:[#allocation19 + $0x50] sm:$0xff] }
0x2105   :  { %2317 = vmatpush.msra.mxu2 %v2292_v58  ;;  %v2235_v58 = vld [vmem:[#allocation3 + $0x10] sm:$0xff] }
0x2106   :  { %2559 = vtanh.f32 %v2068_v23  ;;  %v2290_v23 = vld [vmem:[#allocation19 + $0x48] sm:$0xff] }
0x2107   :  { %2318 = vmatpush.msra.mxu2 %v2291_v44  ;;  %v2241_v44 = vld [vmem:[#allocation3 + $0x40] sm:$0xff] }
0x2109   :  { %2319 = vmatpush.msra.mxu2 %v2290_v23  ;;  %v2243_v23 = vld [vmem:[#allocation3 + $0x50] sm:$0xff] }
0x210c   :  { %v2560_v24 = vpop.eup %2559 }
0x210d   :  { %2094 = vrot.lane.b32.xlu1 %v2560_v24, %s2842_s17  ;;  %v2090_v28 = vmul.f32 0.5, %v2560_v24  ;;  %v2289_v24 = vld [vmem:[#allocation19 + $0x40] sm:$0xff] }
0x210e   :  { %2320 = vmatpush.msra.mxu2 %v2289_v24 }
0x210f   :  { %v2091_v30 = vadd.f32 0.5, %v2090_v28  ;;  %v2280_v28 = vld [vmem:[#allocation17 + $0x78] sm:$0xff] }
0x2110   :  { %2321 = vmatpush.msra.mxu2 %v2288_v38  ;;  %2353 = vmatpush.msrb.mxu0 %v2280_v28  ;;  %v2249_v38 = vmax.f32 %v2233_v0, %v2237_v21 }
0x2111   :  { %v2092_v50 = vmul.f32 %v2091_v30, %v2004_v17 }
0x2113   :  { %v2041_v62 = vpop.f32.mrf.mxu2 }
0x2114   :  { %v2044_v63 = vadd.f32 %v2041_v62, %v1323_v5 }
0x2116   :  { %2561 = vtanh.f32 %v2044_v63 }
0x211c   :  { %v2562_v2 = vpop.eup %2561 }
0x211d   :  { %2074 = vrot.lane.b32.xlu2 %v2562_v2, %s2842_s17  ;;  %v2070_v47 = vmul.f32 0.5, %v2562_v2 }
0x211f   :  { %v2071_v60 = vadd.f32 0.5, %v2070_v47  ;;  %v2287_v47 = vld [vmem:[#allocation19 + $0x30] sm:$0xff] }
0x2120   :  { %2322 = vmatpush.msra.mxu2 %v2287_v47 }
0x2121   :  { %v2072_v52 = vmul.f32 %v2071_v60, %v1984_v39 }
0x2177   :  { %v2075_v46 = vpop.permute.xlu2 %2074 }
0x2178   :  { %v2077_v25 = vmul.f32 %v2075_v46, %v2071_v60  ;;  %v2286_v46 = vld [vmem:[#allocation19 + $0x28] sm:$0xff] }
0x2179   :  { %2323 = vmatpush.msra.mxu2 %v2286_v46 }
0x217a   :  { %2079 = vrot.lane.b32.xlu1 %v2077_v25, %s2830_s27  ;;  %v2308_v25 = vld [vmem:[#allocation19 + $0xd8] sm:$0xff] }
0x217f   :  { %v2095_v27 = vpop.permute.xlu1 %2094 }
0x2180   :  { %v2097_v31 = vmul.f32 %v2095_v27, %v2091_v30  ;;  %v2307_v27 = vld [vmem:[#allocation19 + $0xd0] sm:$0xff] }
0x2182   :  { %2099 = vrot.lane.b32.xlu0 %v2097_v31, %s2830_s27  ;;  %v2279_v31 = vld [vmem:[#allocation17 + $0x70] sm:$0xff] }
0x2183   :  { %2354 = vmatpush.msrb.mxu0 %v2279_v31 }
0x21ec   :  { %v2080_v41 = vpop.permute.xlu1 %2079 }
0x21ed   :  { %v2082_v32 = vadd.f32 %v2080_v41, %v2072_v52  ;;  %v2278_v52 = vld [vmem:[#allocation17 + $0x68] sm:$0xff]  ;;  %v2284_v41 = vld [vmem:[#allocation19 + $0x18] sm:$0xff] }
0x21ee   :  { %2355 = vmatpush.msrb.mxu0 %v2278_v52 }
0x21ef   :  { %2563 = vtanh.f32 %v2082_v32 }
0x21f4   :  { %v2100_v34 = vpop.permute.xlu0 %2099 }
0x21f5   :  { %v2564_v33 = vpop.eup %2563  ;;  %v2102_v26 = vadd.f32 %v2100_v34, %v2092_v50  ;;  %v2283_v50 = vld [vmem:[#allocation19 + $0x10] sm:$0xff]  ;;  %v2305_v34 = vld [vmem:[#allocation19 + $0xc0] sm:$0xff] }
0x21f6   :  { %2085 = vrot.lane.b32.xlu0 %v2564_v33, %s2843_s4  ;;  %v2277_v33 = vld [vmem:[#allocation17 + $0x60] sm:$0xff] }
0x21f7   :  { %2565 = vtanh.f32 %v2102_v26  ;;  %2356 = vmatpush.msrb.mxu0 %v2277_v33 }
0x21fd   :  { %v2566_v1 = vpop.eup %2565 }
0x21fe   :  { %2105 = vrot.lane.b32.xlu2 %v2566_v1, %s2843_s4  ;;  %v2304_v1 = vld [vmem:[#allocation19 + $0xb8] sm:$0xff] }
0x2258   :  { %v2106_v35 = vpop.permute.xlu2 %2105 }
0x2259   :  { %v2108_v20 = vmul.f32 %v2106_v35, %v2091_v30  ;;  %v2285_v30 = vld [vmem:[#allocation19 + $0x20] sm:$0xff]  ;;  %v2276_v35 = vld [vmem:[#allocation17 + $0x58] sm:$0xff] }
0x225a   :  { %2324 = vmatpush.msra.mxu2 %v2285_v30  ;;  %2357 = vmatpush.msrb.mxu0 %v2276_v35  ;;  %v2246_v35 = vld [vmem:[#allocation3 + $0x68] sm:$0xff] }
0x225b   :  { %2115 = vrot.lane.b32.xlu1 %v2108_v20, %s2844_s18  ;;  %v2281_v20 = vld [vmem:[#allocation19] sm:$0xff] }
0x225c   :  { %2325 = vmatpush.msra.mxu2 %v2284_v41 }
0x225e   :  { %2326 = vmatpush.msra.mxu2 %v2283_v50  ;;  %v2244_v50 = vld [vmem:[#allocation3 + $0x58] sm:$0xff] }
0x2268   :  { %v2086_v29 = vpop.permute.xlu0 %2085 }
0x2269   :  { %v2088_v36 = vmul.f32 %v2086_v29, %v2071_v60  ;;  %v2309_v60 = vld [vmem:[#allocation19 + $0xe0] sm:$0xff]  ;;  %v2303_v29 = vld [vmem:[#allocation19 + $0xb0] sm:$0xff] }
0x226a   :  { %2336 = vmatpush.msra.mxu3 %v2309_v60 }
0x226b   :  { %2110 = vrot.lane.b32.xlu2 %v2088_v36, %s2844_s18  ;;  %v2275_v36 = vld [vmem:[#allocation17 + $0x50] sm:$0xff] }
0x226c   :  { %2337 = vmatpush.msra.mxu3 %v2308_v25  ;;  %2358 = vmatpush.msrb.mxu0 %v2275_v36 }
0x226e   :  { %2338 = vmatpush.msra.mxu3 %v2307_v27  ;;  %v2240_v27 = vld [vmem:[#allocation3 + $0x38] sm:$0xff] }
0x22c5   :  { %v2111_v12 = vpop.permute.xlu2 %2110 }
0x22c6   :  { %2113 = vst.msk [vmem:[#allocation3 + $0x60] sm:$0xff] %vm363_vm0, %v2111_v12  ;;  %2426 = vmatmul.msk.f32.vlgmr.msra.gmra.mxu0 %vm363_vm0, %v2111_v12  ;;  %v2302_v12 = vld [vmem:[#allocation19 + $0xa8] sm:$0xff] }
0x22cd   :  { %v2116_v61 = vpop.permute.xlu1 %2115 }
0x22ce   :  { %2118 = vst.msk [vmem:[#allocation3 + $0x18] sm:$0xff] %vm363_vm0, %v2116_v61  ;;  %2427 = vmatmul.msk.f32.vlgmr.msra.gmra.mxu1 %vm363_vm0, %v2116_v61  ;;  %v2274_v61 = vld [vmem:[#allocation17 + $0x48] sm:$0xff] }
0x22cf   :  { %2359 = vmatpush.msrb.mxu0 %v2274_v61 }
0x22d5   :  { %v2236_v28 = vld [vmem:[#allocation3 + $0x18] sm:$0xff] }
0x22d6   :  { %v2257_v52 = vmax.f32 %v2236_v28, %v2240_v27 }
0x22d8   :  { %v2259_v33 = vmax.f32 %v2257_v52, %v2244_v50 }
0x2343   :  { %v2139_v53 = vpop.f32.mrf.mxu0 }
0x2344   :  { %v2142_v56 = vadd.f32 %v2139_v53, %v1326_v37  ;;  %v2273_v37 = vld [vmem:[#allocation17 + $0x40] sm:$0xff]  ;;  %v2300_v53 = vld [vmem:[#allocation19 + $0x98] sm:$0xff] }
0x2345   :  { %2360 = vmatpush.msrb.mxu0 %v2273_v37 }
0x2346   :  { %2567 = vtanh.f32 %v2142_v56  ;;  %v2272_v56 = vld [vmem:[#allocation17 + $0x38] sm:$0xff] }
0x2347   :  { %2361 = vmatpush.msrb.mxu0 %v2272_v56 }
0x234b   :  { %v2163_v57 = vpop.f32.mrf.mxu1 }
0x234c   :  { %v2568_v4 = vpop.eup %2567  ;;  %v2166_v11 = vadd.f32 %v2163_v57, %v1387_v3  ;;  %v2271_v3 = vld [vmem:[#allocation17 + $0x30] sm:$0xff]  ;;  %v2298_v57 = vld [vmem:[#allocation19 + $0x88] sm:$0xff] }
0x234d   :  { %2172 = vrot.lane.b32.xlu1 %v2568_v4, %s2842_s17  ;;  %v2168_v54 = vmul.f32 0.5, %v2568_v4  ;;  %v2270_v4 = vld [vmem:[#allocation17 + $0x28] sm:$0xff]  ;;  %2362 = vmatpush.msrb.mxu0 %v2271_v3 }
0x234e   :  { %2569 = vtanh.f32 %v2166_v11  ;;  %v2297_v11 = vld [vmem:[#allocation19 + $0x80] sm:$0xff] }
0x234f   :  { %v2169_v48 = vadd.f32 0.5, %v2168_v54  ;;  %2363 = vmatpush.msrb.mxu0 %v2270_v4  ;;  %v2217_v54 = vld [vmem:[#allocation5] sm:$0xff] }
0x2351   :  { %v2170_v43 = vmul.f32 %v2169_v48, %v2082_v32  ;;  %v2306_v32 = vld [vmem:[#allocation19 + $0xc8] sm:$0xff] }
0x2352   :  { %2339 = vmatpush.msra.mxu3 %v2306_v32  ;;  %v2238_v32 = vld [vmem:[#allocation3 + $0x28] sm:$0xff] }
0x2354   :  { %v2570_v8 = vpop.eup %2569  ;;  %2340 = vmatpush.msra.mxu3 %v2305_v34 }
0x2355   :  { %2192 = vrot.lane.b32.xlu0 %v2570_v8, %s2842_s17  ;;  %v2188_v9 = vmul.f32 0.5, %v2570_v8  ;;  %v2269_v8 = vld [vmem:[#allocation17 + $0x20] sm:$0xff] }
0x2356   :  { %2341 = vmatpush.msra.mxu3 %v2304_v1  ;;  %2364 = vmatpush.msrb.mxu0 %v2269_v8 }
0x2357   :  { %v2189_v45 = vadd.f32 0.5, %v2188_v9  ;;  %v2267_v9 = vld [vmem:[#allocation17 + $0x10] sm:$0xff] }
0x2358   :  { %2342 = vmatpush.msra.mxu3 %v2303_v29 }
0x2359   :  { %v2190_v40 = vmul.f32 %v2189_v45, %v2102_v26  ;;  %v2282_v26 = vld [vmem:[#allocation19 + $0x8] sm:$0xff] }
0x235a   :  { %2327 = vmatpush.msra.mxu2 %v2282_v26  ;;  %2343 = vmatpush.msra.mxu3 %v2302_v12  ;;  %v2242_v26 = vld [vmem:[#allocation3 + $0x48] sm:$0xff] }
0x235c   :  { %2328 = vmatpush.msra.mxu2 %v2281_v20  ;;  %2344 = vmatpush.msra.mxu3 %v2301_v7  ;;  %v2248_v20 = vld [vmem:[#allocation3 + $0x78] sm:$0xff] }
0x235d   :  { %v2261_v36 = vmax.f32 %v2259_v33, %v2248_v20 }
0x235e   :  { %2345 = vmatpush.msra.mxu3 %v2300_v53 }
0x2360   :  { %2346 = vmatpush.msra.mxu3 %v2299_v59  ;;  %v2446_v59 = vld [vmem:[%s3458_s11] ss:$0 sm:$0xff] }
0x2362   :  { %2347 = vmatpush.msra.mxu3 %v2298_v57 }
0x2364   :  { %2348 = vmatpush.msra.mxu3 %v2297_v11 }
0x23bf   :  { %v2173_v55 = vpop.permute.xlu1 %2172 }
0x23c0   :  { %v2175_v51 = vmul.f32 %v2173_v55, %v2169_v48  ;;  %v2218_v55 = vld [vmem:[#allocation5 + $0x8] sm:$0xff] }
0x23c2   :  { %2177 = vrot.lane.b32.xlu0 %v2175_v51, %s2830_s27  ;;  %v2219_v51 = vld [vmem:[#allocation5 + $0x10] sm:$0xff] }
0x23c7   :  { %v2193_v42 = vpop.permute.xlu0 %2192 }
0x23c8   :  { %v2195_v14 = vmul.f32 %v2193_v42, %v2189_v45  ;;  %v2221_v42 = vld [vmem:[#allocation5 + $0x20] sm:$0xff] }
0x23ca   :  { %2197 = vrot.lane.b32.xlu2 %v2195_v14, %s2830_s27  ;;  %v2222_v14 = vld [vmem:[#allocation5 + $0x28] sm:$0xff] }
0x2424   :  { %v2198_v10 = vpop.permute.xlu2 %2197 }
0x2425   :  { %v2200_v39 = vadd.f32 %v2198_v10, %v2190_v40  ;;  %v2223_v40 = vld [vmem:[#allocation5 + $0x30] sm:$0xff]  ;;  %v2224_v10 = vld [vmem:[#allocation5 + $0x38] sm:$0xff] }
0x2427   :  { %2571 = vtanh.f32 %v2200_v39  ;;  %v2225_v39 = vmax.f32 %v2217_v54, %v2221_v42 }
0x242d   :  { %v2572_v16 = vpop.eup %2571 }
0x242e   :  { %2203 = vrot.lane.b32.xlu1 %v2572_v16, %s2843_s4  ;;  %v2266_v16 = vld [vmem:[#allocation17 + $0x8] sm:$0xff] }
0x2434   :  { %v2178_v49 = vpop.permute.xlu0 %2177 }
0x2435   :  { %v2180_v17 = vadd.f32 %v2178_v49, %v2170_v43  ;;  %v2226_v43 = vmax.f32 %v2218_v55, %v2222_v14  ;;  %v2227_v49 = vmax.f32 %v2219_v51, %v2223_v40 }
0x2437   :  { %2573 = vtanh.f32 %v2180_v17  ;;  %v2229_v19 = vmax.f32 %v2225_v39, %v2226_v43 }
0x243d   :  { %v2574_v18 = vpop.eup %2573 }
0x243e   :  { %2183 = vrot.lane.b32.xlu2 %v2574_v18, %s2843_s4 }
0x2498   :  { %v2184_v5 = vpop.permute.xlu2 %2183 }
0x2499   :  { %v2186_v62 = vmul.f32 %v2184_v5, %v2169_v48  ;;  %v2268_v48 = vld [vmem:[#allocation17 + $0x18] sm:$0xff]  ;;  %v2250_v5 = vmax.f32 %v2235_v58, %v2239_v6 }
0x249a   :  { %2365 = vmatpush.msrb.mxu0 %v2268_v48 }
0x249b   :  { %2208 = vrot.lane.b32.xlu1 %v2186_v62, %s2844_s18  ;;  %v2245_v62 = vld [vmem:[#allocation3 + $0x60] sm:$0xff] }
0x249c   :  { %2366 = vmatpush.msrb.mxu0 %v2267_v9 }
0x249e   :  { %2367 = vmatpush.msrb.mxu0 %v2266_v16 }
0x24a0   :  { %v2204_v63 = vpop.permute.xlu1 %2203  ;;  %2368 = vmatpush.msrb.mxu0 %v2265_v13 }
0x24a1   :  { %v2206_v2 = vmul.f32 %v2204_v63, %v2189_v45  ;;  %v2220_v45 = vld [vmem:[#allocation5 + $0x18] sm:$0xff]  ;;  %v2251_v63 = vmax.f32 %v2249_v38, %v2241_v44 }
0x24a2   :  { %v2228_v17 = vmax.f32 %v2220_v45, %v2224_v10 }
0x24a3   :  { %2213 = vrot.lane.b32.xlu0 %v2206_v2, %s2844_s18  ;;  %v2252_v2 = vmax.f32 %v2250_v5, %v2243_v23  ;;  %v2253_v46 = vmax.f32 %v2251_v63, %v2245_v62 }
0x24a4   :  { %v2230_v15 = vmax.f32 %v2227_v49, %v2228_v17 }
0x24a6   :  { %v2231_v22 = vmax.f32 %v2229_v19, %v2230_v15 }
0x24a8   :  { %v2232_v24 = vmax.f32 %v2231_v22, 0.0 }
0x24aa   :  { %2369 = vmatmul.f32.vlgmr.msrb.gmra.mxu0 %v2232_v24 }
0x250d   :  { %v2209_v18 = vpop.permute.xlu1 %2208 }
0x250e   :  { %2211 = vst.msk [vmem:[#allocation3 + $0x70] sm:$0xff] %vm363_vm0, %v2209_v18 }
0x2515   :  { %v2214_v47 = vpop.permute.xlu0 %2213  ;;  %v2247_v60 = vld [vmem:[#allocation3 + $0x70] sm:$0xff] }
0x2516   :  { %2216 = vst.msk [vmem:[#allocation3 + $0x8] sm:$0xff] %vm363_vm0, %v2214_v47  ;;  %v2254_v25 = vmax.f32 %v2252_v2, %v2247_v60 }
0x2518   :  { %v2255_v30 = vmax.f32 %v2253_v46, %v2254_v25 }
0x251a   :  { %v2263_v31 = vmax.f32 %v2255_v30, 0.0 }
0x251c   :  { %2329 = vmatmul.f32.vlgmr.msra.gmra.mxu2 %v2263_v31 }
0x251d   :  { %v2234_v41 = vld [vmem:[#allocation3 + $0x8] sm:$0xff] }
0x251e   :  { %v2256_v34 = vmax.f32 %v2234_v41, %v2238_v32 }
0x2520   :  { %v2258_v1 = vmax.f32 %v2256_v34, %v2242_v26 }
0x2522   :  { %v2260_v29 = vmax.f32 %v2258_v1, %v2246_v35 }
0x2524   :  { %v2262_v12 = vmax.f32 %v2260_v29, %v2261_v36 }
0x2526   :  { %v2264_v61 = vmax.f32 %v2262_v12, 0.0 }
0x2527   :  { %v2370_v7 = vpop.f32.mrf.mxu0 }
0x2528   :  { %2349 = vmatmul.f32.vlgmr.msra.gmra.mxu3 %v2264_v61 }
0x259f   :  { %v2330_v37 = vpop.f32.mrf.mxu2 }
0x25ab   :  { %v2350_v53 = vpop.f32.mrf.mxu3 }
0x25ac   :  { %v2351_v56 = vadd.f32 %v2350_v53, %v2330_v37 }
0x25ae   :  { %v2371_v3 = vadd.f32 %v2370_v7, %v2351_v56 }
0x25b0   :  { %v2377_v57 = vadd.f32 %v2446_v59, %v2371_v3 }
0x25b2   :  { %2378 = vst [vmem:[#allocation20] sm:$0xff] %v2377_v57 }
0x25b3   :  { %2389 = dma.vmem_to_hbm [thread:$0]  %s2385_s13, 128, %s2387_s0, [#allocation7]  }
0x25b4   :  { %2826 = dma.done.wait [#allocation7], 128  }
0x25b5   :  { %2827 = vsyncadd [#allocation7], 4294967168 }
0x25b6   :  { %2394 = vsyncpa [#allocation6], 1 }
0x25b7   :  { %2395 = vsyncpa [#allocation9], 1 }
0x25b8   :  { %2396 = vsyncpa [#allocation12], 1 }
0x25b9   :  { %2397 = vsyncpa [#allocation15], 1 }
0x25ba   :  { %2398 = vsyncpa [#allocation18], 1 }
0x25bb   :  { %2399 = vsyncpa [#allocation7], 1 }

</bundles_post_ra>
